<compile_context>
chip_gen: v6e
topology: v6e:2x2x1
jax: 0.10.0
libtpu: 0.0.40
codegen_flags: <defaults>
</compile_context>

<pallas_src>
import functools
import math

import jax
import jax.numpy as jnp
from jax.experimental import pallas as pl
from jax.experimental.pallas import tpu as pltpu


def _sigmoid(x):
    # Exact sigmoid routed through the EUP tanh unit (no VALU divide).
    return 0.5 * (jnp.tanh(0.5 * x) + 1.0)


# ------------------------------ fused Pallas kernel ------------------------------


def _fused_forward_kernel(
    # per-chunk activations
    char_ref, wpc_ref, pad_ref, labels_ref, h0c0_ref,
    # weights (full arrays, VMEM resident)
    cnn_w_ref, cnn_b_ref,
    w_i2m_wpc_ref, w_i2m_char_ref, b_i2m_ref,
    w_ih_ref, b_lstm_ref, w_hh_f_ref, w_hh_b_ref,
    w_qkv_ref, b_qkv_ref, w_oe_ref, b_oe_ref,
    # output: per-chunk (sum of masked NLL, count of valid tokens)
    out_ref,
    # scratch
    hid_buf,
    *, Bc, S, W, k, num_heads, pad_idx):
    f32, bf16 = jnp.float32, jnp.bfloat16
    N = Bc * S
    Cc = char_ref.shape[-1]
    Co = cnn_b_ref.shape[-1]
    HH = w_hh_f_ref.shape[0]          # per-direction hidden size
    G = 4 * HH                        # gates per direction
    HID = 2 * HH
    H = num_heads
    DH = HID // H
    L = b_oe_ref.shape[-1]
    t_out = W - k + 1

    # ---- char CNN -----------------------------------------------------------------
    # TODO(synk): the reference `CNN` class is undefined; Conv1d(kernel=k) + ReLU +
    # max-over-word pooling is assumed.  One (N*W,Cc)x(Cc,k*Co) matmul computes every
    # tap at every position; taps are combined with shifted slices and max-pooled.
    x = char_ref[...].reshape(N * W, Cc)                                   # bf16
    y = jnp.dot(x, cnn_w_ref[...], preferred_element_type=f32)             # (N*W, k*Co)
    y = y.reshape(N, W, k * Co)
    conv = y[:, 0:t_out, 0:Co]
    for j in range(1, k):
        conv = conv + y[:, j:j + t_out, j * Co:(j + 1) * Co]               # (N, t_out, Co)
    # ReLU and max-pool commute (both monotone); bias is position-independent.
    char_f = jnp.maximum(jnp.max(conv, axis=1) + cnn_b_ref[...], 0.0)      # (N, Co)

    # ---- fusion + BatchNorm1d (eval, folded) + input2mod ---------------------------
    wpc = wpc_ref[...].reshape(N, wpc_ref.shape[-1])                       # bf16 (N, 56)
    mod = (jnp.dot(wpc, w_i2m_wpc_ref[...], preferred_element_type=f32)
           + jnp.dot(char_f.astype(bf16), w_i2m_char_ref[...],
                     preferred_element_type=f32)
           + b_i2m_ref[...])                                               # (N, D) f32

    # ---- BiLSTM: input projection hoisted out of the recurrence --------------------
    gx = (jnp.dot(mod.astype(bf16), w_ih_ref[...], preferred_element_type=f32)
          + b_lstm_ref[...])                                               # (N, 8*HH)
    gx = gx.reshape(Bc, S, 2 * G)

    hc0 = h0c0_ref[...]                                                    # (Bc, 4, HH)
    h_f, c_f = hc0[:, 0, :], hc0[:, 1, :]
    h_b, c_b = hc0[:, 2, :], hc0[:, 3, :]

    def cell(c, gates):                     # PyTorch gate order [i, f, g, o]
        ig = _sigmoid(gates[:, 0:HH])
        fg = _sigmoid(gates[:, HH:2 * HH])
        gg = jnp.tanh(gates[:, 2 * HH:3 * HH])
        og = _sigmoid(gates[:, 3 * HH:4 * HH])
        c_new = fg * c + ig * gg
        return og * jnp.tanh(c_new), c_new

    # TODO(synk): switch to lax.fori_loop if S / hid_dim grow (vreg live-range guard).
    for t in range(S):
        tb = S - 1 - t
        g_f = jnp.dot(h_f.astype(bf16), w_hh_f_ref[...],
                      preferred_element_type=f32) + gx[:, t, 0:G]
        h_f, c_f = cell(c_f, g_f)
        hid_buf[:, t, 0:HH] = h_f
        g_b = jnp.dot(h_b.astype(bf16), w_hh_b_ref[...],
                      preferred_element_type=f32) + gx[:, tb, G:2 * G]
        h_b, c_b = cell(c_b, g_b)
        hid_buf[:, tb, HH:HID] = h_b

    # ---- tanh -> masked multi-head self-attention, batched over (Bc * heads) -------
    # TODO(synk): build_attention() is undefined in the source; standard scaled
    # dot-product MHA with fused QKV and an output projection is assumed.
    hid = jnp.tanh(hid_buf[...])                                           # (Bc, S, HID)
    qkv = (jnp.dot(hid.reshape(N, HID).astype(bf16), w_qkv_ref[...],
                   preferred_element_type=f32) + b_qkv_ref[...])           # (N, 3*HID)
    qkv = qkv.reshape(Bc, S, 3 * HID)

    def split_heads(base):                  # -> (H*Bc, S, DH), z = head*Bc + b
        return jnp.concatenate(
            [qkv[:, :, base + h * DH: base + (h + 1) * DH] for h in range(H)], axis=0)

    q = split_heads(0)
    kk = split_heads(HID)
    v = split_heads(2 * HID)

    pad = pad_ref[...]                                                     # (Bc, 1, S)
    pad_z = jnp.concatenate([pad] * H, axis=0)                             # (H*Bc, 1, S)

    scores = jax.lax.dot_general(q.astype(bf16), kk.astype(bf16),
                                 (((2,), (2,)), ((0,), (0,))),
                                 preferred_element_type=f32)               # (H*Bc, S, S)
    scores = scores * (1.0 / math.sqrt(DH)) - pad_z * 1e9                  # mask pad keys
    scores = scores - jnp.max(scores, axis=-1, keepdims=True)
    p = jnp.exp(scores)
    p = p / jnp.sum(p, axis=-1, keepdims=True)                             # exact softmax
    ctx = jax.lax.dot_general(p.astype(bf16), v.astype(bf16),
                              (((2,), (1,)), ((0,), (0,))),
                              preferred_element_type=f32)                  # (H*Bc, S, DH)

    # ---- (attention W_o composed with hid2emission) -> ReLU ------------------------
    # emission_pre = sum_h ctx_h @ (W_o[h] @ W_h2e) + (b_o @ W_h2e + b_h2e): exact
    # linear composition, done as one batched per-head contraction + leading-dim sum.
    emis_h = jax.lax.dot_general(ctx.reshape(H, N, DH).astype(bf16), w_oe_ref[...],
                                 (((2,), (1,)), ((0,), (0,))),
                                 preferred_element_type=f32)               # (H, N, L)
    emission = jnp.maximum(jnp.sum(emis_h, axis=0) + b_oe_ref[...], 0.0)   # (N, L)

    # ---- masked token cross-entropy (ignore_index = pad_idx), reduced per chunk ----
    labels = labels_ref[...].reshape(N, 1)                                 # int32
    m = jnp.max(emission, axis=-1, keepdims=True)
    lse = m + jnp.log(jnp.sum(jnp.exp(emission - m), axis=-1, keepdims=True))
    ids = jax.lax.broadcasted_iota(jnp.int32, (N, L), 1)
    true_logit = jnp.sum(jnp.where(ids == labels, emission, 0.0),
                         axis=-1, keepdims=True)
    nll = lse - true_logit                                                 # (N, 1)
    valid = (labels != pad_idx).astype(f32)                                # (N, 1)
    num = jnp.sum(nll * valid, axis=0, keepdims=True)                      # (1, 1)
    den = jnp.sum(valid, axis=0, keepdims=True)                            # (1, 1)
    out_ref[...] = jnp.concatenate([num, den], axis=1).reshape(1, 1, 2)


# ---------------------------------- model glue -----------------------------------


class Config:
    word_vocab, word_dim = 30, 32
    char_vocab, char_dim = 20, 16
    pos_vocab, pos_dim = 10, 16
    case_vocab, case_dim = 5, 8
    cnn_out, cnn_k = 16, 3
    sent_maxlen, word_maxlen = 8, 8
    input_dim = word_dim + cnn_out + pos_dim + case_dim      # 72
    model_dim = 32
    hid_dim = 32
    num_heads = 4            # args.transformer_num_heads
    bilstm_layers = 1
    num_labels = 8
    word_pad_indx = 0
    label_pad_indx = 7


def _xavier(key, shape):
    fan_in, fan_out = shape[-2], shape[-1]
    std = math.sqrt(2.0 / (fan_in + fan_out))
    return jax.random.normal(key, shape, dtype=jnp.float32) * std


def init_params(cfg, seed=0):
    key = jax.random.PRNGKey(seed)
    ks = iter(jax.random.split(key, 32))
    HH = cfg.hid_dim // 2
    p = {
        "word_emb": jax.random.normal(next(ks), (cfg.word_vocab, cfg.word_dim)) * 0.1,
        "char_emb": jax.random.normal(next(ks), (cfg.char_vocab, cfg.char_dim)) * 0.1,
        "pos_emb": jax.random.normal(next(ks), (cfg.pos_vocab, cfg.pos_dim)) * 0.1,
        "case_emb": jax.random.normal(next(ks), (cfg.case_vocab, cfg.case_dim)) * 0.1,
        "cnn_w": _xavier(next(ks), (cfg.cnn_k, cfg.char_dim, cfg.cnn_out)),
        "cnn_b": jnp.zeros((1, cfg.cnn_out), jnp.float32),
        # BatchNorm1d(input_dim): eval-mode running stats.
        # TODO(synk): the reference train path would use batch statistics + active dropout.
        "bn_gamma": jnp.ones((cfg.input_dim,), jnp.float32),
        "bn_beta": jnp.zeros((cfg.input_dim,), jnp.float32),
        "bn_mean": jnp.zeros((cfg.input_dim,), jnp.float32),
        "bn_var": jnp.ones((cfg.input_dim,), jnp.float32),
        "i2m_w": _xavier(next(ks), (cfg.input_dim, cfg.model_dim)),
        "i2m_b": jnp.zeros((1, cfg.model_dim), jnp.float32),
        # BiLSTM (1 layer), gate columns ordered [i | f | g | o] per direction.
        "lstm_wih_f": _xavier(next(ks), (cfg.model_dim, 4 * HH)),
        "lstm_whh_f": _xavier(next(ks), (HH, 4 * HH)),
        "lstm_b_f": jnp.zeros((1, 4 * HH), jnp.float32),
        "lstm_wih_b": _xavier(next(ks), (cfg.model_dim, 4 * HH)),
        "lstm_whh_b": _xavier(next(ks), (HH, 4 * HH)),
        "lstm_b_b": jnp.zeros((1, 4 * HH), jnp.float32),
        # attention: fused QKV + output projection; hid2emission.
        "attn_wqkv": _xavier(next(ks), (cfg.hid_dim, 3 * cfg.hid_dim)),
        "attn_bqkv": jnp.zeros((1, 3 * cfg.hid_dim), jnp.float32),
        "attn_wo": _xavier(next(ks), (cfg.hid_dim, cfg.hid_dim)),
        "attn_bo": jnp.zeros((1, cfg.hid_dim), jnp.float32),
        "h2e_w": _xavier(next(ks), (cfg.hid_dim, cfg.num_labels)),
        "h2e_b": jnp.zeros((1, cfg.num_labels), jnp.float32),
    }
    return p


def bilstm_atten_crf_forward(params, char_data, word_data, pos_data, case_data,
                             truth_label, h0c0, *, cfg, batch_per_chunk=1):
    """Equivalent of BilstmAttenCRF.forward(..., opt_type='train') -> scalar loss."""
    B, S = word_data.shape
    W = char_data.shape[2]
    k = cfg.cnn_k
    HH = cfg.hid_dim // 2
    HID = cfg.hid_dim
    L = cfg.num_labels
    H = cfg.num_heads
    Bc = batch_per_chunk
    assert B % Bc == 0, "batch must divide evenly into chunks"
    nchunks = B // Bc
    f32, bf16 = jnp.float32, jnp.bfloat16

    # --- embedding gathers stay in XLA (no clean tiny-scale Pallas gather) ---
    char_in = params["char_emb"][char_data].reshape(B, S * W, cfg.char_dim).astype(bf16)
    word_f = params["word_emb"][word_data]
    pos_f = params["pos_emb"][pos_data]
    case_f = params["case_emb"][case_data]
    wpc = jnp.concatenate([word_f, pos_f, case_f], axis=-1).astype(bf16)    # (B, S, 56)

    # --- fold eval-mode BatchNorm1d exactly into input2mod, split by feature group ---
    bn_s = params["bn_gamma"] / jnp.sqrt(params["bn_var"] + 1e-5)
    bn_shift = params["bn_beta"] - params["bn_mean"] * bn_s
    w_eff = params["i2m_w"] * bn_s[:, None]                                 # (input_dim, D)
    b_eff = params["i2m_b"] + bn_shift[None, :] @ params["i2m_w"]           # (1, D)
    wd, co = cfg.word_dim, cfg.cnn_out
    w_wpc = jnp.concatenate([w_eff[:wd], w_eff[wd + co:]], axis=0)          # word|pos|case
    w_char = w_eff[wd:wd + co]

    # --- char CNN weight as (Cc, k*Co); tap j occupies columns [j*Co, (j+1)*Co) ---
    cnn_w = jnp.transpose(params["cnn_w"], (1, 0, 2)).reshape(
        cfg.char_dim, k * cfg.cnn_out)

    # --- BiLSTM: hoisted input projection for both directions; per-direction W_hh ---
    w_ih = jnp.concatenate([params["lstm_wih_f"], params["lstm_wih_b"]], axis=1)
    b_lstm = jnp.concatenate([params["lstm_b_f"], params["lstm_b_b"]], axis=1)

    # --- compose attention output projection with hid2emission (linear o linear) ---
    w_oe = (params["attn_wo"] @ params["h2e_w"]).reshape(H, HID // H, L)    # (H, DH, L)
    b_oe = params["attn_bo"] @ params["h2e_w"] + params["h2e_b"]            # (1, L)

    pad = (word_data == cfg.word_pad_indx).astype(f32).reshape(B, 1, S)
    labels = truth_label.reshape(B, S, 1).astype(jnp.int32)
    h0c0_b = jnp.transpose(h0c0, (1, 0, 2))                                 # (B, 4, HH)

    kernel = functools.partial(_fused_forward_kernel, Bc=Bc, S=S, W=W, k=k,
                               num_heads=H, pad_idx=cfg.label_pad_indx)

    def full2(shape):
        return pl.BlockSpec(shape, lambda i: (0, 0))

    def full3(shape):
        return pl.BlockSpec(shape, lambda i: (0, 0, 0))

    partials = pl.pallas_call(
        kernel,
        grid=(nchunks,),
        in_specs=[
            pl.BlockSpec((Bc, S * W, cfg.char_dim), lambda i: (i, 0, 0)),
            pl.BlockSpec((Bc, S, wpc.shape[-1]), lambda i: (i, 0, 0)),
            pl.BlockSpec((Bc, 1, S), lambda i: (i, 0, 0)),
            pl.BlockSpec((Bc, S, 1), lambda i: (i, 0, 0)),
            pl.BlockSpec((Bc, 4, HH), lambda i: (i, 0, 0)),
            full2(cnn_w.shape), full2(params["cnn_b"].shape),
            full2(w_wpc.shape), full2(w_char.shape), full2(b_eff.shape),
            full2(w_ih.shape), full2(b_lstm.shape),
            full2(params["lstm_whh_f"].shape), full2(params["lstm_whh_b"].shape),
            full2(params["attn_wqkv"].shape), full2(params["attn_bqkv"].shape),
            full3(w_oe.shape), full2(b_oe.shape),
        ],
        out_specs=pl.BlockSpec((1, 1, 2), lambda i: (i, 0, 0)),
        out_shape=jax.ShapeDtypeStruct((nchunks, 1, 2), f32),
        scratch_shapes=[pltpu.VMEM((Bc, S, HID), f32)],
        compiler_params=pltpu.CompilerParams(
            dimension_semantics=("parallel",)),      # v7x: shard chunks across cores
    )(
        char_in, wpc, pad, labels, h0c0_b,
        cnn_w.astype(bf16), params["cnn_b"].astype(f32),
        w_wpc.astype(bf16), w_char.astype(bf16), b_eff.astype(f32),
        w_ih.astype(bf16), b_lstm.astype(f32),
        params["lstm_whh_f"].astype(bf16), params["lstm_whh_b"].astype(bf16),
        params["attn_wqkv"].astype(bf16), params["attn_bqkv"].astype(f32),
        w_oe.astype(bf16), b_oe.astype(f32),
    )

    num = jnp.sum(partials[:, 0, 0])
    den = jnp.maximum(jnp.sum(partials[:, 0, 1]), 1.0)
    return num / den


# -------------------------------------- main --------------------------------------

if __name__ == "__main__":
    cfg = Config()
    params = init_params(cfg, seed=0)

    key = jax.random.PRNGKey(0)
    k1, k2, k3, k4, k5, k6 = jax.random.split(key, 6)
    B, S, W = 2, cfg.sent_maxlen, cfg.word_maxlen

    word_data = jax.random.randint(k1, (B, S), 1, cfg.word_vocab, dtype=jnp.int32)
    word_data = word_data.at[1, S - 2:].set(cfg.word_pad_indx)          # some padding
    char_data = jax.random.randint(k2, (B, S, W), 0, cfg.char_vocab, dtype=jnp.int32)
    pos_data = jax.random.randint(k3, (B, S), 0, cfg.pos_vocab, dtype=jnp.int32)
    case_data = jax.random.randint(k4, (B, S), 0, cfg.case_vocab, dtype=jnp.int32)
    truth_label = jax.random.randint(k5, (B, S), 0, cfg.num_labels - 1, dtype=jnp.int32)
    truth_label = jnp.where(word_data == cfg.word_pad_indx,
                            cfg.label_pad_indx, truth_label)

    # init_lstm_hidden uses torch.randn; deterministic equivalent: [h_f, c_f, h_b, c_b]
    HH = cfg.hid_dim // 2
    h0c0 = jax.random.normal(k6, (4, B, HH), dtype=jnp.float32)

    fwd = jax.jit(functools.partial(bilstm_atten_crf_forward, cfg=cfg,
                                    batch_per_chunk=1))
    loss = fwd(params, char_data, word_data, pos_data, case_data, truth_label, h0c0)
    loss = jax.block_until_ready(loss)
    assert bool(jnp.isfinite(loss)), "non-finite loss"
    print("KERNEL_OK")
</pallas_src>

<mosaic_0001>
module attributes {stable_mosaic.version = 11 : i64} {
  func.func @_fused_forward_kernel(%arg0: i32, %arg1: memref<1x64x16xbf16, #tpu.memory_space<vmem>>, %arg2: memref<1x8x56xbf16, #tpu.memory_space<vmem>>, %arg3: memref<1x1x8xf32, #tpu.memory_space<vmem>>, %arg4: memref<1x8x1xi32, #tpu.memory_space<vmem>>, %arg5: memref<1x4x16xf32, #tpu.memory_space<vmem>>, %arg6: memref<16x48xbf16, #tpu.memory_space<vmem>>, %arg7: memref<1x16xf32, #tpu.memory_space<vmem>>, %arg8: memref<56x32xbf16, #tpu.memory_space<vmem>>, %arg9: memref<16x32xbf16, #tpu.memory_space<vmem>>, %arg10: memref<1x32xf32, #tpu.memory_space<vmem>>, %arg11: memref<32x128xbf16, #tpu.memory_space<vmem>>, %arg12: memref<1x128xf32, #tpu.memory_space<vmem>>, %arg13: memref<16x64xbf16, #tpu.memory_space<vmem>>, %arg14: memref<16x64xbf16, #tpu.memory_space<vmem>>, %arg15: memref<32x96xbf16, #tpu.memory_space<vmem>>, %arg16: memref<1x96xf32, #tpu.memory_space<vmem>>, %arg17: memref<4x8x8xbf16, #tpu.memory_space<vmem>>, %arg18: memref<1x8xf32, #tpu.memory_space<vmem>>, %arg19: memref<1x1x2xf32, #tpu.memory_space<vmem>>, %arg20: memref<1x8x32xf32, #tpu.memory_space<vmem>>) attributes {dimension_semantics = [#tpu.dimension_semantics<parallel>], iteration_bounds = array<i64: 2>, scalar_prefetch = 0 : i64, scratch_operands = 1 : i64, tpu.core_type = #tpu.core_type<tc>, window_params = [{transform_indices = @transform_0, window_bounds = array<i64: 1, 64, 16>}, {transform_indices = @transform_1, window_bounds = array<i64: 1, 8, 56>}, {transform_indices = @transform_2, window_bounds = array<i64: 1, 1, 8>}, {transform_indices = @transform_3, window_bounds = array<i64: 1, 8, 1>}, {transform_indices = @transform_4, window_bounds = array<i64: 1, 4, 16>}, {pipeline_mode = #tpu.pipeline_mode<synchronous>, transform_indices = @transform_5, window_bounds = array<i64: 16, 48>}, {pipeline_mode = #tpu.pipeline_mode<synchronous>, transform_indices = @transform_6, window_bounds = array<i64: 1, 16>}, {pipeline_mode = #tpu.pipeline_mode<synchronous>, transform_indices = @transform_7, window_bounds = array<i64: 56, 32>}, {pipeline_mode = #tpu.pipeline_mode<synchronous>, transform_indices = @transform_8, window_bounds = array<i64: 16, 32>}, {pipeline_mode = #tpu.pipeline_mode<synchronous>, transform_indices = @transform_9, window_bounds = array<i64: 1, 32>}, {pipeline_mode = #tpu.pipeline_mode<synchronous>, transform_indices = @transform_10, window_bounds = array<i64: 32, 128>}, {pipeline_mode = #tpu.pipeline_mode<synchronous>, transform_indices = @transform_11, window_bounds = array<i64: 1, 128>}, {pipeline_mode = #tpu.pipeline_mode<synchronous>, transform_indices = @transform_12, window_bounds = array<i64: 16, 64>}, {pipeline_mode = #tpu.pipeline_mode<synchronous>, transform_indices = @transform_13, window_bounds = array<i64: 16, 64>}, {pipeline_mode = #tpu.pipeline_mode<synchronous>, transform_indices = @transform_14, window_bounds = array<i64: 32, 96>}, {pipeline_mode = #tpu.pipeline_mode<synchronous>, transform_indices = @transform_15, window_bounds = array<i64: 1, 96>}, {pipeline_mode = #tpu.pipeline_mode<synchronous>, transform_indices = @transform_16, window_bounds = array<i64: 4, 8, 8>}, {pipeline_mode = #tpu.pipeline_mode<synchronous>, transform_indices = @transform_17, window_bounds = array<i64: 1, 8>}, {transform_indices = @transform_18, window_bounds = array<i64: 1, 1, 2>}]} {
    %c0 = arith.constant 0 : index
    %c0_0 = arith.constant 0 : index
    %c0_1 = arith.constant 0 : index
    %0 = vector.load %arg1[%c0, %c0_0, %c0_1] : memref<1x64x16xbf16, #tpu.memory_space<vmem>>, vector<1x64x16xbf16>
    %1 = vector.shape_cast %0 : vector<1x64x16xbf16> to vector<64x16xbf16>
    %c0_2 = arith.constant 0 : index
    %c0_3 = arith.constant 0 : index
    %2 = vector.load %arg6[%c0_2, %c0_3] : memref<16x48xbf16, #tpu.memory_space<vmem>>, vector<16x48xbf16>
    %cst = arith.constant dense<0.000000e+00> : vector<64x48xf32>
    %3 = tpu.matmul %1, %2, %cst {dimension_numbers = #tpu.dot_dimension_numbers<[1], [0], [0], [1], [0, 0, 1, 1], [], []>} : vector<64x16xbf16>, vector<16x48xbf16>, vector<64x48xf32> -> vector<64x48xf32>
    %4 = vector.shape_cast %3 : vector<64x48xf32> to vector<8x8x48xf32>
    %5 = vector.extract_strided_slice %4 {offsets = [0, 0, 0], sizes = [8, 6, 16], strides = [1, 1, 1]} : vector<8x8x48xf32> to vector<8x6x16xf32>
    %6 = vector.extract_strided_slice %4 {offsets = [0, 1, 16], sizes = [8, 6, 16], strides = [1, 1, 1]} : vector<8x8x48xf32> to vector<8x6x16xf32>
    %7 = arith.addf %5, %6 : vector<8x6x16xf32>
    %8 = vector.extract_strided_slice %4 {offsets = [0, 2, 32], sizes = [8, 6, 16], strides = [1, 1, 1]} : vector<8x8x48xf32> to vector<8x6x16xf32>
    %9 = arith.addf %7, %8 : vector<8x6x16xf32>
    %cst_4 = arith.constant dense<0xFF800000> : vector<8x16xf32>
    %10 = vector.multi_reduction <maximumf>, %9, %cst_4 [1] : vector<8x6x16xf32> to vector<8x16xf32>
    %c0_5 = arith.constant 0 : index
    %c0_6 = arith.constant 0 : index
    %11 = vector.load %arg7[%c0_5, %c0_6] : memref<1x16xf32, #tpu.memory_space<vmem>>, vector<1x16xf32>
    %12 = vector.broadcast %11 : vector<1x16xf32> to vector<8x16xf32>
    %13 = arith.addf %10, %12 : vector<8x16xf32>
    %cst_7 = arith.constant 0.000000e+00 : f32
    %14 = vector.broadcast %cst_7 : f32 to vector<8x16xf32>
    %15 = arith.maximumf %13, %14 : vector<8x16xf32>
    %c0_8 = arith.constant 0 : index
    %c0_9 = arith.constant 0 : index
    %c0_10 = arith.constant 0 : index
    %16 = vector.load %arg2[%c0_8, %c0_9, %c0_10] : memref<1x8x56xbf16, #tpu.memory_space<vmem>>, vector<1x8x56xbf16>
    %17 = vector.shape_cast %16 : vector<1x8x56xbf16> to vector<8x56xbf16>
    %c0_11 = arith.constant 0 : index
    %c0_12 = arith.constant 0 : index
    %18 = vector.load %arg8[%c0_11, %c0_12] : memref<56x32xbf16, #tpu.memory_space<vmem>>, vector<56x32xbf16>
    %cst_13 = arith.constant dense<0.000000e+00> : vector<8x32xf32>
    %19 = tpu.matmul %17, %18, %cst_13 {dimension_numbers = #tpu.dot_dimension_numbers<[1], [0], [0], [1], [0, 0, 1, 1], [], []>} : vector<8x56xbf16>, vector<56x32xbf16>, vector<8x32xf32> -> vector<8x32xf32>
    %20 = arith.truncf %15 : vector<8x16xf32> to vector<8x16xbf16>
    %c0_14 = arith.constant 0 : index
    %c0_15 = arith.constant 0 : index
    %21 = vector.load %arg9[%c0_14, %c0_15] : memref<16x32xbf16, #tpu.memory_space<vmem>>, vector<16x32xbf16>
    %cst_16 = arith.constant dense<0.000000e+00> : vector<8x32xf32>
    %22 = tpu.matmul %20, %21, %cst_16 {dimension_numbers = #tpu.dot_dimension_numbers<[1], [0], [0], [1], [0, 0, 1, 1], [], []>} : vector<8x16xbf16>, vector<16x32xbf16>, vector<8x32xf32> -> vector<8x32xf32>
    %23 = arith.addf %19, %22 : vector<8x32xf32>
    %c0_17 = arith.constant 0 : index
    %c0_18 = arith.constant 0 : index
    %24 = vector.load %arg10[%c0_17, %c0_18] : memref<1x32xf32, #tpu.memory_space<vmem>>, vector<1x32xf32>
    %25 = vector.broadcast %24 : vector<1x32xf32> to vector<8x32xf32>
    %26 = arith.addf %23, %25 : vector<8x32xf32>
    %27 = arith.truncf %26 : vector<8x32xf32> to vector<8x32xbf16>
    %c0_19 = arith.constant 0 : index
    %c0_20 = arith.constant 0 : index
    %28 = vector.load %arg11[%c0_19, %c0_20] : memref<32x128xbf16, #tpu.memory_space<vmem>>, vector<32x128xbf16>
    %cst_21 = arith.constant dense<0.000000e+00> : vector<8x128xf32>
    %29 = tpu.matmul %27, %28, %cst_21 {dimension_numbers = #tpu.dot_dimension_numbers<[1], [0], [0], [1], [0, 0, 1, 1], [], []>} : vector<8x32xbf16>, vector<32x128xbf16>, vector<8x128xf32> -> vector<8x128xf32>
    %c0_22 = arith.constant 0 : index
    %c0_23 = arith.constant 0 : index
    %30 = vector.load %arg12[%c0_22, %c0_23] : memref<1x128xf32, #tpu.memory_space<vmem>>, vector<1x128xf32>
    %31 = vector.broadcast %30 : vector<1x128xf32> to vector<8x128xf32>
    %32 = arith.addf %29, %31 : vector<8x128xf32>
    %33 = vector.shape_cast %32 : vector<8x128xf32> to vector<1x8x128xf32>
    %c0_24 = arith.constant 0 : index
    %c0_25 = arith.constant 0 : index
    %c0_26 = arith.constant 0 : index
    %34 = vector.load %arg5[%c0_24, %c0_25, %c0_26] : memref<1x4x16xf32, #tpu.memory_space<vmem>>, vector<1x4x16xf32>
    %35 = vector.extract_strided_slice %34 {offsets = [0, 0, 0], sizes = [1, 1, 16], strides = [1, 1, 1]} : vector<1x4x16xf32> to vector<1x1x16xf32>
    %36 = vector.shape_cast %35 : vector<1x1x16xf32> to vector<1x16xf32>
    %37 = vector.extract_strided_slice %34 {offsets = [0, 1, 0], sizes = [1, 1, 16], strides = [1, 1, 1]} : vector<1x4x16xf32> to vector<1x1x16xf32>
    %38 = vector.shape_cast %37 : vector<1x1x16xf32> to vector<1x16xf32>
    %39 = vector.extract_strided_slice %34 {offsets = [0, 2, 0], sizes = [1, 1, 16], strides = [1, 1, 1]} : vector<1x4x16xf32> to vector<1x1x16xf32>
    %40 = vector.shape_cast %39 : vector<1x1x16xf32> to vector<1x16xf32>
    %41 = vector.extract_strided_slice %34 {offsets = [0, 3, 0], sizes = [1, 1, 16], strides = [1, 1, 1]} : vector<1x4x16xf32> to vector<1x1x16xf32>
    %42 = vector.shape_cast %41 : vector<1x1x16xf32> to vector<1x16xf32>
    %43 = arith.truncf %36 : vector<1x16xf32> to vector<1x16xbf16>
    %c0_27 = arith.constant 0 : index
    %c0_28 = arith.constant 0 : index
    %44 = vector.load %arg13[%c0_27, %c0_28] : memref<16x64xbf16, #tpu.memory_space<vmem>>, vector<16x64xbf16>
    %cst_29 = arith.constant dense<0.000000e+00> : vector<1x64xf32>
    %45 = tpu.matmul %43, %44, %cst_29 {dimension_numbers = #tpu.dot_dimension_numbers<[1], [0], [0], [1], [0, 0, 1, 1], [], []>} : vector<1x16xbf16>, vector<16x64xbf16>, vector<1x64xf32> -> vector<1x64xf32>
    %46 = vector.extract_strided_slice %33 {offsets = [0, 0, 0], sizes = [1, 1, 64], strides = [1, 1, 1]} : vector<1x8x128xf32> to vector<1x1x64xf32>
    %47 = vector.shape_cast %46 : vector<1x1x64xf32> to vector<1x64xf32>
    %48 = arith.addf %45, %47 : vector<1x64xf32>
    %49 = vector.extract_strided_slice %48 {offsets = [0, 0], sizes = [1, 16], strides = [1, 1]} : vector<1x64xf32> to vector<1x16xf32>
    %cst_30 = arith.constant 5.000000e-01 : f32
    %50 = vector.broadcast %cst_30 : f32 to vector<1x16xf32>
    %51 = arith.mulf %50, %49 : vector<1x16xf32>
    %52 = math.tanh %51 : vector<1x16xf32>
    %cst_31 = arith.constant 1.000000e+00 : f32
    %53 = vector.broadcast %cst_31 : f32 to vector<1x16xf32>
    %54 = arith.addf %52, %53 : vector<1x16xf32>
    %cst_32 = arith.constant 5.000000e-01 : f32
    %55 = vector.broadcast %cst_32 : f32 to vector<1x16xf32>
    %56 = arith.mulf %55, %54 : vector<1x16xf32>
    %57 = vector.extract_strided_slice %48 {offsets = [0, 16], sizes = [1, 16], strides = [1, 1]} : vector<1x64xf32> to vector<1x16xf32>
    %cst_33 = arith.constant 5.000000e-01 : f32
    %58 = vector.broadcast %cst_33 : f32 to vector<1x16xf32>
    %59 = arith.mulf %58, %57 : vector<1x16xf32>
    %60 = math.tanh %59 : vector<1x16xf32>
    %cst_34 = arith.constant 1.000000e+00 : f32
    %61 = vector.broadcast %cst_34 : f32 to vector<1x16xf32>
    %62 = arith.addf %60, %61 : vector<1x16xf32>
    %cst_35 = arith.constant 5.000000e-01 : f32
    %63 = vector.broadcast %cst_35 : f32 to vector<1x16xf32>
    %64 = arith.mulf %63, %62 : vector<1x16xf32>
    %65 = vector.extract_strided_slice %48 {offsets = [0, 32], sizes = [1, 16], strides = [1, 1]} : vector<1x64xf32> to vector<1x16xf32>
    %66 = math.tanh %65 : vector<1x16xf32>
    %67 = vector.extract_strided_slice %48 {offsets = [0, 48], sizes = [1, 16], strides = [1, 1]} : vector<1x64xf32> to vector<1x16xf32>
    %cst_36 = arith.constant 5.000000e-01 : f32
    %68 = vector.broadcast %cst_36 : f32 to vector<1x16xf32>
    %69 = arith.mulf %68, %67 : vector<1x16xf32>
    %70 = math.tanh %69 : vector<1x16xf32>
    %cst_37 = arith.constant 1.000000e+00 : f32
    %71 = vector.broadcast %cst_37 : f32 to vector<1x16xf32>
    %72 = arith.addf %70, %71 : vector<1x16xf32>
    %cst_38 = arith.constant 5.000000e-01 : f32
    %73 = vector.broadcast %cst_38 : f32 to vector<1x16xf32>
    %74 = arith.mulf %73, %72 : vector<1x16xf32>
    %75 = arith.mulf %64, %38 : vector<1x16xf32>
    %76 = arith.mulf %56, %66 : vector<1x16xf32>
    %77 = arith.addf %75, %76 : vector<1x16xf32>
    %78 = math.tanh %77 : vector<1x16xf32>
    %79 = arith.mulf %74, %78 : vector<1x16xf32>
    %c0_39 = arith.constant 0 : index
    %c0_40 = arith.constant 0 : index
    %c0_41 = arith.constant 0 : index
    %80 = vector.load %arg20[%c0_39, %c0_40, %c0_41] : memref<1x8x32xf32, #tpu.memory_space<vmem>>, vector<1x1x16xf32>
    %81 = vector.shape_cast %80 : vector<1x1x16xf32> to vector<1x16xf32>
    %82 = vector.shape_cast %79 : vector<1x16xf32> to vector<1x1x16xf32>
    tpu.vector_store %arg20[%c0_39, %c0_40, %c0_41], %82 {strides = array<i32>} : memref<1x8x32xf32, #tpu.memory_space<vmem>>, vector<1x1x16xf32>,
    %83 = arith.truncf %40 : vector<1x16xf32> to vector<1x16xbf16>
    %c0_42 = arith.constant 0 : index
    %c0_43 = arith.constant 0 : index
    %84 = vector.load %arg14[%c0_42, %c0_43] : memref<16x64xbf16, #tpu.memory_space<vmem>>, vector<16x64xbf16>
    %cst_44 = arith.constant dense<0.000000e+00> : vector<1x64xf32>
    %85 = tpu.matmul %83, %84, %cst_44 {dimension_numbers = #tpu.dot_dimension_numbers<[1], [0], [0], [1], [0, 0, 1, 1], [], []>} : vector<1x16xbf16>, vector<16x64xbf16>, vector<1x64xf32> -> vector<1x64xf32>
    %86 = vector.extract_strided_slice %33 {offsets = [0, 7, 64], sizes = [1, 1, 64], strides = [1, 1, 1]} : vector<1x8x128xf32> to vector<1x1x64xf32>
    %87 = vector.shape_cast %86 : vector<1x1x64xf32> to vector<1x64xf32>
    %88 = arith.addf %85, %87 : vector<1x64xf32>
    %89 = vector.extract_strided_slice %88 {offsets = [0, 0], sizes = [1, 16], strides = [1, 1]} : vector<1x64xf32> to vector<1x16xf32>
    %cst_45 = arith.constant 5.000000e-01 : f32
    %90 = vector.broadcast %cst_45 : f32 to vector<1x16xf32>
    %91 = arith.mulf %90, %89 : vector<1x16xf32>
    %92 = math.tanh %91 : vector<1x16xf32>
    %cst_46 = arith.constant 1.000000e+00 : f32
    %93 = vector.broadcast %cst_46 : f32 to vector<1x16xf32>
    %94 = arith.addf %92, %93 : vector<1x16xf32>
    %cst_47 = arith.constant 5.000000e-01 : f32
    %95 = vector.broadcast %cst_47 : f32 to vector<1x16xf32>
    %96 = arith.mulf %95, %94 : vector<1x16xf32>
    %97 = vector.extract_strided_slice %88 {offsets = [0, 16], sizes = [1, 16], strides = [1, 1]} : vector<1x64xf32> to vector<1x16xf32>
    %cst_48 = arith.constant 5.000000e-01 : f32
    %98 = vector.broadcast %cst_48 : f32 to vector<1x16xf32>
    %99 = arith.mulf %98, %97 : vector<1x16xf32>
    %100 = math.tanh %99 : vector<1x16xf32>
    %cst_49 = arith.constant 1.000000e+00 : f32
    %101 = vector.broadcast %cst_49 : f32 to vector<1x16xf32>
    %102 = arith.addf %100, %101 : vector<1x16xf32>
    %cst_50 = arith.constant 5.000000e-01 : f32
    %103 = vector.broadcast %cst_50 : f32 to vector<1x16xf32>
    %104 = arith.mulf %103, %102 : vector<1x16xf32>
    %105 = vector.extract_strided_slice %88 {offsets = [0, 32], sizes = [1, 16], strides = [1, 1]} : vector<1x64xf32> to vector<1x16xf32>
    %106 = math.tanh %105 : vector<1x16xf32>
    %107 = vector.extract_strided_slice %88 {offsets = [0, 48], sizes = [1, 16], strides = [1, 1]} : vector<1x64xf32> to vector<1x16xf32>
    %cst_51 = arith.constant 5.000000e-01 : f32
    %108 = vector.broadcast %cst_51 : f32 to vector<1x16xf32>
    %109 = arith.mulf %108, %107 : vector<1x16xf32>
    %110 = math.tanh %109 : vector<1x16xf32>
    %cst_52 = arith.constant 1.000000e+00 : f32
    %111 = vector.broadcast %cst_52 : f32 to vector<1x16xf32>
    %112 = arith.addf %110, %111 : vector<1x16xf32>
    %cst_53 = arith.constant 5.000000e-01 : f32
    %113 = vector.broadcast %cst_53 : f32 to vector<1x16xf32>
    %114 = arith.mulf %113, %112 : vector<1x16xf32>
    %115 = arith.mulf %104, %42 : vector<1x16xf32>
    %116 = arith.mulf %96, %106 : vector<1x16xf32>
    %117 = arith.addf %115, %116 : vector<1x16xf32>
    %118 = math.tanh %117 : vector<1x16xf32>
    %119 = arith.mulf %114, %118 : vector<1x16xf32>
    %c0_54 = arith.constant 0 : index
    %c7 = arith.constant 7 : index
    %c16 = arith.constant 16 : index
    %120 = vector.load %arg20[%c0_54, %c7, %c16] : memref<1x8x32xf32, #tpu.memory_space<vmem>>, vector<1x1x16xf32>
    %121 = vector.shape_cast %120 : vector<1x1x16xf32> to vector<1x16xf32>
    %122 = vector.shape_cast %119 : vector<1x16xf32> to vector<1x1x16xf32>
    tpu.vector_store %arg20[%c0_54, %c7, %c16], %122 {strides = array<i32>} : memref<1x8x32xf32, #tpu.memory_space<vmem>>, vector<1x1x16xf32>,
    %123 = arith.truncf %79 : vector<1x16xf32> to vector<1x16xbf16>
    %c0_55 = arith.constant 0 : index
    %c0_56 = arith.constant 0 : index
    %124 = vector.load %arg13[%c0_55, %c0_56] : memref<16x64xbf16, #tpu.memory_space<vmem>>, vector<16x64xbf16>
    %cst_57 = arith.constant dense<0.000000e+00> : vector<1x64xf32>
    %125 = tpu.matmul %123, %124, %cst_57 {dimension_numbers = #tpu.dot_dimension_numbers<[1], [0], [0], [1], [0, 0, 1, 1], [], []>} : vector<1x16xbf16>, vector<16x64xbf16>, vector<1x64xf32> -> vector<1x64xf32>
    %126 = vector.extract_strided_slice %33 {offsets = [0, 1, 0], sizes = [1, 1, 64], strides = [1, 1, 1]} : vector<1x8x128xf32> to vector<1x1x64xf32>
    %127 = vector.shape_cast %126 : vector<1x1x64xf32> to vector<1x64xf32>
    %128 = arith.addf %125, %127 : vector<1x64xf32>
    %129 = vector.extract_strided_slice %128 {offsets = [0, 0], sizes = [1, 16], strides = [1, 1]} : vector<1x64xf32> to vector<1x16xf32>
    %cst_58 = arith.constant 5.000000e-01 : f32
    %130 = vector.broadcast %cst_58 : f32 to vector<1x16xf32>
    %131 = arith.mulf %130, %129 : vector<1x16xf32>
    %132 = math.tanh %131 : vector<1x16xf32>
    %cst_59 = arith.constant 1.000000e+00 : f32
    %133 = vector.broadcast %cst_59 : f32 to vector<1x16xf32>
    %134 = arith.addf %132, %133 : vector<1x16xf32>
    %cst_60 = arith.constant 5.000000e-01 : f32
    %135 = vector.broadcast %cst_60 : f32 to vector<1x16xf32>
    %136 = arith.mulf %135, %134 : vector<1x16xf32>
    %137 = vector.extract_strided_slice %128 {offsets = [0, 16], sizes = [1, 16], strides = [1, 1]} : vector<1x64xf32> to vector<1x16xf32>
    %cst_61 = arith.constant 5.000000e-01 : f32
    %138 = vector.broadcast %cst_61 : f32 to vector<1x16xf32>
    %139 = arith.mulf %138, %137 : vector<1x16xf32>
    %140 = math.tanh %139 : vector<1x16xf32>
    %cst_62 = arith.constant 1.000000e+00 : f32
    %141 = vector.broadcast %cst_62 : f32 to vector<1x16xf32>
    %142 = arith.addf %140, %141 : vector<1x16xf32>
    %cst_63 = arith.constant 5.000000e-01 : f32
    %143 = vector.broadcast %cst_63 : f32 to vector<1x16xf32>
    %144 = arith.mulf %143, %142 : vector<1x16xf32>
    %145 = vector.extract_strided_slice %128 {offsets = [0, 32], sizes = [1, 16], strides = [1, 1]} : vector<1x64xf32> to vector<1x16xf32>
    %146 = math.tanh %145 : vector<1x16xf32>
    %147 = vector.extract_strided_slice %128 {offsets = [0, 48], sizes = [1, 16], strides = [1, 1]} : vector<1x64xf32> to vector<1x16xf32>
    %cst_64 = arith.constant 5.000000e-01 : f32
    %148 = vector.broadcast %cst_64 : f32 to vector<1x16xf32>
    %149 = arith.mulf %148, %147 : vector<1x16xf32>
    %150 = math.tanh %149 : vector<1x16xf32>
    %cst_65 = arith.constant 1.000000e+00 : f32
    %151 = vector.broadcast %cst_65 : f32 to vector<1x16xf32>
    %152 = arith.addf %150, %151 : vector<1x16xf32>
    %cst_66 = arith.constant 5.000000e-01 : f32
    %153 = vector.broadcast %cst_66 : f32 to vector<1x16xf32>
    %154 = arith.mulf %153, %152 : vector<1x16xf32>
    %155 = arith.mulf %144, %77 : vector<1x16xf32>
    %156 = arith.mulf %136, %146 : vector<1x16xf32>
    %157 = arith.addf %155, %156 : vector<1x16xf32>
    %158 = math.tanh %157 : vector<1x16xf32>
    %159 = arith.mulf %154, %158 : vector<1x16xf32>
    %c0_67 = arith.constant 0 : index
    %c1 = arith.constant 1 : index
    %c0_68 = arith.constant 0 : index
    %160 = vector.load %arg20[%c0_67, %c1, %c0_68] : memref<1x8x32xf32, #tpu.memory_space<vmem>>, vector<1x1x16xf32>
    %161 = vector.shape_cast %160 : vector<1x1x16xf32> to vector<1x16xf32>
    %162 = vector.shape_cast %159 : vector<1x16xf32> to vector<1x1x16xf32>
    tpu.vector_store %arg20[%c0_67, %c1, %c0_68], %162 {strides = array<i32>} : memref<1x8x32xf32, #tpu.memory_space<vmem>>, vector<1x1x16xf32>,
    %163 = arith.truncf %119 : vector<1x16xf32> to vector<1x16xbf16>
    %c0_69 = arith.constant 0 : index
    %c0_70 = arith.constant 0 : index
    %164 = vector.load %arg14[%c0_69, %c0_70] : memref<16x64xbf16, #tpu.memory_space<vmem>>, vector<16x64xbf16>
    %cst_71 = arith.constant dense<0.000000e+00> : vector<1x64xf32>
    %165 = tpu.matmul %163, %164, %cst_71 {dimension_numbers = #tpu.dot_dimension_numbers<[1], [0], [0], [1], [0, 0, 1, 1], [], []>} : vector<1x16xbf16>, vector<16x64xbf16>, vector<1x64xf32> -> vector<1x64xf32>
    %166 = vector.extract_strided_slice %33 {offsets = [0, 6, 64], sizes = [1, 1, 64], strides = [1, 1, 1]} : vector<1x8x128xf32> to vector<1x1x64xf32>
    %167 = vector.shape_cast %166 : vector<1x1x64xf32> to vector<1x64xf32>
    %168 = arith.addf %165, %167 : vector<1x64xf32>
    %169 = vector.extract_strided_slice %168 {offsets = [0, 0], sizes = [1, 16], strides = [1, 1]} : vector<1x64xf32> to vector<1x16xf32>
    %cst_72 = arith.constant 5.000000e-01 : f32
    %170 = vector.broadcast %cst_72 : f32 to vector<1x16xf32>
    %171 = arith.mulf %170, %169 : vector<1x16xf32>
    %172 = math.tanh %171 : vector<1x16xf32>
    %cst_73 = arith.constant 1.000000e+00 : f32
    %173 = vector.broadcast %cst_73 : f32 to vector<1x16xf32>
    %174 = arith.addf %172, %173 : vector<1x16xf32>
    %cst_74 = arith.constant 5.000000e-01 : f32
    %175 = vector.broadcast %cst_74 : f32 to vector<1x16xf32>
    %176 = arith.mulf %175, %174 : vector<1x16xf32>
    %177 = vector.extract_strided_slice %168 {offsets = [0, 16], sizes = [1, 16], strides = [1, 1]} : vector<1x64xf32> to vector<1x16xf32>
    %cst_75 = arith.constant 5.000000e-01 : f32
    %178 = vector.broadcast %cst_75 : f32 to vector<1x16xf32>
    %179 = arith.mulf %178, %177 : vector<1x16xf32>
    %180 = math.tanh %179 : vector<1x16xf32>
    %cst_76 = arith.constant 1.000000e+00 : f32
    %181 = vector.broadcast %cst_76 : f32 to vector<1x16xf32>
    %182 = arith.addf %180, %181 : vector<1x16xf32>
    %cst_77 = arith.constant 5.000000e-01 : f32
    %183 = vector.broadcast %cst_77 : f32 to vector<1x16xf32>
    %184 = arith.mulf %183, %182 : vector<1x16xf32>
    %185 = vector.extract_strided_slice %168 {offsets = [0, 32], sizes = [1, 16], strides = [1, 1]} : vector<1x64xf32> to vector<1x16xf32>
    %186 = math.tanh %185 : vector<1x16xf32>
    %187 = vector.extract_strided_slice %168 {offsets = [0, 48], sizes = [1, 16], strides = [1, 1]} : vector<1x64xf32> to vector<1x16xf32>
    %cst_78 = arith.constant 5.000000e-01 : f32
    %188 = vector.broadcast %cst_78 : f32 to vector<1x16xf32>
    %189 = arith.mulf %188, %187 : vector<1x16xf32>
    %190 = math.tanh %189 : vector<1x16xf32>
    %cst_79 = arith.constant 1.000000e+00 : f32
    %191 = vector.broadcast %cst_79 : f32 to vector<1x16xf32>
    %192 = arith.addf %190, %191 : vector<1x16xf32>
    %cst_80 = arith.constant 5.000000e-01 : f32
    %193 = vector.broadcast %cst_80 : f32 to vector<1x16xf32>
    %194 = arith.mulf %193, %192 : vector<1x16xf32>
    %195 = arith.mulf %184, %117 : vector<1x16xf32>
    %196 = arith.mulf %176, %186 : vector<1x16xf32>
    %197 = arith.addf %195, %196 : vector<1x16xf32>
    %198 = math.tanh %197 : vector<1x16xf32>
    %199 = arith.mulf %194, %198 : vector<1x16xf32>
    %c0_81 = arith.constant 0 : index
    %c6 = arith.constant 6 : index
    %c16_82 = arith.constant 16 : index
    %200 = vector.load %arg20[%c0_81, %c6, %c16_82] : memref<1x8x32xf32, #tpu.memory_space<vmem>>, vector<1x1x16xf32>
    %201 = vector.shape_cast %200 : vector<1x1x16xf32> to vector<1x16xf32>
    %202 = vector.shape_cast %199 : vector<1x16xf32> to vector<1x1x16xf32>
    tpu.vector_store %arg20[%c0_81, %c6, %c16_82], %202 {strides = array<i32>} : memref<1x8x32xf32, #tpu.memory_space<vmem>>, vector<1x1x16xf32>,
    %203 = arith.truncf %159 : vector<1x16xf32> to vector<1x16xbf16>
    %c0_83 = arith.constant 0 : index
    %c0_84 = arith.constant 0 : index
    %204 = vector.load %arg13[%c0_83, %c0_84] : memref<16x64xbf16, #tpu.memory_space<vmem>>, vector<16x64xbf16>
    %cst_85 = arith.constant dense<0.000000e+00> : vector<1x64xf32>
    %205 = tpu.matmul %203, %204, %cst_85 {dimension_numbers = #tpu.dot_dimension_numbers<[1], [0], [0], [1], [0, 0, 1, 1], [], []>} : vector<1x16xbf16>, vector<16x64xbf16>, vector<1x64xf32> -> vector<1x64xf32>
    %206 = vector.extract_strided_slice %33 {offsets = [0, 2, 0], sizes = [1, 1, 64], strides = [1, 1, 1]} : vector<1x8x128xf32> to vector<1x1x64xf32>
    %207 = vector.shape_cast %206 : vector<1x1x64xf32> to vector<1x64xf32>
    %208 = arith.addf %205, %207 : vector<1x64xf32>
    %209 = vector.extract_strided_slice %208 {offsets = [0, 0], sizes = [1, 16], strides = [1, 1]} : vector<1x64xf32> to vector<1x16xf32>
    %cst_86 = arith.constant 5.000000e-01 : f32
    %210 = vector.broadcast %cst_86 : f32 to vector<1x16xf32>
    %211 = arith.mulf %210, %209 : vector<1x16xf32>
    %212 = math.tanh %211 : vector<1x16xf32>
    %cst_87 = arith.constant 1.000000e+00 : f32
    %213 = vector.broadcast %cst_87 : f32 to vector<1x16xf32>
    %214 = arith.addf %212, %213 : vector<1x16xf32>
    %cst_88 = arith.constant 5.000000e-01 : f32
    %215 = vector.broadcast %cst_88 : f32 to vector<1x16xf32>
    %216 = arith.mulf %215, %214 : vector<1x16xf32>
    %217 = vector.extract_strided_slice %208 {offsets = [0, 16], sizes = [1, 16], strides = [1, 1]} : vector<1x64xf32> to vector<1x16xf32>
    %cst_89 = arith.constant 5.000000e-01 : f32
    %218 = vector.broadcast %cst_89 : f32 to vector<1x16xf32>
    %219 = arith.mulf %218, %217 : vector<1x16xf32>
    %220 = math.tanh %219 : vector<1x16xf32>
    %cst_90 = arith.constant 1.000000e+00 : f32
    %221 = vector.broadcast %cst_90 : f32 to vector<1x16xf32>
    %222 = arith.addf %220, %221 : vector<1x16xf32>
    %cst_91 = arith.constant 5.000000e-01 : f32
    %223 = vector.broadcast %cst_91 : f32 to vector<1x16xf32>
    %224 = arith.mulf %223, %222 : vector<1x16xf32>
    %225 = vector.extract_strided_slice %208 {offsets = [0, 32], sizes = [1, 16], strides = [1, 1]} : vector<1x64xf32> to vector<1x16xf32>
    %226 = math.tanh %225 : vector<1x16xf32>
    %227 = vector.extract_strided_slice %208 {offsets = [0, 48], sizes = [1, 16], strides = [1, 1]} : vector<1x64xf32> to vector<1x16xf32>
    %cst_92 = arith.constant 5.000000e-01 : f32
    %228 = vector.broadcast %cst_92 : f32 to vector<1x16xf32>
    %229 = arith.mulf %228, %227 : vector<1x16xf32>
    %230 = math.tanh %229 : vector<1x16xf32>
    %cst_93 = arith.constant 1.000000e+00 : f32
    %231 = vector.broadcast %cst_93 : f32 to vector<1x16xf32>
    %232 = arith.addf %230, %231 : vector<1x16xf32>
    %cst_94 = arith.constant 5.000000e-01 : f32
    %233 = vector.broadcast %cst_94 : f32 to vector<1x16xf32>
    %234 = arith.mulf %233, %232 : vector<1x16xf32>
    %235 = arith.mulf %224, %157 : vector<1x16xf32>
    %236 = arith.mulf %216, %226 : vector<1x16xf32>
    %237 = arith.addf %235, %236 : vector<1x16xf32>
    %238 = math.tanh %237 : vector<1x16xf32>
    %239 = arith.mulf %234, %238 : vector<1x16xf32>
    %c0_95 = arith.constant 0 : index
    %c2 = arith.constant 2 : index
    %c0_96 = arith.constant 0 : index
    %240 = vector.load %arg20[%c0_95, %c2, %c0_96] : memref<1x8x32xf32, #tpu.memory_space<vmem>>, vector<1x1x16xf32>
    %241 = vector.shape_cast %240 : vector<1x1x16xf32> to vector<1x16xf32>
    %242 = vector.shape_cast %239 : vector<1x16xf32> to vector<1x1x16xf32>
    tpu.vector_store %arg20[%c0_95, %c2, %c0_96], %242 {strides = array<i32>} : memref<1x8x32xf32, #tpu.memory_space<vmem>>, vector<1x1x16xf32>,
    %243 = arith.truncf %199 : vector<1x16xf32> to vector<1x16xbf16>
    %c0_97 = arith.constant 0 : index
    %c0_98 = arith.constant 0 : index
    %244 = vector.load %arg14[%c0_97, %c0_98] : memref<16x64xbf16, #tpu.memory_space<vmem>>, vector<16x64xbf16>
    %cst_99 = arith.constant dense<0.000000e+00> : vector<1x64xf32>
    %245 = tpu.matmul %243, %244, %cst_99 {dimension_numbers = #tpu.dot_dimension_numbers<[1], [0], [0], [1], [0, 0, 1, 1], [], []>} : vector<1x16xbf16>, vector<16x64xbf16>, vector<1x64xf32> -> vector<1x64xf32>
    %246 = vector.extract_strided_slice %33 {offsets = [0, 5, 64], sizes = [1, 1, 64], strides = [1, 1, 1]} : vector<1x8x128xf32> to vector<1x1x64xf32>
    %247 = vector.shape_cast %246 : vector<1x1x64xf32> to vector<1x64xf32>
    %248 = arith.addf %245, %247 : vector<1x64xf32>
    %249 = vector.extract_strided_slice %248 {offsets = [0, 0], sizes = [1, 16], strides = [1, 1]} : vector<1x64xf32> to vector<1x16xf32>
    %cst_100 = arith.constant 5.000000e-01 : f32
    %250 = vector.broadcast %cst_100 : f32 to vector<1x16xf32>
    %251 = arith.mulf %250, %249 : vector<1x16xf32>
    %252 = math.tanh %251 : vector<1x16xf32>
    %cst_101 = arith.constant 1.000000e+00 : f32
    %253 = vector.broadcast %cst_101 : f32 to vector<1x16xf32>
    %254 = arith.addf %252, %253 : vector<1x16xf32>
    %cst_102 = arith.constant 5.000000e-01 : f32
    %255 = vector.broadcast %cst_102 : f32 to vector<1x16xf32>
    %256 = arith.mulf %255, %254 : vector<1x16xf32>
    %257 = vector.extract_strided_slice %248 {offsets = [0, 16], sizes = [1, 16], strides = [1, 1]} : vector<1x64xf32> to vector<1x16xf32>
    %cst_103 = arith.constant 5.000000e-01 : f32
    %258 = vector.broadcast %cst_103 : f32 to vector<1x16xf32>
    %259 = arith.mulf %258, %257 : vector<1x16xf32>
    %260 = math.tanh %259 : vector<1x16xf32>
    %cst_104 = arith.constant 1.000000e+00 : f32
    %261 = vector.broadcast %cst_104 : f32 to vector<1x16xf32>
    %262 = arith.addf %260, %261 : vector<1x16xf32>
    %cst_105 = arith.constant 5.000000e-01 : f32
    %263 = vector.broadcast %cst_105 : f32 to vector<1x16xf32>
    %264 = arith.mulf %263, %262 : vector<1x16xf32>
    %265 = vector.extract_strided_slice %248 {offsets = [0, 32], sizes = [1, 16], strides = [1, 1]} : vector<1x64xf32> to vector<1x16xf32>
    %266 = math.tanh %265 : vector<1x16xf32>
    %267 = vector.extract_strided_slice %248 {offsets = [0, 48], sizes = [1, 16], strides = [1, 1]} : vector<1x64xf32> to vector<1x16xf32>
    %cst_106 = arith.constant 5.000000e-01 : f32
    %268 = vector.broadcast %cst_106 : f32 to vector<1x16xf32>
    %269 = arith.mulf %268, %267 : vector<1x16xf32>
    %270 = math.tanh %269 : vector<1x16xf32>
    %cst_107 = arith.constant 1.000000e+00 : f32
    %271 = vector.broadcast %cst_107 : f32 to vector<1x16xf32>
    %272 = arith.addf %270, %271 : vector<1x16xf32>
    %cst_108 = arith.constant 5.000000e-01 : f32
    %273 = vector.broadcast %cst_108 : f32 to vector<1x16xf32>
    %274 = arith.mulf %273, %272 : vector<1x16xf32>
    %275 = arith.mulf %264, %197 : vector<1x16xf32>
    %276 = arith.mulf %256, %266 : vector<1x16xf32>
    %277 = arith.addf %275, %276 : vector<1x16xf32>
    %278 = math.tanh %277 : vector<1x16xf32>
    %279 = arith.mulf %274, %278 : vector<1x16xf32>
    %c0_109 = arith.constant 0 : index
    %c5 = arith.constant 5 : index
    %c16_110 = arith.constant 16 : index
    %280 = vector.load %arg20[%c0_109, %c5, %c16_110] : memref<1x8x32xf32, #tpu.memory_space<vmem>>, vector<1x1x16xf32>
    %281 = vector.shape_cast %280 : vector<1x1x16xf32> to vector<1x16xf32>
    %282 = vector.shape_cast %279 : vector<1x16xf32> to vector<1x1x16xf32>
    tpu.vector_store %arg20[%c0_109, %c5, %c16_110], %282 {strides = array<i32>} : memref<1x8x32xf32, #tpu.memory_space<vmem>>, vector<1x1x16xf32>,
    %283 = arith.truncf %239 : vector<1x16xf32> to vector<1x16xbf16>
    %c0_111 = arith.constant 0 : index
    %c0_112 = arith.constant 0 : index
    %284 = vector.load %arg13[%c0_111, %c0_112] : memref<16x64xbf16, #tpu.memory_space<vmem>>, vector<16x64xbf16>
    %cst_113 = arith.constant dense<0.000000e+00> : vector<1x64xf32>
    %285 = tpu.matmul %283, %284, %cst_113 {dimension_numbers = #tpu.dot_dimension_numbers<[1], [0], [0], [1], [0, 0, 1, 1], [], []>} : vector<1x16xbf16>, vector<16x64xbf16>, vector<1x64xf32> -> vector<1x64xf32>
    %286 = vector.extract_strided_slice %33 {offsets = [0, 3, 0], sizes = [1, 1, 64], strides = [1, 1, 1]} : vector<1x8x128xf32> to vector<1x1x64xf32>
    %287 = vector.shape_cast %286 : vector<1x1x64xf32> to vector<1x64xf32>
    %288 = arith.addf %285, %287 : vector<1x64xf32>
    %289 = vector.extract_strided_slice %288 {offsets = [0, 0], sizes = [1, 16], strides = [1, 1]} : vector<1x64xf32> to vector<1x16xf32>
    %cst_114 = arith.constant 5.000000e-01 : f32
    %290 = vector.broadcast %cst_114 : f32 to vector<1x16xf32>
    %291 = arith.mulf %290, %289 : vector<1x16xf32>
    %292 = math.tanh %291 : vector<1x16xf32>
    %cst_115 = arith.constant 1.000000e+00 : f32
    %293 = vector.broadcast %cst_115 : f32 to vector<1x16xf32>
    %294 = arith.addf %292, %293 : vector<1x16xf32>
    %cst_116 = arith.constant 5.000000e-01 : f32
    %295 = vector.broadcast %cst_116 : f32 to vector<1x16xf32>
    %296 = arith.mulf %295, %294 : vector<1x16xf32>
    %297 = vector.extract_strided_slice %288 {offsets = [0, 16], sizes = [1, 16], strides = [1, 1]} : vector<1x64xf32> to vector<1x16xf32>
    %cst_117 = arith.constant 5.000000e-01 : f32
    %298 = vector.broadcast %cst_117 : f32 to vector<1x16xf32>
    %299 = arith.mulf %298, %297 : vector<1x16xf32>
    %300 = math.tanh %299 : vector<1x16xf32>
    %cst_118 = arith.constant 1.000000e+00 : f32
    %301 = vector.broadcast %cst_118 : f32 to vector<1x16xf32>
    %302 = arith.addf %300, %301 : vector<1x16xf32>
    %cst_119 = arith.constant 5.000000e-01 : f32
    %303 = vector.broadcast %cst_119 : f32 to vector<1x16xf32>
    %304 = arith.mulf %303, %302 : vector<1x16xf32>
    %305 = vector.extract_strided_slice %288 {offsets = [0, 32], sizes = [1, 16], strides = [1, 1]} : vector<1x64xf32> to vector<1x16xf32>
    %306 = math.tanh %305 : vector<1x16xf32>
    %307 = vector.extract_strided_slice %288 {offsets = [0, 48], sizes = [1, 16], strides = [1, 1]} : vector<1x64xf32> to vector<1x16xf32>
    %cst_120 = arith.constant 5.000000e-01 : f32
    %308 = vector.broadcast %cst_120 : f32 to vector<1x16xf32>
    %309 = arith.mulf %308, %307 : vector<1x16xf32>
    %310 = math.tanh %309 : vector<1x16xf32>
    %cst_121 = arith.constant 1.000000e+00 : f32
    %311 = vector.broadcast %cst_121 : f32 to vector<1x16xf32>
    %312 = arith.addf %310, %311 : vector<1x16xf32>
    %cst_122 = arith.constant 5.000000e-01 : f32
    %313 = vector.broadcast %cst_122 : f32 to vector<1x16xf32>
    %314 = arith.mulf %313, %312 : vector<1x16xf32>
    %315 = arith.mulf %304, %237 : vector<1x16xf32>
    %316 = arith.mulf %296, %306 : vector<1x16xf32>
    %317 = arith.addf %315, %316 : vector<1x16xf32>
    %318 = math.tanh %317 : vector<1x16xf32>
    %319 = arith.mulf %314, %318 : vector<1x16xf32>
    %c0_123 = arith.constant 0 : index
    %c3 = arith.constant 3 : index
    %c0_124 = arith.constant 0 : index
    %320 = vector.load %arg20[%c0_123, %c3, %c0_124] : memref<1x8x32xf32, #tpu.memory_space<vmem>>, vector<1x1x16xf32>
    %321 = vector.shape_cast %320 : vector<1x1x16xf32> to vector<1x16xf32>
    %322 = vector.shape_cast %319 : vector<1x16xf32> to vector<1x1x16xf32>
    tpu.vector_store %arg20[%c0_123, %c3, %c0_124], %322 {strides = array<i32>} : memref<1x8x32xf32, #tpu.memory_space<vmem>>, vector<1x1x16xf32>,
    %323 = arith.truncf %279 : vector<1x16xf32> to vector<1x16xbf16>
    %c0_125 = arith.constant 0 : index
    %c0_126 = arith.constant 0 : index
    %324 = vector.load %arg14[%c0_125, %c0_126] : memref<16x64xbf16, #tpu.memory_space<vmem>>, vector<16x64xbf16>
    %cst_127 = arith.constant dense<0.000000e+00> : vector<1x64xf32>
    %325 = tpu.matmul %323, %324, %cst_127 {dimension_numbers = #tpu.dot_dimension_numbers<[1], [0], [0], [1], [0, 0, 1, 1], [], []>} : vector<1x16xbf16>, vector<16x64xbf16>, vector<1x64xf32> -> vector<1x64xf32>
    %326 = vector.extract_strided_slice %33 {offsets = [0, 4, 64], sizes = [1, 1, 64], strides = [1, 1, 1]} : vector<1x8x128xf32> to vector<1x1x64xf32>
    %327 = vector.shape_cast %326 : vector<1x1x64xf32> to vector<1x64xf32>
    %328 = arith.addf %325, %327 : vector<1x64xf32>
    %329 = vector.extract_strided_slice %328 {offsets = [0, 0], sizes = [1, 16], strides = [1, 1]} : vector<1x64xf32> to vector<1x16xf32>
    %cst_128 = arith.constant 5.000000e-01 : f32
    %330 = vector.broadcast %cst_128 : f32 to vector<1x16xf32>
    %331 = arith.mulf %330, %329 : vector<1x16xf32>
    %332 = math.tanh %331 : vector<1x16xf32>
    %cst_129 = arith.constant 1.000000e+00 : f32
    %333 = vector.broadcast %cst_129 : f32 to vector<1x16xf32>
    %334 = arith.addf %332, %333 : vector<1x16xf32>
    %cst_130 = arith.constant 5.000000e-01 : f32
    %335 = vector.broadcast %cst_130 : f32 to vector<1x16xf32>
    %336 = arith.mulf %335, %334 : vector<1x16xf32>
    %337 = vector.extract_strided_slice %328 {offsets = [0, 16], sizes = [1, 16], strides = [1, 1]} : vector<1x64xf32> to vector<1x16xf32>
    %cst_131 = arith.constant 5.000000e-01 : f32
    %338 = vector.broadcast %cst_131 : f32 to vector<1x16xf32>
    %339 = arith.mulf %338, %337 : vector<1x16xf32>
    %340 = math.tanh %339 : vector<1x16xf32>
    %cst_132 = arith.constant 1.000000e+00 : f32
    %341 = vector.broadcast %cst_132 : f32 to vector<1x16xf32>
    %342 = arith.addf %340, %341 : vector<1x16xf32>
    %cst_133 = arith.constant 5.000000e-01 : f32
    %343 = vector.broadcast %cst_133 : f32 to vector<1x16xf32>
    %344 = arith.mulf %343, %342 : vector<1x16xf32>
    %345 = vector.extract_strided_slice %328 {offsets = [0, 32], sizes = [1, 16], strides = [1, 1]} : vector<1x64xf32> to vector<1x16xf32>
    %346 = math.tanh %345 : vector<1x16xf32>
    %347 = vector.extract_strided_slice %328 {offsets = [0, 48], sizes = [1, 16], strides = [1, 1]} : vector<1x64xf32> to vector<1x16xf32>
    %cst_134 = arith.constant 5.000000e-01 : f32
    %348 = vector.broadcast %cst_134 : f32 to vector<1x16xf32>
    %349 = arith.mulf %348, %347 : vector<1x16xf32>
    %350 = math.tanh %349 : vector<1x16xf32>
    %cst_135 = arith.constant 1.000000e+00 : f32
    %351 = vector.broadcast %cst_135 : f32 to vector<1x16xf32>
    %352 = arith.addf %350, %351 : vector<1x16xf32>
    %cst_136 = arith.constant 5.000000e-01 : f32
    %353 = vector.broadcast %cst_136 : f32 to vector<1x16xf32>
    %354 = arith.mulf %353, %352 : vector<1x16xf32>
    %355 = arith.mulf %344, %277 : vector<1x16xf32>
    %356 = arith.mulf %336, %346 : vector<1x16xf32>
    %357 = arith.addf %355, %356 : vector<1x16xf32>
    %358 = math.tanh %357 : vector<1x16xf32>
    %359 = arith.mulf %354, %358 : vector<1x16xf32>
    %c0_137 = arith.constant 0 : index
    %c4 = arith.constant 4 : index
    %c16_138 = arith.constant 16 : index
    %360 = vector.load %arg20[%c0_137, %c4, %c16_138] : memref<1x8x32xf32, #tpu.memory_space<vmem>>, vector<1x1x16xf32>
    %361 = vector.shape_cast %360 : vector<1x1x16xf32> to vector<1x16xf32>
    %362 = vector.shape_cast %359 : vector<1x16xf32> to vector<1x1x16xf32>
    tpu.vector_store %arg20[%c0_137, %c4, %c16_138], %362 {strides = array<i32>} : memref<1x8x32xf32, #tpu.memory_space<vmem>>, vector<1x1x16xf32>,
    %363 = arith.truncf %319 : vector<1x16xf32> to vector<1x16xbf16>
    %c0_139 = arith.constant 0 : index
    %c0_140 = arith.constant 0 : index
    %364 = vector.load %arg13[%c0_139, %c0_140] : memref<16x64xbf16, #tpu.memory_space<vmem>>, vector<16x64xbf16>
    %cst_141 = arith.constant dense<0.000000e+00> : vector<1x64xf32>
    %365 = tpu.matmul %363, %364, %cst_141 {dimension_numbers = #tpu.dot_dimension_numbers<[1], [0], [0], [1], [0, 0, 1, 1], [], []>} : vector<1x16xbf16>, vector<16x64xbf16>, vector<1x64xf32> -> vector<1x64xf32>
    %366 = vector.extract_strided_slice %33 {offsets = [0, 4, 0], sizes = [1, 1, 64], strides = [1, 1, 1]} : vector<1x8x128xf32> to vector<1x1x64xf32>
    %367 = vector.shape_cast %366 : vector<1x1x64xf32> to vector<1x64xf32>
    %368 = arith.addf %365, %367 : vector<1x64xf32>
    %369 = vector.extract_strided_slice %368 {offsets = [0, 0], sizes = [1, 16], strides = [1, 1]} : vector<1x64xf32> to vector<1x16xf32>
    %cst_142 = arith.constant 5.000000e-01 : f32
    %370 = vector.broadcast %cst_142 : f32 to vector<1x16xf32>
    %371 = arith.mulf %370, %369 : vector<1x16xf32>
    %372 = math.tanh %371 : vector<1x16xf32>
    %cst_143 = arith.constant 1.000000e+00 : f32
    %373 = vector.broadcast %cst_143 : f32 to vector<1x16xf32>
    %374 = arith.addf %372, %373 : vector<1x16xf32>
    %cst_144 = arith.constant 5.000000e-01 : f32
    %375 = vector.broadcast %cst_144 : f32 to vector<1x16xf32>
    %376 = arith.mulf %375, %374 : vector<1x16xf32>
    %377 = vector.extract_strided_slice %368 {offsets = [0, 16], sizes = [1, 16], strides = [1, 1]} : vector<1x64xf32> to vector<1x16xf32>
    %cst_145 = arith.constant 5.000000e-01 : f32
    %378 = vector.broadcast %cst_145 : f32 to vector<1x16xf32>
    %379 = arith.mulf %378, %377 : vector<1x16xf32>
    %380 = math.tanh %379 : vector<1x16xf32>
    %cst_146 = arith.constant 1.000000e+00 : f32
    %381 = vector.broadcast %cst_146 : f32 to vector<1x16xf32>
    %382 = arith.addf %380, %381 : vector<1x16xf32>
    %cst_147 = arith.constant 5.000000e-01 : f32
    %383 = vector.broadcast %cst_147 : f32 to vector<1x16xf32>
    %384 = arith.mulf %383, %382 : vector<1x16xf32>
    %385 = vector.extract_strided_slice %368 {offsets = [0, 32], sizes = [1, 16], strides = [1, 1]} : vector<1x64xf32> to vector<1x16xf32>
    %386 = math.tanh %385 : vector<1x16xf32>
    %387 = vector.extract_strided_slice %368 {offsets = [0, 48], sizes = [1, 16], strides = [1, 1]} : vector<1x64xf32> to vector<1x16xf32>
    %cst_148 = arith.constant 5.000000e-01 : f32
    %388 = vector.broadcast %cst_148 : f32 to vector<1x16xf32>
    %389 = arith.mulf %388, %387 : vector<1x16xf32>
    %390 = math.tanh %389 : vector<1x16xf32>
    %cst_149 = arith.constant 1.000000e+00 : f32
    %391 = vector.broadcast %cst_149 : f32 to vector<1x16xf32>
    %392 = arith.addf %390, %391 : vector<1x16xf32>
    %cst_150 = arith.constant 5.000000e-01 : f32
    %393 = vector.broadcast %cst_150 : f32 to vector<1x16xf32>
    %394 = arith.mulf %393, %392 : vector<1x16xf32>
    %395 = arith.mulf %384, %317 : vector<1x16xf32>
    %396 = arith.mulf %376, %386 : vector<1x16xf32>
    %397 = arith.addf %395, %396 : vector<1x16xf32>
    %398 = math.tanh %397 : vector<1x16xf32>
    %399 = arith.mulf %394, %398 : vector<1x16xf32>
    %c0_151 = arith.constant 0 : index
    %c4_152 = arith.constant 4 : index
    %c0_153 = arith.constant 0 : index
    %400 = vector.load %arg20[%c0_151, %c4_152, %c0_153] : memref<1x8x32xf32, #tpu.memory_space<vmem>>, vector<1x1x16xf32>
    %401 = vector.shape_cast %400 : vector<1x1x16xf32> to vector<1x16xf32>
    %402 = vector.shape_cast %399 : vector<1x16xf32> to vector<1x1x16xf32>
    tpu.vector_store %arg20[%c0_151, %c4_152, %c0_153], %402 {strides = array<i32>} : memref<1x8x32xf32, #tpu.memory_space<vmem>>, vector<1x1x16xf32>,
    %403 = arith.truncf %359 : vector<1x16xf32> to vector<1x16xbf16>
    %c0_154 = arith.constant 0 : index
    %c0_155 = arith.constant 0 : index
    %404 = vector.load %arg14[%c0_154, %c0_155] : memref<16x64xbf16, #tpu.memory_space<vmem>>, vector<16x64xbf16>
    %cst_156 = arith.constant dense<0.000000e+00> : vector<1x64xf32>
    %405 = tpu.matmul %403, %404, %cst_156 {dimension_numbers = #tpu.dot_dimension_numbers<[1], [0], [0], [1], [0, 0, 1, 1], [], []>} : vector<1x16xbf16>, vector<16x64xbf16>, vector<1x64xf32> -> vector<1x64xf32>
    %406 = vector.extract_strided_slice %33 {offsets = [0, 3, 64], sizes = [1, 1, 64], strides = [1, 1, 1]} : vector<1x8x128xf32> to vector<1x1x64xf32>
    %407 = vector.shape_cast %406 : vector<1x1x64xf32> to vector<1x64xf32>
    %408 = arith.addf %405, %407 : vector<1x64xf32>
    %409 = vector.extract_strided_slice %408 {offsets = [0, 0], sizes = [1, 16], strides = [1, 1]} : vector<1x64xf32> to vector<1x16xf32>
    %cst_157 = arith.constant 5.000000e-01 : f32
    %410 = vector.broadcast %cst_157 : f32 to vector<1x16xf32>
    %411 = arith.mulf %410, %409 : vector<1x16xf32>
    %412 = math.tanh %411 : vector<1x16xf32>
    %cst_158 = arith.constant 1.000000e+00 : f32
    %413 = vector.broadcast %cst_158 : f32 to vector<1x16xf32>
    %414 = arith.addf %412, %413 : vector<1x16xf32>
    %cst_159 = arith.constant 5.000000e-01 : f32
    %415 = vector.broadcast %cst_159 : f32 to vector<1x16xf32>
    %416 = arith.mulf %415, %414 : vector<1x16xf32>
    %417 = vector.extract_strided_slice %408 {offsets = [0, 16], sizes = [1, 16], strides = [1, 1]} : vector<1x64xf32> to vector<1x16xf32>
    %cst_160 = arith.constant 5.000000e-01 : f32
    %418 = vector.broadcast %cst_160 : f32 to vector<1x16xf32>
    %419 = arith.mulf %418, %417 : vector<1x16xf32>
    %420 = math.tanh %419 : vector<1x16xf32>
    %cst_161 = arith.constant 1.000000e+00 : f32
    %421 = vector.broadcast %cst_161 : f32 to vector<1x16xf32>
    %422 = arith.addf %420, %421 : vector<1x16xf32>
    %cst_162 = arith.constant 5.000000e-01 : f32
    %423 = vector.broadcast %cst_162 : f32 to vector<1x16xf32>
    %424 = arith.mulf %423, %422 : vector<1x16xf32>
    %425 = vector.extract_strided_slice %408 {offsets = [0, 32], sizes = [1, 16], strides = [1, 1]} : vector<1x64xf32> to vector<1x16xf32>
    %426 = math.tanh %425 : vector<1x16xf32>
    %427 = vector.extract_strided_slice %408 {offsets = [0, 48], sizes = [1, 16], strides = [1, 1]} : vector<1x64xf32> to vector<1x16xf32>
    %cst_163 = arith.constant 5.000000e-01 : f32
    %428 = vector.broadcast %cst_163 : f32 to vector<1x16xf32>
    %429 = arith.mulf %428, %427 : vector<1x16xf32>
    %430 = math.tanh %429 : vector<1x16xf32>
    %cst_164 = arith.constant 1.000000e+00 : f32
    %431 = vector.broadcast %cst_164 : f32 to vector<1x16xf32>
    %432 = arith.addf %430, %431 : vector<1x16xf32>
    %cst_165 = arith.constant 5.000000e-01 : f32
    %433 = vector.broadcast %cst_165 : f32 to vector<1x16xf32>
    %434 = arith.mulf %433, %432 : vector<1x16xf32>
    %435 = arith.mulf %424, %357 : vector<1x16xf32>
    %436 = arith.mulf %416, %426 : vector<1x16xf32>
    %437 = arith.addf %435, %436 : vector<1x16xf32>
    %438 = math.tanh %437 : vector<1x16xf32>
    %439 = arith.mulf %434, %438 : vector<1x16xf32>
    %c0_166 = arith.constant 0 : index
    %c3_167 = arith.constant 3 : index
    %c16_168 = arith.constant 16 : index
    %440 = vector.load %arg20[%c0_166, %c3_167, %c16_168] : memref<1x8x32xf32, #tpu.memory_space<vmem>>, vector<1x1x16xf32>
    %441 = vector.shape_cast %440 : vector<1x1x16xf32> to vector<1x16xf32>
    %442 = vector.shape_cast %439 : vector<1x16xf32> to vector<1x1x16xf32>
    tpu.vector_store %arg20[%c0_166, %c3_167, %c16_168], %442 {strides = array<i32>} : memref<1x8x32xf32, #tpu.memory_space<vmem>>, vector<1x1x16xf32>,
    %443 = arith.truncf %399 : vector<1x16xf32> to vector<1x16xbf16>
    %c0_169 = arith.constant 0 : index
    %c0_170 = arith.constant 0 : index
    %444 = vector.load %arg13[%c0_169, %c0_170] : memref<16x64xbf16, #tpu.memory_space<vmem>>, vector<16x64xbf16>
    %cst_171 = arith.constant dense<0.000000e+00> : vector<1x64xf32>
    %445 = tpu.matmul %443, %444, %cst_171 {dimension_numbers = #tpu.dot_dimension_numbers<[1], [0], [0], [1], [0, 0, 1, 1], [], []>} : vector<1x16xbf16>, vector<16x64xbf16>, vector<1x64xf32> -> vector<1x64xf32>
    %446 = vector.extract_strided_slice %33 {offsets = [0, 5, 0], sizes = [1, 1, 64], strides = [1, 1, 1]} : vector<1x8x128xf32> to vector<1x1x64xf32>
    %447 = vector.shape_cast %446 : vector<1x1x64xf32> to vector<1x64xf32>
    %448 = arith.addf %445, %447 : vector<1x64xf32>
    %449 = vector.extract_strided_slice %448 {offsets = [0, 0], sizes = [1, 16], strides = [1, 1]} : vector<1x64xf32> to vector<1x16xf32>
    %cst_172 = arith.constant 5.000000e-01 : f32
    %450 = vector.broadcast %cst_172 : f32 to vector<1x16xf32>
    %451 = arith.mulf %450, %449 : vector<1x16xf32>
    %452 = math.tanh %451 : vector<1x16xf32>
    %cst_173 = arith.constant 1.000000e+00 : f32
    %453 = vector.broadcast %cst_173 : f32 to vector<1x16xf32>
    %454 = arith.addf %452, %453 : vector<1x16xf32>
    %cst_174 = arith.constant 5.000000e-01 : f32
    %455 = vector.broadcast %cst_174 : f32 to vector<1x16xf32>
    %456 = arith.mulf %455, %454 : vector<1x16xf32>
    %457 = vector.extract_strided_slice %448 {offsets = [0, 16], sizes = [1, 16], strides = [1, 1]} : vector<1x64xf32> to vector<1x16xf32>
    %cst_175 = arith.constant 5.000000e-01 : f32
    %458 = vector.broadcast %cst_175 : f32 to vector<1x16xf32>
    %459 = arith.mulf %458, %457 : vector<1x16xf32>
    %460 = math.tanh %459 : vector<1x16xf32>
    %cst_176 = arith.constant 1.000000e+00 : f32
    %461 = vector.broadcast %cst_176 : f32 to vector<1x16xf32>
    %462 = arith.addf %460, %461 : vector<1x16xf32>
    %cst_177 = arith.constant 5.000000e-01 : f32
    %463 = vector.broadcast %cst_177 : f32 to vector<1x16xf32>
    %464 = arith.mulf %463, %462 : vector<1x16xf32>
    %465 = vector.extract_strided_slice %448 {offsets = [0, 32], sizes = [1, 16], strides = [1, 1]} : vector<1x64xf32> to vector<1x16xf32>
    %466 = math.tanh %465 : vector<1x16xf32>
    %467 = vector.extract_strided_slice %448 {offsets = [0, 48], sizes = [1, 16], strides = [1, 1]} : vector<1x64xf32> to vector<1x16xf32>
    %cst_178 = arith.constant 5.000000e-01 : f32
    %468 = vector.broadcast %cst_178 : f32 to vector<1x16xf32>
    %469 = arith.mulf %468, %467 : vector<1x16xf32>
    %470 = math.tanh %469 : vector<1x16xf32>
    %cst_179 = arith.constant 1.000000e+00 : f32
    %471 = vector.broadcast %cst_179 : f32 to vector<1x16xf32>
    %472 = arith.addf %470, %471 : vector<1x16xf32>
    %cst_180 = arith.constant 5.000000e-01 : f32
    %473 = vector.broadcast %cst_180 : f32 to vector<1x16xf32>
    %474 = arith.mulf %473, %472 : vector<1x16xf32>
    %475 = arith.mulf %464, %397 : vector<1x16xf32>
    %476 = arith.mulf %456, %466 : vector<1x16xf32>
    %477 = arith.addf %475, %476 : vector<1x16xf32>
    %478 = math.tanh %477 : vector<1x16xf32>
    %479 = arith.mulf %474, %478 : vector<1x16xf32>
    %c0_181 = arith.constant 0 : index
    %c5_182 = arith.constant 5 : index
    %c0_183 = arith.constant 0 : index
    %480 = vector.load %arg20[%c0_181, %c5_182, %c0_183] : memref<1x8x32xf32, #tpu.memory_space<vmem>>, vector<1x1x16xf32>
    %481 = vector.shape_cast %480 : vector<1x1x16xf32> to vector<1x16xf32>
    %482 = vector.shape_cast %479 : vector<1x16xf32> to vector<1x1x16xf32>
    tpu.vector_store %arg20[%c0_181, %c5_182, %c0_183], %482 {strides = array<i32>} : memref<1x8x32xf32, #tpu.memory_space<vmem>>, vector<1x1x16xf32>,
    %483 = arith.truncf %439 : vector<1x16xf32> to vector<1x16xbf16>
    %c0_184 = arith.constant 0 : index
    %c0_185 = arith.constant 0 : index
    %484 = vector.load %arg14[%c0_184, %c0_185] : memref<16x64xbf16, #tpu.memory_space<vmem>>, vector<16x64xbf16>
    %cst_186 = arith.constant dense<0.000000e+00> : vector<1x64xf32>
    %485 = tpu.matmul %483, %484, %cst_186 {dimension_numbers = #tpu.dot_dimension_numbers<[1], [0], [0], [1], [0, 0, 1, 1], [], []>} : vector<1x16xbf16>, vector<16x64xbf16>, vector<1x64xf32> -> vector<1x64xf32>
    %486 = vector.extract_strided_slice %33 {offsets = [0, 2, 64], sizes = [1, 1, 64], strides = [1, 1, 1]} : vector<1x8x128xf32> to vector<1x1x64xf32>
    %487 = vector.shape_cast %486 : vector<1x1x64xf32> to vector<1x64xf32>
    %488 = arith.addf %485, %487 : vector<1x64xf32>
    %489 = vector.extract_strided_slice %488 {offsets = [0, 0], sizes = [1, 16], strides = [1, 1]} : vector<1x64xf32> to vector<1x16xf32>
    %cst_187 = arith.constant 5.000000e-01 : f32
    %490 = vector.broadcast %cst_187 : f32 to vector<1x16xf32>
    %491 = arith.mulf %490, %489 : vector<1x16xf32>
    %492 = math.tanh %491 : vector<1x16xf32>
    %cst_188 = arith.constant 1.000000e+00 : f32
    %493 = vector.broadcast %cst_188 : f32 to vector<1x16xf32>
    %494 = arith.addf %492, %493 : vector<1x16xf32>
    %cst_189 = arith.constant 5.000000e-01 : f32
    %495 = vector.broadcast %cst_189 : f32 to vector<1x16xf32>
    %496 = arith.mulf %495, %494 : vector<1x16xf32>
    %497 = vector.extract_strided_slice %488 {offsets = [0, 16], sizes = [1, 16], strides = [1, 1]} : vector<1x64xf32> to vector<1x16xf32>
    %cst_190 = arith.constant 5.000000e-01 : f32
    %498 = vector.broadcast %cst_190 : f32 to vector<1x16xf32>
    %499 = arith.mulf %498, %497 : vector<1x16xf32>
    %500 = math.tanh %499 : vector<1x16xf32>
    %cst_191 = arith.constant 1.000000e+00 : f32
    %501 = vector.broadcast %cst_191 : f32 to vector<1x16xf32>
    %502 = arith.addf %500, %501 : vector<1x16xf32>
    %cst_192 = arith.constant 5.000000e-01 : f32
    %503 = vector.broadcast %cst_192 : f32 to vector<1x16xf32>
    %504 = arith.mulf %503, %502 : vector<1x16xf32>
    %505 = vector.extract_strided_slice %488 {offsets = [0, 32], sizes = [1, 16], strides = [1, 1]} : vector<1x64xf32> to vector<1x16xf32>
    %506 = math.tanh %505 : vector<1x16xf32>
    %507 = vector.extract_strided_slice %488 {offsets = [0, 48], sizes = [1, 16], strides = [1, 1]} : vector<1x64xf32> to vector<1x16xf32>
    %cst_193 = arith.constant 5.000000e-01 : f32
    %508 = vector.broadcast %cst_193 : f32 to vector<1x16xf32>
    %509 = arith.mulf %508, %507 : vector<1x16xf32>
    %510 = math.tanh %509 : vector<1x16xf32>
    %cst_194 = arith.constant 1.000000e+00 : f32
    %511 = vector.broadcast %cst_194 : f32 to vector<1x16xf32>
    %512 = arith.addf %510, %511 : vector<1x16xf32>
    %cst_195 = arith.constant 5.000000e-01 : f32
    %513 = vector.broadcast %cst_195 : f32 to vector<1x16xf32>
    %514 = arith.mulf %513, %512 : vector<1x16xf32>
    %515 = arith.mulf %504, %437 : vector<1x16xf32>
    %516 = arith.mulf %496, %506 : vector<1x16xf32>
    %517 = arith.addf %515, %516 : vector<1x16xf32>
    %518 = math.tanh %517 : vector<1x16xf32>
    %519 = arith.mulf %514, %518 : vector<1x16xf32>
    %c0_196 = arith.constant 0 : index
    %c2_197 = arith.constant 2 : index
    %c16_198 = arith.constant 16 : index
    %520 = vector.load %arg20[%c0_196, %c2_197, %c16_198] : memref<1x8x32xf32, #tpu.memory_space<vmem>>, vector<1x1x16xf32>
    %521 = vector.shape_cast %520 : vector<1x1x16xf32> to vector<1x16xf32>
    %522 = vector.shape_cast %519 : vector<1x16xf32> to vector<1x1x16xf32>
    tpu.vector_store %arg20[%c0_196, %c2_197, %c16_198], %522 {strides = array<i32>} : memref<1x8x32xf32, #tpu.memory_space<vmem>>, vector<1x1x16xf32>,
    %523 = arith.truncf %479 : vector<1x16xf32> to vector<1x16xbf16>
    %c0_199 = arith.constant 0 : index
    %c0_200 = arith.constant 0 : index
    %524 = vector.load %arg13[%c0_199, %c0_200] : memref<16x64xbf16, #tpu.memory_space<vmem>>, vector<16x64xbf16>
    %cst_201 = arith.constant dense<0.000000e+00> : vector<1x64xf32>
    %525 = tpu.matmul %523, %524, %cst_201 {dimension_numbers = #tpu.dot_dimension_numbers<[1], [0], [0], [1], [0, 0, 1, 1], [], []>} : vector<1x16xbf16>, vector<16x64xbf16>, vector<1x64xf32> -> vector<1x64xf32>
    %526 = vector.extract_strided_slice %33 {offsets = [0, 6, 0], sizes = [1, 1, 64], strides = [1, 1, 1]} : vector<1x8x128xf32> to vector<1x1x64xf32>
    %527 = vector.shape_cast %526 : vector<1x1x64xf32> to vector<1x64xf32>
    %528 = arith.addf %525, %527 : vector<1x64xf32>
    %529 = vector.extract_strided_slice %528 {offsets = [0, 0], sizes = [1, 16], strides = [1, 1]} : vector<1x64xf32> to vector<1x16xf32>
    %cst_202 = arith.constant 5.000000e-01 : f32
    %530 = vector.broadcast %cst_202 : f32 to vector<1x16xf32>
    %531 = arith.mulf %530, %529 : vector<1x16xf32>
    %532 = math.tanh %531 : vector<1x16xf32>
    %cst_203 = arith.constant 1.000000e+00 : f32
    %533 = vector.broadcast %cst_203 : f32 to vector<1x16xf32>
    %534 = arith.addf %532, %533 : vector<1x16xf32>
    %cst_204 = arith.constant 5.000000e-01 : f32
    %535 = vector.broadcast %cst_204 : f32 to vector<1x16xf32>
    %536 = arith.mulf %535, %534 : vector<1x16xf32>
    %537 = vector.extract_strided_slice %528 {offsets = [0, 16], sizes = [1, 16], strides = [1, 1]} : vector<1x64xf32> to vector<1x16xf32>
    %cst_205 = arith.constant 5.000000e-01 : f32
    %538 = vector.broadcast %cst_205 : f32 to vector<1x16xf32>
    %539 = arith.mulf %538, %537 : vector<1x16xf32>
    %540 = math.tanh %539 : vector<1x16xf32>
    %cst_206 = arith.constant 1.000000e+00 : f32
    %541 = vector.broadcast %cst_206 : f32 to vector<1x16xf32>
    %542 = arith.addf %540, %541 : vector<1x16xf32>
    %cst_207 = arith.constant 5.000000e-01 : f32
    %543 = vector.broadcast %cst_207 : f32 to vector<1x16xf32>
    %544 = arith.mulf %543, %542 : vector<1x16xf32>
    %545 = vector.extract_strided_slice %528 {offsets = [0, 32], sizes = [1, 16], strides = [1, 1]} : vector<1x64xf32> to vector<1x16xf32>
    %546 = math.tanh %545 : vector<1x16xf32>
    %547 = vector.extract_strided_slice %528 {offsets = [0, 48], sizes = [1, 16], strides = [1, 1]} : vector<1x64xf32> to vector<1x16xf32>
    %cst_208 = arith.constant 5.000000e-01 : f32
    %548 = vector.broadcast %cst_208 : f32 to vector<1x16xf32>
    %549 = arith.mulf %548, %547 : vector<1x16xf32>
    %550 = math.tanh %549 : vector<1x16xf32>
    %cst_209 = arith.constant 1.000000e+00 : f32
    %551 = vector.broadcast %cst_209 : f32 to vector<1x16xf32>
    %552 = arith.addf %550, %551 : vector<1x16xf32>
    %cst_210 = arith.constant 5.000000e-01 : f32
    %553 = vector.broadcast %cst_210 : f32 to vector<1x16xf32>
    %554 = arith.mulf %553, %552 : vector<1x16xf32>
    %555 = arith.mulf %544, %477 : vector<1x16xf32>
    %556 = arith.mulf %536, %546 : vector<1x16xf32>
    %557 = arith.addf %555, %556 : vector<1x16xf32>
    %558 = math.tanh %557 : vector<1x16xf32>
    %559 = arith.mulf %554, %558 : vector<1x16xf32>
    %c0_211 = arith.constant 0 : index
    %c6_212 = arith.constant 6 : index
    %c0_213 = arith.constant 0 : index
    %560 = vector.load %arg20[%c0_211, %c6_212, %c0_213] : memref<1x8x32xf32, #tpu.memory_space<vmem>>, vector<1x1x16xf32>
    %561 = vector.shape_cast %560 : vector<1x1x16xf32> to vector<1x16xf32>
    %562 = vector.shape_cast %559 : vector<1x16xf32> to vector<1x1x16xf32>
    tpu.vector_store %arg20[%c0_211, %c6_212, %c0_213], %562 {strides = array<i32>} : memref<1x8x32xf32, #tpu.memory_space<vmem>>, vector<1x1x16xf32>,
    %563 = arith.truncf %519 : vector<1x16xf32> to vector<1x16xbf16>
    %c0_214 = arith.constant 0 : index
    %c0_215 = arith.constant 0 : index
    %564 = vector.load %arg14[%c0_214, %c0_215] : memref<16x64xbf16, #tpu.memory_space<vmem>>, vector<16x64xbf16>
    %cst_216 = arith.constant dense<0.000000e+00> : vector<1x64xf32>
    %565 = tpu.matmul %563, %564, %cst_216 {dimension_numbers = #tpu.dot_dimension_numbers<[1], [0], [0], [1], [0, 0, 1, 1], [], []>} : vector<1x16xbf16>, vector<16x64xbf16>, vector<1x64xf32> -> vector<1x64xf32>
    %566 = vector.extract_strided_slice %33 {offsets = [0, 1, 64], sizes = [1, 1, 64], strides = [1, 1, 1]} : vector<1x8x128xf32> to vector<1x1x64xf32>
    %567 = vector.shape_cast %566 : vector<1x1x64xf32> to vector<1x64xf32>
    %568 = arith.addf %565, %567 : vector<1x64xf32>
    %569 = vector.extract_strided_slice %568 {offsets = [0, 0], sizes = [1, 16], strides = [1, 1]} : vector<1x64xf32> to vector<1x16xf32>
    %cst_217 = arith.constant 5.000000e-01 : f32
    %570 = vector.broadcast %cst_217 : f32 to vector<1x16xf32>
    %571 = arith.mulf %570, %569 : vector<1x16xf32>
    %572 = math.tanh %571 : vector<1x16xf32>
    %cst_218 = arith.constant 1.000000e+00 : f32
    %573 = vector.broadcast %cst_218 : f32 to vector<1x16xf32>
    %574 = arith.addf %572, %573 : vector<1x16xf32>
    %cst_219 = arith.constant 5.000000e-01 : f32
    %575 = vector.broadcast %cst_219 : f32 to vector<1x16xf32>
    %576 = arith.mulf %575, %574 : vector<1x16xf32>
    %577 = vector.extract_strided_slice %568 {offsets = [0, 16], sizes = [1, 16], strides = [1, 1]} : vector<1x64xf32> to vector<1x16xf32>
    %cst_220 = arith.constant 5.000000e-01 : f32
    %578 = vector.broadcast %cst_220 : f32 to vector<1x16xf32>
    %579 = arith.mulf %578, %577 : vector<1x16xf32>
    %580 = math.tanh %579 : vector<1x16xf32>
    %cst_221 = arith.constant 1.000000e+00 : f32
    %581 = vector.broadcast %cst_221 : f32 to vector<1x16xf32>
    %582 = arith.addf %580, %581 : vector<1x16xf32>
    %cst_222 = arith.constant 5.000000e-01 : f32
    %583 = vector.broadcast %cst_222 : f32 to vector<1x16xf32>
    %584 = arith.mulf %583, %582 : vector<1x16xf32>
    %585 = vector.extract_strided_slice %568 {offsets = [0, 32], sizes = [1, 16], strides = [1, 1]} : vector<1x64xf32> to vector<1x16xf32>
    %586 = math.tanh %585 : vector<1x16xf32>
    %587 = vector.extract_strided_slice %568 {offsets = [0, 48], sizes = [1, 16], strides = [1, 1]} : vector<1x64xf32> to vector<1x16xf32>
    %cst_223 = arith.constant 5.000000e-01 : f32
    %588 = vector.broadcast %cst_223 : f32 to vector<1x16xf32>
    %589 = arith.mulf %588, %587 : vector<1x16xf32>
    %590 = math.tanh %589 : vector<1x16xf32>
    %cst_224 = arith.constant 1.000000e+00 : f32
    %591 = vector.broadcast %cst_224 : f32 to vector<1x16xf32>
    %592 = arith.addf %590, %591 : vector<1x16xf32>
    %cst_225 = arith.constant 5.000000e-01 : f32
    %593 = vector.broadcast %cst_225 : f32 to vector<1x16xf32>
    %594 = arith.mulf %593, %592 : vector<1x16xf32>
    %595 = arith.mulf %584, %517 : vector<1x16xf32>
    %596 = arith.mulf %576, %586 : vector<1x16xf32>
    %597 = arith.addf %595, %596 : vector<1x16xf32>
    %598 = math.tanh %597 : vector<1x16xf32>
    %599 = arith.mulf %594, %598 : vector<1x16xf32>
    %c0_226 = arith.constant 0 : index
    %c1_227 = arith.constant 1 : index
    %c16_228 = arith.constant 16 : index
    %600 = vector.load %arg20[%c0_226, %c1_227, %c16_228] : memref<1x8x32xf32, #tpu.memory_space<vmem>>, vector<1x1x16xf32>
    %601 = vector.shape_cast %600 : vector<1x1x16xf32> to vector<1x16xf32>
    %602 = vector.shape_cast %599 : vector<1x16xf32> to vector<1x1x16xf32>
    tpu.vector_store %arg20[%c0_226, %c1_227, %c16_228], %602 {strides = array<i32>} : memref<1x8x32xf32, #tpu.memory_space<vmem>>, vector<1x1x16xf32>,
    %603 = arith.truncf %559 : vector<1x16xf32> to vector<1x16xbf16>
    %c0_229 = arith.constant 0 : index
    %c0_230 = arith.constant 0 : index
    %604 = vector.load %arg13[%c0_229, %c0_230] : memref<16x64xbf16, #tpu.memory_space<vmem>>, vector<16x64xbf16>
    %cst_231 = arith.constant dense<0.000000e+00> : vector<1x64xf32>
    %605 = tpu.matmul %603, %604, %cst_231 {dimension_numbers = #tpu.dot_dimension_numbers<[1], [0], [0], [1], [0, 0, 1, 1], [], []>} : vector<1x16xbf16>, vector<16x64xbf16>, vector<1x64xf32> -> vector<1x64xf32>
    %606 = vector.extract_strided_slice %33 {offsets = [0, 7, 0], sizes = [1, 1, 64], strides = [1, 1, 1]} : vector<1x8x128xf32> to vector<1x1x64xf32>
    %607 = vector.shape_cast %606 : vector<1x1x64xf32> to vector<1x64xf32>
    %608 = arith.addf %605, %607 : vector<1x64xf32>
    %609 = vector.extract_strided_slice %608 {offsets = [0, 0], sizes = [1, 16], strides = [1, 1]} : vector<1x64xf32> to vector<1x16xf32>
    %cst_232 = arith.constant 5.000000e-01 : f32
    %610 = vector.broadcast %cst_232 : f32 to vector<1x16xf32>
    %611 = arith.mulf %610, %609 : vector<1x16xf32>
    %612 = math.tanh %611 : vector<1x16xf32>
    %cst_233 = arith.constant 1.000000e+00 : f32
    %613 = vector.broadcast %cst_233 : f32 to vector<1x16xf32>
    %614 = arith.addf %612, %613 : vector<1x16xf32>
    %cst_234 = arith.constant 5.000000e-01 : f32
    %615 = vector.broadcast %cst_234 : f32 to vector<1x16xf32>
    %616 = arith.mulf %615, %614 : vector<1x16xf32>
    %617 = vector.extract_strided_slice %608 {offsets = [0, 16], sizes = [1, 16], strides = [1, 1]} : vector<1x64xf32> to vector<1x16xf32>
    %cst_235 = arith.constant 5.000000e-01 : f32
    %618 = vector.broadcast %cst_235 : f32 to vector<1x16xf32>
    %619 = arith.mulf %618, %617 : vector<1x16xf32>
    %620 = math.tanh %619 : vector<1x16xf32>
    %cst_236 = arith.constant 1.000000e+00 : f32
    %621 = vector.broadcast %cst_236 : f32 to vector<1x16xf32>
    %622 = arith.addf %620, %621 : vector<1x16xf32>
    %cst_237 = arith.constant 5.000000e-01 : f32
    %623 = vector.broadcast %cst_237 : f32 to vector<1x16xf32>
    %624 = arith.mulf %623, %622 : vector<1x16xf32>
    %625 = vector.extract_strided_slice %608 {offsets = [0, 32], sizes = [1, 16], strides = [1, 1]} : vector<1x64xf32> to vector<1x16xf32>
    %626 = math.tanh %625 : vector<1x16xf32>
    %627 = vector.extract_strided_slice %608 {offsets = [0, 48], sizes = [1, 16], strides = [1, 1]} : vector<1x64xf32> to vector<1x16xf32>
    %cst_238 = arith.constant 5.000000e-01 : f32
    %628 = vector.broadcast %cst_238 : f32 to vector<1x16xf32>
    %629 = arith.mulf %628, %627 : vector<1x16xf32>
    %630 = math.tanh %629 : vector<1x16xf32>
    %cst_239 = arith.constant 1.000000e+00 : f32
    %631 = vector.broadcast %cst_239 : f32 to vector<1x16xf32>
    %632 = arith.addf %630, %631 : vector<1x16xf32>
    %cst_240 = arith.constant 5.000000e-01 : f32
    %633 = vector.broadcast %cst_240 : f32 to vector<1x16xf32>
    %634 = arith.mulf %633, %632 : vector<1x16xf32>
    %635 = arith.mulf %624, %557 : vector<1x16xf32>
    %636 = arith.mulf %616, %626 : vector<1x16xf32>
    %637 = arith.addf %635, %636 : vector<1x16xf32>
    %638 = math.tanh %637 : vector<1x16xf32>
    %639 = arith.mulf %634, %638 : vector<1x16xf32>
    %c0_241 = arith.constant 0 : index
    %c7_242 = arith.constant 7 : index
    %c0_243 = arith.constant 0 : index
    %640 = vector.load %arg20[%c0_241, %c7_242, %c0_243] : memref<1x8x32xf32, #tpu.memory_space<vmem>>, vector<1x1x16xf32>
    %641 = vector.shape_cast %640 : vector<1x1x16xf32> to vector<1x16xf32>
    %642 = vector.shape_cast %639 : vector<1x16xf32> to vector<1x1x16xf32>
    tpu.vector_store %arg20[%c0_241, %c7_242, %c0_243], %642 {strides = array<i32>} : memref<1x8x32xf32, #tpu.memory_space<vmem>>, vector<1x1x16xf32>,
    %643 = arith.truncf %599 : vector<1x16xf32> to vector<1x16xbf16>
    %c0_244 = arith.constant 0 : index
    %c0_245 = arith.constant 0 : index
    %644 = vector.load %arg14[%c0_244, %c0_245] : memref<16x64xbf16, #tpu.memory_space<vmem>>, vector<16x64xbf16>
    %cst_246 = arith.constant dense<0.000000e+00> : vector<1x64xf32>
    %645 = tpu.matmul %643, %644, %cst_246 {dimension_numbers = #tpu.dot_dimension_numbers<[1], [0], [0], [1], [0, 0, 1, 1], [], []>} : vector<1x16xbf16>, vector<16x64xbf16>, vector<1x64xf32> -> vector<1x64xf32>
    %646 = vector.extract_strided_slice %33 {offsets = [0, 0, 64], sizes = [1, 1, 64], strides = [1, 1, 1]} : vector<1x8x128xf32> to vector<1x1x64xf32>
    %647 = vector.shape_cast %646 : vector<1x1x64xf32> to vector<1x64xf32>
    %648 = arith.addf %645, %647 : vector<1x64xf32>
    %649 = vector.extract_strided_slice %648 {offsets = [0, 0], sizes = [1, 16], strides = [1, 1]} : vector<1x64xf32> to vector<1x16xf32>
    %cst_247 = arith.constant 5.000000e-01 : f32
    %650 = vector.broadcast %cst_247 : f32 to vector<1x16xf32>
    %651 = arith.mulf %650, %649 : vector<1x16xf32>
    %652 = math.tanh %651 : vector<1x16xf32>
    %cst_248 = arith.constant 1.000000e+00 : f32
    %653 = vector.broadcast %cst_248 : f32 to vector<1x16xf32>
    %654 = arith.addf %652, %653 : vector<1x16xf32>
    %cst_249 = arith.constant 5.000000e-01 : f32
    %655 = vector.broadcast %cst_249 : f32 to vector<1x16xf32>
    %656 = arith.mulf %655, %654 : vector<1x16xf32>
    %657 = vector.extract_strided_slice %648 {offsets = [0, 16], sizes = [1, 16], strides = [1, 1]} : vector<1x64xf32> to vector<1x16xf32>
    %cst_250 = arith.constant 5.000000e-01 : f32
    %658 = vector.broadcast %cst_250 : f32 to vector<1x16xf32>
    %659 = arith.mulf %658, %657 : vector<1x16xf32>
    %660 = math.tanh %659 : vector<1x16xf32>
    %cst_251 = arith.constant 1.000000e+00 : f32
    %661 = vector.broadcast %cst_251 : f32 to vector<1x16xf32>
    %662 = arith.addf %660, %661 : vector<1x16xf32>
    %cst_252 = arith.constant 5.000000e-01 : f32
    %663 = vector.broadcast %cst_252 : f32 to vector<1x16xf32>
    %664 = arith.mulf %663, %662 : vector<1x16xf32>
    %665 = vector.extract_strided_slice %648 {offsets = [0, 32], sizes = [1, 16], strides = [1, 1]} : vector<1x64xf32> to vector<1x16xf32>
    %666 = math.tanh %665 : vector<1x16xf32>
    %667 = vector.extract_strided_slice %648 {offsets = [0, 48], sizes = [1, 16], strides = [1, 1]} : vector<1x64xf32> to vector<1x16xf32>
    %cst_253 = arith.constant 5.000000e-01 : f32
    %668 = vector.broadcast %cst_253 : f32 to vector<1x16xf32>
    %669 = arith.mulf %668, %667 : vector<1x16xf32>
    %670 = math.tanh %669 : vector<1x16xf32>
    %cst_254 = arith.constant 1.000000e+00 : f32
    %671 = vector.broadcast %cst_254 : f32 to vector<1x16xf32>
    %672 = arith.addf %670, %671 : vector<1x16xf32>
    %cst_255 = arith.constant 5.000000e-01 : f32
    %673 = vector.broadcast %cst_255 : f32 to vector<1x16xf32>
    %674 = arith.mulf %673, %672 : vector<1x16xf32>
    %675 = arith.mulf %664, %597 : vector<1x16xf32>
    %676 = arith.mulf %656, %666 : vector<1x16xf32>
    %677 = arith.addf %675, %676 : vector<1x16xf32>
    %678 = math.tanh %677 : vector<1x16xf32>
    %679 = arith.mulf %674, %678 : vector<1x16xf32>
    %c0_256 = arith.constant 0 : index
    %c0_257 = arith.constant 0 : index
    %c16_258 = arith.constant 16 : index
    %680 = vector.load %arg20[%c0_256, %c0_257, %c16_258] : memref<1x8x32xf32, #tpu.memory_space<vmem>>, vector<1x1x16xf32>
    %681 = vector.shape_cast %680 : vector<1x1x16xf32> to vector<1x16xf32>
    %682 = vector.shape_cast %679 : vector<1x16xf32> to vector<1x1x16xf32>
    tpu.vector_store %arg20[%c0_256, %c0_257, %c16_258], %682 {strides = array<i32>} : memref<1x8x32xf32, #tpu.memory_space<vmem>>, vector<1x1x16xf32>,
    %c0_259 = arith.constant 0 : index
    %c0_260 = arith.constant 0 : index
    %c0_261 = arith.constant 0 : index
    %683 = vector.load %arg20[%c0_259, %c0_260, %c0_261] : memref<1x8x32xf32, #tpu.memory_space<vmem>>, vector<1x8x32xf32>
    %684 = math.tanh %683 : vector<1x8x32xf32>
    %685 = vector.shape_cast %684 : vector<1x8x32xf32> to vector<8x32xf32>
    %686 = arith.truncf %685 : vector<8x32xf32> to vector<8x32xbf16>
    %c0_262 = arith.constant 0 : index
    %c0_263 = arith.constant 0 : index
    %687 = vector.load %arg15[%c0_262, %c0_263] : memref<32x96xbf16, #tpu.memory_space<vmem>>, vector<32x96xbf16>
    %cst_264 = arith.constant dense<0.000000e+00> : vector<8x96xf32>
    %688 = tpu.matmul %686, %687, %cst_264 {dimension_numbers = #tpu.dot_dimension_numbers<[1], [0], [0], [1], [0, 0, 1, 1], [], []>} : vector<8x32xbf16>, vector<32x96xbf16>, vector<8x96xf32> -> vector<8x96xf32>
    %c0_265 = arith.constant 0 : index
    %c0_266 = arith.constant 0 : index
    %689 = vector.load %arg16[%c0_265, %c0_266] : memref<1x96xf32, #tpu.memory_space<vmem>>, vector<1x96xf32>
    %690 = vector.broadcast %689 : vector<1x96xf32> to vector<8x96xf32>
    %691 = arith.addf %688, %690 : vector<8x96xf32>
    %692 = vector.shape_cast %691 : vector<8x96xf32> to vector<1x8x96xf32>
    %693 = vector.extract_strided_slice %692 {offsets = [0, 0, 0], sizes = [1, 8, 8], strides = [1, 1, 1]} : vector<1x8x96xf32> to vector<1x8x8xf32>
    %694 = vector.extract_strided_slice %692 {offsets = [0, 0, 8], sizes = [1, 8, 8], strides = [1, 1, 1]} : vector<1x8x96xf32> to vector<1x8x8xf32>
    %695 = vector.extract_strided_slice %692 {offsets = [0, 0, 16], sizes = [1, 8, 8], strides = [1, 1, 1]} : vector<1x8x96xf32> to vector<1x8x8xf32>
    %696 = vector.extract_strided_slice %692 {offsets = [0, 0, 24], sizes = [1, 8, 8], strides = [1, 1, 1]} : vector<1x8x96xf32> to vector<1x8x8xf32>
    %697 = tpu.concatenate %693, %694, %695, %696 in 0 : vector<1x8x8xf32>, vector<1x8x8xf32>, vector<1x8x8xf32>, vector<1x8x8xf32> -> vector<4x8x8xf32>
    %698 = vector.extract_strided_slice %692 {offsets = [0, 0, 32], sizes = [1, 8, 8], strides = [1, 1, 1]} : vector<1x8x96xf32> to vector<1x8x8xf32>
    %699 = vector.extract_strided_slice %692 {offsets = [0, 0, 40], sizes = [1, 8, 8], strides = [1, 1, 1]} : vector<1x8x96xf32> to vector<1x8x8xf32>
    %700 = vector.extract_strided_slice %692 {offsets = [0, 0, 48], sizes = [1, 8, 8], strides = [1, 1, 1]} : vector<1x8x96xf32> to vector<1x8x8xf32>
    %701 = vector.extract_strided_slice %692 {offsets = [0, 0, 56], sizes = [1, 8, 8], strides = [1, 1, 1]} : vector<1x8x96xf32> to vector<1x8x8xf32>
    %702 = tpu.concatenate %698, %699, %700, %701 in 0 : vector<1x8x8xf32>, vector<1x8x8xf32>, vector<1x8x8xf32>, vector<1x8x8xf32> -> vector<4x8x8xf32>
    %703 = vector.extract_strided_slice %692 {offsets = [0, 0, 64], sizes = [1, 8, 8], strides = [1, 1, 1]} : vector<1x8x96xf32> to vector<1x8x8xf32>
    %704 = vector.extract_strided_slice %692 {offsets = [0, 0, 72], sizes = [1, 8, 8], strides = [1, 1, 1]} : vector<1x8x96xf32> to vector<1x8x8xf32>
    %705 = vector.extract_strided_slice %692 {offsets = [0, 0, 80], sizes = [1, 8, 8], strides = [1, 1, 1]} : vector<1x8x96xf32> to vector<1x8x8xf32>
    %706 = vector.extract_strided_slice %692 {offsets = [0, 0, 88], sizes = [1, 8, 8], strides = [1, 1, 1]} : vector<1x8x96xf32> to vector<1x8x8xf32>
    %707 = tpu.concatenate %703, %704, %705, %706 in 0 : vector<1x8x8xf32>, vector<1x8x8xf32>, vector<1x8x8xf32>, vector<1x8x8xf32> -> vector<4x8x8xf32>
    %c0_267 = arith.constant 0 : index
    %c0_268 = arith.constant 0 : index
    %c0_269 = arith.constant 0 : index
    %708 = vector.load %arg3[%c0_267, %c0_268, %c0_269] : memref<1x1x8xf32, #tpu.memory_space<vmem>>, vector<1x1x8xf32>
    %709 = tpu.concatenate %708, %708, %708, %708 in 0 : vector<1x1x8xf32>, vector<1x1x8xf32>, vector<1x1x8xf32>, vector<1x1x8xf32> -> vector<4x1x8xf32>
    %710 = arith.truncf %697 : vector<4x8x8xf32> to vector<4x8x8xbf16>
    %711 = arith.truncf %702 : vector<4x8x8xf32> to vector<4x8x8xbf16>
    %cst_270 = arith.constant dense<0.000000e+00> : vector<4x8x8xf32>
    %712 = tpu.matmul %710, %711, %cst_270 {dimension_numbers = #tpu.dot_dimension_numbers<[2], [2], [1], [1], [0, 0, 0, 1, 1, 1], [0], [0]>} : vector<4x8x8xbf16>, vector<4x8x8xbf16>, vector<4x8x8xf32> -> vector<4x8x8xf32>
    %cst_271 = arith.constant 0.353553385 : f32
    %713 = vector.broadcast %cst_271 : f32 to vector<4x8x8xf32>
    %714 = arith.mulf %712, %713 : vector<4x8x8xf32>
    %cst_272 = arith.constant 1.000000e+09 : f32
    %715 = vector.broadcast %cst_272 : f32 to vector<4x1x8xf32>
    %716 = arith.mulf %709, %715 : vector<4x1x8xf32>
    %717 = vector.broadcast %716 : vector<4x1x8xf32> to vector<4x8x8xf32>
    %718 = arith.subf %714, %717 : vector<4x8x8xf32>
    %cst_273 = arith.constant dense<0xFF800000> : vector<4x8xf32>
    %719 = vector.multi_reduction <maximumf>, %718, %cst_273 [2] : vector<4x8x8xf32> to vector<4x8xf32>
    %720 = vector.shape_cast %719 : vector<4x8xf32> to vector<4x8x1xf32>
    %721 = vector.broadcast %720 : vector<4x8x1xf32> to vector<4x8x8xf32>
    %722 = arith.subf %718, %721 : vector<4x8x8xf32>
    %723 = math.exp %722 : vector<4x8x8xf32>
    %cst_274 = arith.constant dense<0.000000e+00> : vector<4x8xf32>
    %724 = vector.multi_reduction <add>, %723, %cst_274 [2] : vector<4x8x8xf32> to vector<4x8xf32>
    %725 = vector.shape_cast %724 : vector<4x8xf32> to vector<4x8x1xf32>
    %726 = vector.broadcast %725 : vector<4x8x1xf32> to vector<4x8x8xf32>
    %727 = arith.divf %723, %726 : vector<4x8x8xf32>
    %728 = arith.truncf %727 : vector<4x8x8xf32> to vector<4x8x8xbf16>
    %729 = arith.truncf %707 : vector<4x8x8xf32> to vector<4x8x8xbf16>
    %cst_275 = arith.constant dense<0.000000e+00> : vector<4x8x8xf32>
    %730 = tpu.matmul %728, %729, %cst_275 {dimension_numbers = #tpu.dot_dimension_numbers<[2], [1], [1], [2], [0, 0, 0, 1, 1, 2], [0], [0]>} : vector<4x8x8xbf16>, vector<4x8x8xbf16>, vector<4x8x8xf32> -> vector<4x8x8xf32>
    %731 = arith.truncf %730 : vector<4x8x8xf32> to vector<4x8x8xbf16>
    %c0_276 = arith.constant 0 : index
    %c0_277 = arith.constant 0 : index
    %c0_278 = arith.constant 0 : index
    %732 = vector.load %arg17[%c0_276, %c0_277, %c0_278] : memref<4x8x8xbf16, #tpu.memory_space<vmem>>, vector<4x8x8xbf16>
    %cst_279 = arith.constant dense<0.000000e+00> : vector<4x8x8xf32>
    %733 = tpu.matmul %731, %732, %cst_279 {dimension_numbers = #tpu.dot_dimension_numbers<[2], [1], [1], [2], [0, 0, 0, 1, 1, 2], [0], [0]>} : vector<4x8x8xbf16>, vector<4x8x8xbf16>, vector<4x8x8xf32> -> vector<4x8x8xf32>
    %cst_280 = arith.constant dense<0.000000e+00> : vector<8x8xf32>
    %734 = vector.multi_reduction <add>, %733, %cst_280 [0] : vector<4x8x8xf32> to vector<8x8xf32>
    %c0_281 = arith.constant 0 : index
    %c0_282 = arith.constant 0 : index
    %735 = vector.load %arg18[%c0_281, %c0_282] : memref<1x8xf32, #tpu.memory_space<vmem>>, vector<1x8xf32>
    %736 = vector.broadcast %735 : vector<1x8xf32> to vector<8x8xf32>
    %737 = arith.addf %734, %736 : vector<8x8xf32>
    %cst_283 = arith.constant 0.000000e+00 : f32
    %738 = vector.broadcast %cst_283 : f32 to vector<8x8xf32>
    %739 = arith.maximumf %737, %738 : vector<8x8xf32>
    %c0_284 = arith.constant 0 : index
    %c0_285 = arith.constant 0 : index
    %c0_286 = arith.constant 0 : index
    %740 = vector.load %arg4[%c0_284, %c0_285, %c0_286] : memref<1x8x1xi32, #tpu.memory_space<vmem>>, vector<1x8x1xi32>
    %741 = vector.shape_cast %740 : vector<1x8x1xi32> to vector<8x1xi32>
    %cst_287 = arith.constant dense<0xFF800000> : vector<8xf32>
    %742 = vector.multi_reduction <maximumf>, %739, %cst_287 [1] : vector<8x8xf32> to vector<8xf32>
    %743 = vector.shape_cast %742 : vector<8xf32> to vector<8x1xf32>
    %744 = vector.broadcast %743 : vector<8x1xf32> to vector<8x8xf32>
    %745 = arith.subf %739, %744 : vector<8x8xf32>
    %746 = math.exp %745 : vector<8x8xf32>
    %cst_288 = arith.constant dense<0.000000e+00> : vector<8xf32>
    %747 = vector.multi_reduction <add>, %746, %cst_288 [1] : vector<8x8xf32> to vector<8xf32>
    %748 = vector.shape_cast %747 : vector<8xf32> to vector<8x1xf32>
    %749 = math.log %748 : vector<8x1xf32>
    %750 = arith.addf %743, %749 : vector<8x1xf32>
    %751 = tpu.iota {dimensions = array<i32: 1>} : vector<8x8xi32>
    %752 = vector.broadcast %741 : vector<8x1xi32> to vector<8x8xi32>
    %753 = arith.cmpi eq, %751, %752 : vector<8x8xi32>
    %cst_289 = arith.constant 0.000000e+00 : f32
    %754 = vector.broadcast %cst_289 : f32 to vector<8x8xf32>
    %755 = arith.select %753, %739, %754 : vector<8x8xi1>, vector<8x8xf32>
    %cst_290 = arith.constant dense<0.000000e+00> : vector<8xf32>
    %756 = vector.multi_reduction <add>, %755, %cst_290 [1] : vector<8x8xf32> to vector<8xf32>
    %757 = vector.shape_cast %756 : vector<8xf32> to vector<8x1xf32>
    %758 = arith.subf %750, %757 : vector<8x1xf32>
    %c7_i32 = arith.constant 7 : i32
    %759 = vector.broadcast %c7_i32 : i32 to vector<8x1xi32>
    %760 = arith.cmpi ne, %741, %759 : vector<8x1xi32>
    %761 = arith.extui %760 : vector<8x1xi1> to vector<8x1xi32>
    %762 = arith.sitofp %761 : vector<8x1xi32> to vector<8x1xf32>
    %763 = arith.mulf %758, %762 : vector<8x1xf32>
    %cst_291 = arith.constant dense<0.000000e+00> : vector<1xf32>
    %764 = vector.multi_reduction <add>, %763, %cst_291 [0] : vector<8x1xf32> to vector<1xf32>
    %765 = vector.shape_cast %764 : vector<1xf32> to vector<1x1xf32>
    %cst_292 = arith.constant dense<0.000000e+00> : vector<1xf32>
    %766 = vector.multi_reduction <add>, %762, %cst_292 [0] : vector<8x1xf32> to vector<1xf32>
    %767 = vector.shape_cast %766 : vector<1xf32> to vector<1x1xf32>
    %768 = tpu.concatenate %765, %767 in 1 : vector<1x1xf32>, vector<1x1xf32> -> vector<1x2xf32>
    %769 = vector.shape_cast %768 : vector<1x2xf32> to vector<1x1x2xf32>
    %c0_293 = arith.constant 0 : index
    %c0_294 = arith.constant 0 : index
    %c0_295 = arith.constant 0 : index
    %770 = vector.load %arg19[%c0_293, %c0_294, %c0_295] : memref<1x1x2xf32, #tpu.memory_space<vmem>>, vector<1x1x2xf32>
    tpu.vector_store %arg19[%c0_293, %c0_294, %c0_295], %769 {strides = array<i32>} : memref<1x1x2xf32, #tpu.memory_space<vmem>>, vector<1x1x2xf32>,
    return
  }
  func.func @transform_0(%arg0: i32) -> (i32, i32, i32) {
    %c0_i32 = arith.constant 0 : i32
    %c0_i32_0 = arith.constant 0 : i32
    %c0_i32_1 = arith.constant 0 : i32
    return %arg0, %c0_i32, %c0_i32_0 : i32, i32, i32
  }
  func.func @transform_1(%arg0: i32) -> (i32, i32, i32) {
    %c0_i32 = arith.constant 0 : i32
    %c0_i32_0 = arith.constant 0 : i32
    %c0_i32_1 = arith.constant 0 : i32
    return %arg0, %c0_i32, %c0_i32_0 : i32, i32, i32
  }
  func.func @transform_2(%arg0: i32) -> (i32, i32, i32) {
    %c0_i32 = arith.constant 0 : i32
    %c0_i32_0 = arith.constant 0 : i32
    %c0_i32_1 = arith.constant 0 : i32
    return %arg0, %c0_i32, %c0_i32_0 : i32, i32, i32
  }
  func.func @transform_3(%arg0: i32) -> (i32, i32, i32) {
    %c0_i32 = arith.constant 0 : i32
    %c0_i32_0 = arith.constant 0 : i32
    %c0_i32_1 = arith.constant 0 : i32
    return %arg0, %c0_i32, %c0_i32_0 : i32, i32, i32
  }
  func.func @transform_4(%arg0: i32) -> (i32, i32, i32) {
    %c0_i32 = arith.constant 0 : i32
    %c0_i32_0 = arith.constant 0 : i32
    %c0_i32_1 = arith.constant 0 : i32
    return %arg0, %c0_i32, %c0_i32_0 : i32, i32, i32
  }
  func.func @transform_5(%arg0: i32) -> (i32, i32) {
    %c0_i32 = arith.constant 0 : i32
    %c0_i32_0 = arith.constant 0 : i32
    %c0_i32_1 = arith.constant 0 : i32
    return %c0_i32, %c0_i32_0 : i32, i32
  }
  func.func @transform_6(%arg0: i32) -> (i32, i32) {
    %c0_i32 = arith.constant 0 : i32
    %c0_i32_0 = arith.constant 0 : i32
    %c0_i32_1 = arith.constant 0 : i32
    return %c0_i32, %c0_i32_0 : i32, i32
  }
  func.func @transform_7(%arg0: i32) -> (i32, i32) {
    %c0_i32 = arith.constant 0 : i32
    %c0_i32_0 = arith.constant 0 : i32
    %c0_i32_1 = arith.constant 0 : i32
    return %c0_i32, %c0_i32_0 : i32, i32
  }
  func.func @transform_8(%arg0: i32) -> (i32, i32) {
    %c0_i32 = arith.constant 0 : i32
    %c0_i32_0 = arith.constant 0 : i32
    %c0_i32_1 = arith.constant 0 : i32
    return %c0_i32, %c0_i32_0 : i32, i32
  }
  func.func @transform_9(%arg0: i32) -> (i32, i32) {
    %c0_i32 = arith.constant 0 : i32
    %c0_i32_0 = arith.constant 0 : i32
    %c0_i32_1 = arith.constant 0 : i32
    return %c0_i32, %c0_i32_0 : i32, i32
  }
  func.func @transform_10(%arg0: i32) -> (i32, i32) {
    %c0_i32 = arith.constant 0 : i32
    %c0_i32_0 = arith.constant 0 : i32
    %c0_i32_1 = arith.constant 0 : i32
    return %c0_i32, %c0_i32_0 : i32, i32
  }
  func.func @transform_11(%arg0: i32) -> (i32, i32) {
    %c0_i32 = arith.constant 0 : i32
    %c0_i32_0 = arith.constant 0 : i32
    %c0_i32_1 = arith.constant 0 : i32
    return %c0_i32, %c0_i32_0 : i32, i32
  }
  func.func @transform_12(%arg0: i32) -> (i32, i32) {
    %c0_i32 = arith.constant 0 : i32
    %c0_i32_0 = arith.constant 0 : i32
    %c0_i32_1 = arith.constant 0 : i32
    return %c0_i32, %c0_i32_0 : i32, i32
  }
  func.func @transform_13(%arg0: i32) -> (i32, i32) {
    %c0_i32 = arith.constant 0 : i32
    %c0_i32_0 = arith.constant 0 : i32
    %c0_i32_1 = arith.constant 0 : i32
    return %c0_i32, %c0_i32_0 : i32, i32
  }
  func.func @transform_14(%arg0: i32) -> (i32, i32) {
    %c0_i32 = arith.constant 0 : i32
    %c0_i32_0 = arith.constant 0 : i32
    %c0_i32_1 = arith.constant 0 : i32
    return %c0_i32, %c0_i32_0 : i32, i32
  }
  func.func @transform_15(%arg0: i32) -> (i32, i32) {
    %c0_i32 = arith.constant 0 : i32
    %c0_i32_0 = arith.constant 0 : i32
    %c0_i32_1 = arith.constant 0 : i32
    return %c0_i32, %c0_i32_0 : i32, i32
  }
  func.func @transform_16(%arg0: i32) -> (i32, i32, i32) {
    %c0_i32 = arith.constant 0 : i32
    %c0_i32_0 = arith.constant 0 : i32
    %c0_i32_1 = arith.constant 0 : i32
    %c0_i32_2 = arith.constant 0 : i32
    return %c0_i32, %c0_i32_0, %c0_i32_1 : i32, i32, i32
  }
  func.func @transform_17(%arg0: i32) -> (i32, i32) {
    %c0_i32 = arith.constant 0 : i32
    %c0_i32_0 = arith.constant 0 : i32
    %c0_i32_1 = arith.constant 0 : i32
    return %c0_i32, %c0_i32_0 : i32, i32
  }
  func.func @transform_18(%arg0: i32) -> (i32, i32, i32) {
    %c0_i32 = arith.constant 0 : i32
    %c0_i32_0 = arith.constant 0 : i32
    %c0_i32_1 = arith.constant 0 : i32
    return %arg0, %c0_i32, %c0_i32_0 : i32, i32, i32
  }
}

</mosaic_0001>

<bundles_post_ra>
// kernel: bilstm_atten_crf_forward.1
= control target key start
LH: loop header
LB: loop body
LE: loop exit
PB: predicated region body
PF: predicated region fallthrough
CT: control target
= control target key end

     0   :  { %s4069_s27 = smov 0   ;;  %s4747_s0 = inlined_call_operand.vmem [shape: bf16[2,64,16], index: 0, kind: input, shape index: {}]   ;;  %s4748_s1 = inlined_call_operand.vmem [shape: bf16[2,8,56], index: 1, kind: input, shape index: {}]   ;;  %s4749_s2 = inlined_call_operand.vmem [shape: f32[2,1,8], index: 2, kind: input, shape index: {}]   ;;  %s4750_s3 = inlined_call_operand.vmem [shape: s32[2,8,1], index: 3, kind: input, shape index: {}]   ;;  %s4751_s4 = inlined_call_operand.vmem [shape: f32[2,4,16], index: 4, kind: input, shape index: {}]   ;;  %s4752_s5 = inlined_call_operand.vmem [shape: bf16[16,48], index: 5, kind: input, shape index: {}]   ;;  %s4753_s6 = inlined_call_operand.vmem [shape: f32[1,16], index: 6, kind: input, shape index: {}]   ;;  %s4754_s7 = inlined_call_operand.vmem [shape: bf16[56,32], index: 7, kind: input, shape index: {}]   ;;  %s4755_s8 = inlined_call_operand.vmem [shape: bf16[16,32], index: 8, kind: input, shape index: {}]   ;;  %s4756_s9 = inlined_call_operand.vmem [shape: f32[1,32], index: 9, kind: input, shape index: {}]   ;;  %s4757_s10 = inlined_call_operand.vmem [shape: bf16[32,128], index: 10, kind: input, shape index: {}]   ;;  %s4758_s11 = inlined_call_operand.vmem [shape: f32[1,128], index: 11, kind: input, shape index: {}]   ;;  %s4759_s12 = inlined_call_operand.vmem [shape: bf16[16,64], index: 12, kind: input, shape index: {}]   ;;  %s4760_s13 = inlined_call_operand.vmem [shape: bf16[16,64], index: 13, kind: input, shape index: {}]   ;;  %s4761_s14 = inlined_call_operand.vmem [shape: bf16[32,96], index: 14, kind: input, shape index: {}]   ;;  %s4762_s15 = inlined_call_operand.vmem [shape: f32[1,96], index: 15, kind: input, shape index: {}]   ;;  %s4763_s16 = inlined_call_operand.vmem [shape: bf16[4,8,8], index: 16, kind: input, shape index: {}]   ;;  %s4764_s17 = inlined_call_operand.vmem [shape: f32[1,8], index: 17, kind: input, shape index: {}]   ;;  %s4765_s18 = inlined_call_operand.vmem [shape: f32[2,1,2], index: 18, kind: output, shape index: {}]  }
   0x1   :  { %4766 = sst [smem:[#allocation3_spill]] %s4747_s0 }
   0x2   :  { %4767 = sst [smem:[#allocation4_spill]] %s4748_s1 }
   0x3   :  { %4768 = sst [smem:[#allocation5_spill]] %s4749_s2 }
   0x4 LB: > { %s3414_s28 = sadd.s32 4294967295, %s3960_s27   ;;  %p3418_p0 = scmp.ge.s32.totalorder %s3960_s27, 1  ;;  %s3960_s27 = sphi %s4069_s27, %s28_s27  }
   0x5   : > { %p547_p1 = scmp.lt.s32.totalorder %s3960_s27, 3 }
   0x7   : > { %p548_p2 = pnand %p3418_p0, %p547_p1 }
   0x8   : > { %p614_p3 = scmp.lt.s32.totalorder (!%p548_p2), %s3414_s28, 1  ;;  %s4769_s20 = sld [smem:[#allocation3_spill]] (!%p548_p2) }
   0x9   : > { %551 = sbr.rel (%p548_p2) target bundleno = 7938 (0x1f02), region = 92  ;;  %s3962_s22 = smov (!%p548_p2), 112  }
   0xa   : > { %s3963_s2 = smov (!%p548_p2), 96   ;;  %s4770_s23 = sld [smem:[#allocation4_spill]] (!%p548_p2) }
   0xb   : > { %s3971_s19 = smov (!%p548_p2), 104  }
   0xe   : > { %v3806_v0 = vld [vmem:[%s4752_s5] sm:$0xff]   ;;  %s4773_s28 = smov (!%p614_p3, %s3414_s28), 1  ;;  %vm674_vm0 = vcmask 130048   ;;  %v3811_v26 = vld [vmem:[%s4754_s7 + $0x18] ss:$0 sps:$4 sm:$0xff]   ;;  %vm1050_vm1 = vcmask 1043456  }
   0xf   : > { %3573 = vmatprep.subr.bf16.mxu0 %v3806_v0  ;;  %s3498_s0 = sshll.u32 %s4773_s28, 5  ;;  %v3964_v28 = vmov 0.0   ;;  %v1052_v29 = vsel %vm1050_vm1, %v3811_v26, 0  ;;  %v3812_v31 = vld [vmem:[%s4754_s7 + $0x10] sm:$0xff]   ;;  %v3813_v33 = vld [vmem:[%s4754_s7 + $0x8] sm:$0xff]   ;;  %v3814_v34 = vld [vmem:[%s4754_s7] sm:$0xff]   ;;  %s636_s26 = scalar_lea.vmem %s4765_s18, %s4773_s28 }
  0x10   : > { %3574 = vmatpush3.bf16.msra.mxu0 %v3806_v0  ;;  %s618_s21 = scalar_lea.vmem %s4769_s20, %s3498_s0  ;;  %3583 = vmatprep.subr.bf16.mxu1 %v3964_v28  ;;  %s3421_s1 = sshll.u32 %s4773_s28, 2  ;;  %vm3965_vm2 = vmmov 0   ;;  %vm1046_vm3 = vcmask 457728   ;;  %v3815_v36 = vld [vmem:[%s4755_s8] sm:$0xff]   ;;  %vm840_vm4 = vcmask 128000   ;;  %vm955_vm5 = vcmask 1041409  }
  0x11   : > { %v3807_v1 = vld [vmem:[%s618_s21] sm:$0xff]   ;;  %v3808_v2 = vld [vmem:[%s618_s21 + $0x8] sm:$0xff]   ;;  %v3809_v3 = vld [vmem:[%s618_s21 + $0x10] sm:$0xff]   ;;  %3589 = vmatprep.subr.bf16.mxu0 %v3964_v28  ;;  %s622_s24 = scalar_lea.vmem %s4770_s23, %s3421_s1  ;;  %3585 = vmatprep.mubr.msk.bf16.mxu1 %vm3965_vm2, %v3964_v28  ;;  %vm958_vm6 = vcmask 1042434   ;;  %vm961_vm7 = vcmask 1043459   ;;  %vm964_vm8 = vcmask 1044484   ;;  %s633_s25 = scalar_lea.vmem %s4751_s4, %s3421_s1 }
  0x12   : > { %3575 = vmatprep.mubr.msk.bf16.mxu0 %vm674_vm0, %v3807_v1  ;;  %v3810_v4 = vld [vmem:[%s618_s21 + $0x18] sm:$0xff]   ;;  %v920_v35 = vld [vmem:[%s622_s24] sm:$0xf]  ;;  %3584 = vmatpush3.bf16.msra.mxu1 %v3815_v36  ;;  %vm967_vm9 = vcmask 1045509   ;;  %vm970_vm10 = vcmask 1046534   ;;  %vm973_vm11 = vcmask 1047559  }
  0x13   : > { %3576 = vmatmul.mubr.msk.bf16.vlgmr.msra.gmra.mxu0 %vm674_vm0, %v3808_v2  ;;  %3601 = vmatprep.subr.bf16.mxu1 %v3964_v28  ;;  %vm1126_vm12 = vcmask 261120   ;;  %s3966_s23 = smov 64   ;;  %s3967_s24 = smov 16   ;;  %vm1254_vm13 = vcmask 122880   ;;  %vm1344_vm14 = vcmask 254080   ;;  %vm2615_vm15 = vcmask 64512  }
  0x14   : > { %3579 = vmatprep.mubr.msk.bf16.mxu0 %vm674_vm0, %v3809_v3  ;;  %3590 = vmatpush3.bf16.msra.mxu0 %v1052_v29  ;;  %s3969_s1 = smov 80   ;;  %s3970_s0 = smov 120  }
  0x15   : > { %3591 = vmatprep.subr.bf16.mxu0 %v3964_v28  ;;  %s4771_s20 = sld [smem:[#allocation5_spill]]  ;;  %s3422_s30 = sshll.u32 %s4773_s28, 3 }
  0x18   : > { %3592 = vmatpush3.bf16.msra.mxu0 %v3812_v31 }
  0x19   : > { %3593 = vmatprep.subr.bf16.mxu0 %v3964_v28 }
  0x1b   : > { %3580 = vmatmul.mubr.msk.bf16.gmra.mxu0 %vm674_vm0, %v3810_v4  ;;  %s625_s21 = scalar_lea.vmem %s4771_s20, %s4773_s28 }
  0x1c   : > { %3594 = vmatpush3.bf16.msra.mxu0 %v3813_v33  ;;  %3597 = vmatprep.mubr.msk.bf16.mxu0 %vm3965_vm2, %v3964_v28 }
  0x1d   : > { %3595 = vmatprep.subr.bf16.mxu0 %v3964_v28 }
  0x20   : > { %3596 = vmatpush3.bf16.msra.mxu0 %v3814_v34 }
  0x21   : > { %3615 = vmatprep.subr.bf16.mxu0 %v3964_v28 }
  0x23   : > { %3598 = vmatmul.mubr.msk.bf16.vlgmr.msra.gmra.mxu0 %vm1046_vm3, %v920_v35  ;;  %vm3320_vm3 = vcmask 8192  }
  0x24   : > { %3617 = vmatprep.mubr.msk.bf16.mxu0 %vm3965_vm2, %v3964_v28 }
  0xd3   : > { %v4090_v5 = vpop.f32.mrf.mxu0 }
  0xd4   : > { %v762_v6 = vrot.slane %v4090_v5, 1  ;;  %v802_v10 = vrot.slane %v4090_v5, 2 }
  0xd5   : > { %v4093_v7 = vpop.f32.mrf.mxu0 }
  0xd6   : > { %772 = vrot.lane.b32.xlu0 %v762_v6, %s3962_s22  ;;  %v760_v8 = vrot.slane %v4093_v7, 1  ;;  %v800_v14 = vrot.slane %v4093_v7, 2 }
  0xd7   : > { %v4097_v9 = vpop.f32.mrf.mxu0 }
  0xd8   : > { %768 = vrot.lane.b32.xlu1 %v760_v8, %s3962_s22  ;;  %v763_v12 = vrot.slane %v4097_v9, 1  ;;  %v803_v15 = vrot.slane %v4097_v9, 2 }
  0xd9   : > { %v4101_v11 = vpop.f32.mrf.mxu0 }
  0xda   : > { %812 = vrot.lane.b32.xlu0 %v802_v10, %s3963_s2  ;;  %v761_v17 = vrot.slane %v4101_v11, 1  ;;  %v801_v20 = vrot.slane %v4101_v11, 2 }
  0xdb   : > { %v4105_v13 = vpop.f32.mrf.mxu0 }
  0xdc   : > { %774 = vrot.lane.b32.xlu1 %v763_v12, %s3962_s22  ;;  %v766_v23 = vrot.slane %v4105_v13, 1  ;;  %v806_v30 = vrot.slane %v4105_v13, 2 }
  0xdd   : > { %v4111_v16 = vpop.f32.mrf.mxu0 }
  0xde   : > { %808 = vrot.lane.b32.xlu0 %v800_v14, %s3963_s2  ;;  %v764_v18 = vrot.slane %v4111_v16, 1  ;;  %v804_v21 = vrot.slane %v4111_v16, 2 }
  0xdf   : > { %v4117_v19 = vpop.f32.mrf.mxu0 }
  0xe0   : > { %814 = vrot.lane.b32.xlu1 %v803_v15, %s3963_s2  ;;  %v767_v25 = vrot.slane %v4117_v19, 1  ;;  %v807_v32 = vrot.slane %v4117_v19, 2 }
  0xe1   : > { %v4123_v22 = vpop.f32.mrf.mxu0 }
  0xe2   : > { %770 = vrot.lane.b32.xlu0 %v761_v17, %s3962_s22  ;;  %v765_v24 = vrot.slane %v4123_v22, 1  ;;  %v805_v27 = vrot.slane %v4123_v22, 2 }
  0xe4   : > { %776 = vrot.lane.b32.xlu1 %v764_v18, %s3962_s22 }
  0xe6   : > { %810 = vrot.lane.b32.xlu0 %v801_v20, %s3963_s2 }
  0xe8   : > { %816 = vrot.lane.b32.xlu1 %v804_v21, %s3963_s2 }
  0xea   : > { %780 = vrot.lane.b32.xlu0 %v766_v23, %s3962_s22 }
  0xec   : > { %778 = vrot.lane.b32.xlu1 %v765_v24, %s3962_s22 }
  0xee   : > { %782 = vrot.lane.b32.xlu0 %v767_v25, %s3962_s22 }
  0xf0   : > { %818 = vrot.lane.b32.xlu1 %v805_v27, %s3963_s2 }
  0xf2   : > { %820 = vrot.lane.b32.xlu0 %v806_v30, %s3963_s2 }
  0xf4   : > { %822 = vrot.lane.b32.xlu1 %v807_v32, %s3963_s2 }
 0x148   : > { %v773_v37 = vpop.permute.xlu0 %772 }
 0x149   : > { %v794_v39 = vadd.f32 %v4090_v5, %v773_v37 }
 0x14a   : > { %v769_v38 = vpop.permute.xlu1 %768 }
 0x14b   : > { %v792_v43 = vadd.f32 %v769_v38, %v4093_v7 }
 0x14c   : > { %v813_v40 = vpop.permute.xlu0 %812 }
 0x14d   : > { %v834_v41 = vadd.f32 %v813_v40, %v794_v39 }
 0x14e   : > { %v775_v42 = vpop.permute.xlu1 %774 }
 0x14f   : > { %v855_v44 = vsel %vm840_vm4, %v834_v41, -inf  ;;  %v795_v47 = vadd.f32 %v4097_v9, %v775_v42 }
 0x150   : > { %v856_v45 = vrot.slane %v855_v44, 4  ;;  %v809_v46 = vpop.permute.xlu0 %808 }
 0x151   : > { %v832_v48 = vadd.f32 %v809_v46, %v792_v43 }
 0x152   : > { %v857_v49 = vmax.f32 %v855_v44, %v856_v45  ;;  %v815_v50 = vpop.permute.xlu1 %814 }
 0x153   : > { %v841_v51 = vsel %vm840_vm4, %v832_v48, -inf  ;;  %v835_v52 = vadd.f32 %v815_v50, %v795_v47 }
 0x154   : > { %v858_v53 = vrot.slane %v857_v49, 2  ;;  %v842_v54 = vrot.slane %v841_v51, 4  ;;  %v771_v55 = vpop.permute.xlu0 %770 }
 0x155   : > { %v862_v56 = vsel %vm840_vm4, %v835_v52, -inf  ;;  %v793_v61 = vadd.f32 %v771_v55, %v4101_v11 }
 0x156   : > { %v843_v57 = vmax.f32 %v841_v51, %v842_v54  ;;  %v863_v58 = vrot.slane %v862_v56, 4  ;;  %v777_v59 = vpop.permute.xlu1 %776  ;;  %v859_v60 = vmax.f32 %v857_v49, %v858_v53 }
 0x157   : > { %v796_v1 = vadd.f32 %v777_v59, %v4111_v16  ;;  %v4186_v16 = vld [vmem:[%s4753_s6] ss:$0 sm:$0xff] }
 0x158   : > { %v844_v62 = vrot.slane %v843_v57, 2  ;;  %v864_v63 = vmax.f32 %v862_v56, %v863_v58  ;;  %v811_v0 = vpop.permute.xlu0 %810  ;;  %v860_v6 = vrot.slane %v859_v60, 1 }
 0x159   : > { %v833_v2 = vadd.f32 %v811_v0, %v793_v61 }
 0x15a   : > { %v845_v3 = vmax.f32 %v843_v57, %v844_v62  ;;  %v865_v4 = vrot.slane %v864_v63, 2  ;;  %v817_v5 = vpop.permute.xlu1 %816  ;;  %v861_v20 = vmax.f32 %v859_v60, %v860_v6 }
 0x15b   : > { %v848_v7 = vsel %vm840_vm4, %v833_v2, -inf  ;;  %v836_v8 = vadd.f32 %v817_v5, %v796_v1 }
 0x15c   : > { %v846_v9 = vrot.slane %v845_v3, 1  ;;  %v866_v10 = vmax.f32 %v864_v63, %v865_v4  ;;  %v849_v12 = vrot.slane %v848_v7, 4  ;;  %v781_v14 = vpop.permute.xlu0 %780  ;;  %v906_v32 = vadd.f32 %v4186_v16, %v861_v20 }
 0x15d   : > { %v869_v15 = vsel %vm840_vm4, %v836_v8, -inf  ;;  %v798_v34 = vadd.f32 %v4105_v13, %v781_v14 }
 0x15e   : > { %v867_v11 = vrot.slane %v866_v10, 1  ;;  %v850_v17 = vmax.f32 %v848_v7, %v849_v12  ;;  %v779_v18 = vpop.permute.xlu1 %778  ;;  %v870_v21 = vrot.slane %v869_v15, 4  ;;  %v847_v23 = vmax.f32 %v845_v3, %v846_v9 }
 0x15f   : > { %v797_v27 = vadd.f32 %v779_v18, %v4123_v22  ;;  %v914_v46 = vmax.f32 %v906_v32, 0.0 }
 0x160   : > { %v851_v24 = vrot.slane %v850_v17, 2  ;;  %v783_v25 = vpop.permute.xlu0 %782  ;;  %v871_v26 = vmax.f32 %v869_v15, %v870_v21  ;;  %v868_v29 = vmax.f32 %v866_v10, %v867_v11  ;;  %v904_v36 = vadd.f32 %v4186_v16, %v847_v23 }
 0x161   : > { %v799_v40 = vadd.f32 %v4117_v19, %v783_v25  ;;  %v930_v58 = vpack.c.bf16 %v914_v46, %v914_v46 }
 0x162   : > { %v852_v30 = vmax.f32 %v850_v17, %v851_v24  ;;  %v819_v31 = vpop.permute.xlu1 %818  ;;  %v872_v33 = vrot.slane %v871_v26, 2  ;;  %v907_v22 = vadd.f32 %v4186_v16, %v868_v29  ;;  %v912_v49 = vmax.f32 %v904_v36, 0.0 }
 0x163   : > { %v837_v35 = vadd.f32 %v819_v31, %v797_v27  ;;  %v948_v7 = vunpack.c.l.b16 %v930_v58  ;;  %v3441_v58 = vld [vmem:[%s4756_s9] ss:$0 sm:$0xff] }
 0x164   : > { %v853_v37 = vrot.slane %v852_v30, 1  ;;  %v821_v38 = vpop.permute.xlu0 %820  ;;  %v873_v39 = vmax.f32 %v871_v26, %v872_v33  ;;  %v915_v54 = vmax.f32 %v907_v22, 0.0  ;;  %v928_v61 = vpack.c.bf16 %v912_v49, %v912_v49 }
 0x165   : > { %v876_v41 = vsel %vm840_vm4, %v837_v35, -inf  ;;  %v838_v42 = vadd.f32 %v821_v38, %v798_v34  ;;  %v957_v23 = vrot.slane %v948_v7, 6 }
 0x166   : > { %v854_v43 = vmax.f32 %v852_v30, %v853_v37  ;;  %v877_v44 = vrot.slane %v876_v41, 4  ;;  %v823_v45 = vpop.permute.xlu1 %822  ;;  %v874_v47 = vrot.slane %v873_v39, 1  ;;  %v931_v3 = vpack.c.bf16 %v915_v54, %v915_v54 }
 0x167   : > { %v883_v13 = vsel %vm840_vm4, %v838_v42, -inf  ;;  %v839_v48 = vadd.f32 %v823_v45, %v799_v40  ;;  %v946_v10 = vunpack.c.l.b16 %v928_v61 }
 0x168   : > { %v905_v50 = vadd.f32 %v4186_v16, %v854_v43  ;;  %v878_v51 = vmax.f32 %v876_v41, %v877_v44  ;;  %v884_v52 = vrot.slane %v883_v13, 4  ;;  %v875_v53 = vmax.f32 %v873_v39, %v874_v47 }
 0x169   : > { %v890_v19 = vsel %vm840_vm4, %v839_v48, -inf  ;;  %v949_v17 = vunpack.c.l.b16 %v931_v3  ;;  %v1088_v48 = vpop.f32.mrf.mxu0 }
 0x16a   : > { %v913_v55 = vmax.f32 %v905_v50, 0.0  ;;  %v879_v56 = vrot.slane %v878_v51, 2  ;;  %v885_v57 = vmax.f32 %v883_v13, %v884_v52  ;;  %v908_v59 = vadd.f32 %v4186_v16, %v875_v53  ;;  %v3817_v53 = vld [vmem:[%s4757_s10] sm:$0xff]  }
 0x16b   : > { %v891_v60 = vrot.slane %v890_v19, 4  ;;  %v960_v31 = vrot.slane %v949_v17, 5  ;;  %v3599_v49 = vpop.f32.mrf.mxu0 }
 0x16c   : > { %v929_v62 = vpack.c.bf16 %v913_v55, %v913_v55  ;;  %v880_v63 = vmax.f32 %v878_v51, %v879_v56  ;;  %v886_v0 = vrot.slane %v885_v57, 2  ;;  %v916_v1 = vmax.f32 %v908_v59, 0.0  ;;  %v3816_v51 = vld [vmem:[%s4757_s10 + $0x8] sm:$0xff]   ;;  %v3819_v55 = vld [vmem:[%s4760_s13] sm:$0xff]  }
 0x16d   : > { %v892_v2 = vmax.f32 %v890_v19, %v891_v60  ;;  %v1091_v50 = vpop.f32.mrf.mxu0  ;;  %v1170_v19 = vld [vmem:[%s633_s25] sm:$0xf]  ;;  %3616 = vmatpush3.bf16.msra.mxu0 %v3819_v55  ;;  %s3968_s25 = smov 32  }
 0x16e   : > { %v947_v4 = vunpack.c.l.b16 %v929_v62  ;;  %v881_v5 = vrot.slane %v880_v63, 1  ;;  %v887_v6 = vmax.f32 %v885_v57, %v886_v0  ;;  %v932_v8 = vpack.c.bf16 %v916_v1, %v916_v1  ;;  %3627 = vmatprep.subr.bf16.mxu0 %v3964_v28 }
 0x16f   : > { %v893_v9 = vrot.slane %v892_v2, 2  ;;  %v3600_v52 = vpop.f32.mrf.mxu0  ;;  %v1171_v54 = vpack.c.bf16 %v1170_v19, %v1170_v19 }
 0x170   : > { %v954_v12 = vrot.slane %v947_v4, 7  ;;  %v882_v14 = vmax.f32 %v880_v63, %v881_v5  ;;  %v888_v15 = vrot.slane %v887_v6, 1  ;;  %v950_v24 = vunpack.c.l.b16 %v932_v8  ;;  %v3818_v63 = vld [vmem:[%s4759_s12] sm:$0xff]  }
 0x171   : > { %v894_v11 = vmax.f32 %v892_v2, %v893_v9  ;;  %v1259_v56 = vrot.slane %v1171_v54, 1 }
 0x172   : > { %v956_v18 = vsel %vm955_vm5, %v954_v12, %v946_v10  ;;  %v909_v20 = vadd.f32 %v4186_v16, %v882_v14  ;;  %v889_v21 = vmax.f32 %v887_v6, %v888_v15  ;;  %v963_v34 = vrot.slane %v950_v24, 4  ;;  %v3442_v6 = vld [vmem:[%s4758_s11] ss:$0 sm:$0xff] }
 0x173   : > { %v895_v25 = vrot.slane %v894_v11, 1  ;;  %v959_v30 = vsel %vm958_vm6, %v957_v23, %v956_v18  ;;  %3618 = vmatmul.mubr.msk.bf16.vlgmr.msra.gmra.mxu0 %vm674_vm0, %v1259_v56  ;;  %v1229_v23 = vrot.slane %v1170_v19, 1 }
 0x174   : > { %v917_v26 = vmax.f32 %v909_v20, 0.0  ;;  %v910_v27 = vadd.f32 %v4186_v16, %v889_v21  ;;  %v962_v38 = vsel %vm961_vm7, %v960_v31, %v959_v30  ;;  %3629 = vmatprep.mubr.msk.bf16.mxu0 %vm3965_vm2, %v3964_v28  ;;  %v1319_v31 = vrot.slane %v1170_v19, 3 }
 0x175   : > { %v896_v29 = vmax.f32 %v894_v11, %v895_v25  ;;  %v965_v22 = vsel %vm964_vm8, %v963_v34, %v962_v38 }
 0x176   : > { %v933_v32 = vpack.c.bf16 %v917_v26, %v917_v26  ;;  %v918_v33 = vmax.f32 %v910_v27, 0.0 }
 0x177   : > { %v911_v35 = vadd.f32 %v4186_v16, %v896_v29 }
 0x178   : > { %v951_v36 = vunpack.c.l.b16 %v933_v32  ;;  %v934_v37 = vpack.c.bf16 %v918_v33, %v918_v33 }
 0x179   : > { %v919_v39 = vmax.f32 %v911_v35, 0.0 }
 0x17a   : > { %v966_v40 = vrot.slane %v951_v36, 3  ;;  %v952_v41 = vunpack.c.l.b16 %v934_v37 }
 0x17b   : > { %v935_v42 = vpack.c.bf16 %v919_v39, %v919_v39 }
 0x17c   : > { %v969_v43 = vrot.slane %v952_v41, 2  ;;  %v968_v44 = vsel %vm967_vm9, %v966_v40, %v965_v22 }
 0x17d   : > { %v953_v45 = vunpack.c.l.b16 %v935_v42 }
 0x17e   : > { %v971_v46 = vsel %vm970_vm10, %v969_v43, %v968_v44 }
 0x17f   : > { %v972_v47 = vrot.slane %v953_v45, 1 }
 0x181   : > { %v974_v13 = vsel %vm973_vm11, %v972_v47, %v971_v46 }
 0x182   : > { %v975_v16 = vpack.c.b16 %v974_v13, %v974_v13 }
 0x184   : > { %3586 = vmatmul.mubr.msk.bf16.vlgmr.msra.gmra.mxu1 %vm674_vm0, %v975_v16  ;;  %v3820_v16 = vld [vmem:[%s4759_s12] sm:$0xff]  }
 0x185   : > { %3605 = vmatprep.mubr.msk.bf16.mxu1 %vm3965_vm2, %v3964_v28  ;;  %3602 = vmatpush3.bf16.msra.mxu1 %v3816_v51 }
 0x186   : > { %3603 = vmatprep.subr.bf16.mxu1 %v3964_v28 }
 0x189   : > { %3604 = vmatpush3.bf16.msra.mxu1 %v3817_v53 }
 0x18a   : > { %3609 = vmatprep.subr.bf16.mxu1 %v3964_v28 }
 0x233   : > { %v1308_v2 = vpop.f32.mrf.mxu0 }
 0x235   : > { %v3619_v3 = vpop.f32.mrf.mxu0 }
 0x237   : > { %v1311_v4 = vpop.f32.mrf.mxu0 }
 0x239   : > { %v3620_v5 = vpop.f32.mrf.mxu0 }
 0x244   : > { %v1019_v57 = vpop.f32.mrf.mxu1 }
 0x245   : > { %v1089_v59 = vadd.f32 %v1088_v48, %v1019_v57  ;;  %v3821_v48 = vld [vmem:[%s4760_s13] sm:$0xff]  }
 0x246   : > { %v3587_v60 = vpop.f32.mrf.mxu1  ;;  %3628 = vmatpush3.bf16.msra.mxu0 %v3821_v48 }
 0x247   : > { %v1101_v61 = vadd.f32 %v3441_v58, %v1089_v59  ;;  %3639 = vmatprep.subr.bf16.mxu0 %v3964_v28 }
 0x248   : > { %v1022_v62 = vpop.f32.mrf.mxu1 }
 0x249   : > { %v1102_v0 = vpack.c.bf16 %v1101_v61, %v1101_v61 }
 0x24a   : > { %v3588_v1 = vpop.f32.mrf.mxu1 }
 0x24b   : > { %3606 = vmatmul.mubr.msk.bf16.vlgmr.msra.gmra.mxu1 %vm1126_vm12, %v1102_v0 }
 0x24c   : > { %3610 = vmatpush3.bf16.msra.mxu1 %v3818_v63  ;;  %3611 = vmatprep.mubr.msk.bf16.mxu1 %vm3965_vm2, %v3964_v28 }
 0x24d   : > { %3621 = vmatprep.subr.bf16.mxu1 %v3964_v28 }
 0x253   : > { %3612 = vmatmul.mubr.msk.bf16.vlgmr.msra.gmra.mxu1 %vm674_vm0, %v1171_v54 }
 0x254   : > { %3623 = vmatprep.mubr.msk.bf16.mxu1 %vm3965_vm2, %v3964_v28  ;;  %3622 = vmatpush3.bf16.msra.mxu1 %v3820_v16 }
 0x255   : > { %3633 = vmatprep.subr.bf16.mxu1 %v3964_v28 }
 0x30b   : > { %v1164_v7 = vpop.f32.mrf.mxu1 }
 0x30c   : > { %v4241_v8 = vadd.f32 %v3442_v6, %v1164_v7 }
 0x30d   : > { %v3607_v9 = vpop.f32.mrf.mxu1 }
 0x30e   : > { %v1267_v10 = vrot.slane %v4241_v8, 7  ;;  %v1442_v53 = vrot.slane %v4241_v8, 6  ;;  %v1358_v58 = vrot.slane %v4241_v8, 1 }
 0x30f   : > { %v1167_v12 = vpop.f32.mrf.mxu1 }
 0x310   : > { %1268 = vrot.lane.b32.xlu0 %v1267_v10, %s3966_s23 }
 0x311   : > { %v3608_v14 = vpop.f32.mrf.mxu1 }
 0x313   : > { %v1217_v15 = vpop.f32.mrf.mxu1 }
 0x314   : > { %v1218_v11 = vadd.f32 %v1217_v15, %v4241_v8 }
 0x315   : > { %v3613_v17 = vpop.f32.mrf.mxu1 }
 0x316   : > { %3836 = vtanh.f32 %v1218_v11  ;;  %v1223_v24 = vmul.f32 0.5, %v1218_v11 }
 0x317   : > { %v1220_v18 = vpop.f32.mrf.mxu1 }
 0x318   : > { %3838 = vtanh.f32 %v1223_v24 }
 0x319   : > { %v3614_v20 = vpop.f32.mrf.mxu1 }
 0x323   : > { %v3837_v21 = vpop.eup %3836 }
 0x324   : > { %1235 = vrot.lane.b32.xlu1 %v3837_v21, %s3963_s2 }
 0x325   : > { %v3839_v27 = vpop.eup %3838 }
 0x326   : > { %v1225_v29 = vadd.f32 1.0, %v3839_v27 }
 0x328   : > { %1230 = vrot.lane.b32.xlu1 %v1229_v23, %s3967_s24  ;;  %v1226_v32 = vmul.f32 0.5, %v1225_v29 }
 0x382   : > { %v1269_v25 = vpop.permute.xlu0 %1268 }
 0x383   : > { %v1309_v26 = vadd.f32 %v1308_v2, %v1269_v25 }
 0x385   : > { %3840 = vtanh.f32 %v1309_v26  ;;  %v1314_v35 = vmul.f32 0.5, %v1309_v26 }
 0x387   : > { %3842 = vtanh.f32 %v1314_v35  ;;  %v3823_v35 = vld [vmem:[%s4760_s13] sm:$0xff]  }
 0x392   : > { %v3841_v30 = vpop.eup %3840 }
 0x393   : > { %1325 = vrot.lane.b32.xlu0 %v3841_v30, %s3963_s2 }
 0x394   : > { %v3843_v36 = vpop.eup %3842 }
 0x395   : > { %v1316_v37 = vadd.f32 1.0, %v3843_v36 }
 0x396   : > { %v1236_v33 = vpop.permute.xlu1 %1235 }
 0x397   : > { %v1238_v34 = vmul.f32 %v1236_v33, %v1226_v32  ;;  %1320 = vrot.lane.b32.xlu0 %v1319_v31, %s3967_s24  ;;  %v1317_v38 = vmul.f32 0.5, %v1316_v37 }
 0x399   : > { %1240 = vrot.lane.b32.xlu1 %v1238_v34, %s3967_s24  ;;  %v3822_v34 = vld [vmem:[%s4759_s12] sm:$0xff]  }
 0x39a   : > { %v1231_v41 = vpop.permute.xlu1 %1230 }
 0x39b   : > { %v1233_v42 = vmul.f32 %v1231_v41, %v1226_v32 }
 0x405   : > { %v1326_v39 = vpop.permute.xlu0 %1325 }
 0x406   : > { %v1328_v40 = vmul.f32 %v1326_v39, %v1317_v38 }
 0x408   : > { %1330 = vrot.lane.b32.xlu0 %v1328_v40, %s3967_s24  ;;  %v1612_v40 = vrot.slane %v4241_v8, 5 }
 0x409   : > { %v1321_v45 = vpop.permute.xlu0 %1320 }
 0x40a   : > { %v1323_v46 = vmul.f32 %v1321_v45, %v1317_v38  ;;  %v1528_v45 = vrot.slane %v4241_v8, 2 }
 0x40b   : > { %v1241_v22 = vpop.permute.xlu1 %1240 }
 0x40c   : > { %v4254_v43 = vadd.f32 %v1241_v22, %v1233_v42 }
 0x40e   : > { %3844 = vtanh.f32 %v4254_v43 }
 0x41b   : > { %v3845_v44 = vpop.eup %3844 }
 0x41c   : > { %1246 = vrot.lane.b32.xlu1 %v3845_v44, %s3968_s25 }
 0x47a   : > { %v1331_v47 = vpop.permute.xlu0 %1330 }
 0x47b   : > { %v4258_v13 = vadd.f32 %v1331_v47, %v1323_v46 }
 0x47d   : > { %3846 = vtanh.f32 %v4258_v13 }
 0x48a   : > { %v3847_v49 = vpop.eup %3846 }
 0x48b   : > { %1336 = vrot.lane.b32.xlu0 %v3847_v49, %s3968_s25 }
 0x48e   : > { %v1247_v50 = vpop.permute.xlu1 %1246 }
 0x48f   : > { %v4270_v51 = vmul.f32 %v1247_v50, %v1226_v32 }
 0x491   : > { %v1346_v52 = vpack.c.bf16 %v4270_v51, %v4270_v51 }
 0x493   : > { %1350 = vrot.lane.b32.xlu1 %v1346_v52, %s3969_s1 }
 0x497   : > { %1443 = vrot.lane.b32.xlu1 %v1442_v53, %s3966_s23 }
 0x4fd   : > { %v1337_v19 = vpop.permute.xlu0 %1336 }
 0x4fe   : > { %v4279_v54 = vmul.f32 %v1337_v19, %v1317_v38 }
 0x500   : > { %v1430_v55 = vpack.c.bf16 %v4279_v54, %v4279_v54 }
 0x502   : > { %1434 = vrot.lane.b32.xlu0 %v1430_v55, %s3969_s1 }
 0x505   : > { %v1351_v56 = vpop.permute.xlu1 %1350 }
 0x506   : > { %3624 = vmatmul.mubr.msk.bf16.vlgmr.msra.gmra.mxu1 %vm674_vm0, %v1351_v56 }
 0x507   : > { %3635 = vmatprep.mubr.msk.bf16.mxu1 %vm3965_vm2, %v3964_v28  ;;  %3634 = vmatpush3.bf16.msra.mxu1 %v3822_v34  ;;  %v1698_v34 = vrot.slane %v4241_v8, 3 }
 0x508   : > { %3645 = vmatprep.subr.bf16.mxu1 %v3964_v28 }
 0x509   : > { %v1444_v2 = vpop.permute.xlu1 %1443 }
 0x574   : > { %v1435_v57 = vpop.permute.xlu0 %1434 }
 0x575   : > { %3630 = vmatmul.mubr.msk.bf16.vlgmr.msra.gmra.mxu0 %vm674_vm0, %v1435_v57 }
 0x576   : > { %3641 = vmatprep.mubr.msk.bf16.mxu0 %vm3965_vm2, %v3964_v28  ;;  %3640 = vmatpush3.bf16.msra.mxu0 %v3823_v35 }
 0x577   : > { %3651 = vmatprep.subr.bf16.mxu0 %v3964_v28 }
 0x5c6   : > { %v1397_v59 = vpop.f32.mrf.mxu1 }
 0x5c7   : > { %v1398_v60 = vadd.f32 %v1397_v59, %v1358_v58 }
 0x5c8   : > { %v3625_v61 = vpop.f32.mrf.mxu1 }
 0x5c9   : > { %3848 = vtanh.f32 %v1398_v60  ;;  %v1403_v1 = vmul.f32 0.5, %v1398_v60 }
 0x5ca   : > { %v1400_v62 = vpop.f32.mrf.mxu1 }
 0x5cb   : > { %3850 = vtanh.f32 %v1403_v1 }
 0x5cc   : > { %v3626_v63 = vpop.f32.mrf.mxu1 }
 0x5d6   : > { %v3849_v0 = vpop.eup %3848 }
 0x5d7   : > { %1410 = vrot.lane.b32.xlu0 %v3849_v0, %s3963_s2 }
 0x5d8   : > { %v3851_v9 = vpop.eup %3850 }
 0x5d9   : > { %v1405_v12 = vadd.f32 1.0, %v3851_v9 }
 0x5db   : > { %v1406_v15 = vmul.f32 0.5, %v1405_v12 }
 0x5dd   : > { %v1408_v26 = vmul.f32 %v1406_v15, %v4254_v43 }
 0x635   : > { %v1483_v3 = vpop.f32.mrf.mxu0 }
 0x636   : > { %v1484_v4 = vadd.f32 %v1483_v3, %v1444_v2 }
 0x637   : > { %v3631_v5 = vpop.f32.mrf.mxu0 }
 0x638   : > { %3852 = vtanh.f32 %v1484_v4  ;;  %v1489_v18 = vmul.f32 0.5, %v1484_v4 }
 0x639   : > { %v1486_v6 = vpop.f32.mrf.mxu0 }
 0x63a   : > { %3854 = vtanh.f32 %v1489_v18 }
 0x63b   : > { %v3632_v7 = vpop.f32.mrf.mxu0 }
 0x645   : > { %v3853_v14 = vpop.eup %3852 }
 0x646   : > { %1496 = vrot.lane.b32.xlu1 %v3853_v14, %s3963_s2 }
 0x647   : > { %v3855_v20 = vpop.eup %3854 }
 0x648   : > { %v1491_v21 = vadd.f32 1.0, %v3855_v20  ;;  %v3824_v20 = vld [vmem:[%s4759_s12] sm:$0xff]  }
 0x649   : > { %v1411_v11 = vpop.permute.xlu0 %1410 }
 0x64a   : > { %v1413_v17 = vmul.f32 %v1411_v11, %v1406_v15  ;;  %v1492_v23 = vmul.f32 0.5, %v1491_v21  ;;  %v3825_v21 = vld [vmem:[%s4760_s13] sm:$0xff]  }
 0x64c   : > { %1415 = vrot.lane.b32.xlu0 %v1413_v17, %s3967_s24  ;;  %v1494_v31 = vmul.f32 %v1492_v23, %v4258_v13 }
 0x6b8   : > { %v1497_v24 = vpop.permute.xlu1 %1496 }
 0x6b9   : > { %v1499_v25 = vmul.f32 %v1497_v24, %v1492_v23 }
 0x6bb   : > { %1501 = vrot.lane.b32.xlu1 %v1499_v25, %s3967_s24 }
 0x6be   : > { %v1416_v27 = vpop.permute.xlu0 %1415 }
 0x6bf   : > { %v4298_v29 = vadd.f32 %v1416_v27, %v1408_v26  ;;  %v1782_v27 = vrot.slane %v4241_v8, 4 }
 0x6c1   : > { %3856 = vtanh.f32 %v4298_v29 }
 0x6ce   : > { %v3857_v30 = vpop.eup %3856 }
 0x6cf   : > { %1421 = vrot.lane.b32.xlu0 %v3857_v30, %s3968_s25 }
 0x72d   : > { %v1502_v32 = vpop.permute.xlu1 %1501 }
 0x72e   : > { %v4303_v33 = vadd.f32 %v1502_v32, %v1494_v31 }
 0x730   : > { %3858 = vtanh.f32 %v4303_v33 }
 0x73d   : > { %v3859_v36 = vpop.eup %3858 }
 0x73e   : > { %1507 = vrot.lane.b32.xlu1 %v3859_v36, %s3968_s25 }
 0x741   : > { %v1422_v37 = vpop.permute.xlu0 %1421 }
 0x742   : > { %v4315_v38 = vmul.f32 %v1422_v37, %v1406_v15 }
 0x744   : > { %v1516_v39 = vpack.c.bf16 %v4315_v38, %v4315_v38 }
 0x746   : > { %1520 = vrot.lane.b32.xlu0 %v1516_v39, %s3969_s1 }
 0x74a   : > { %1613 = vrot.lane.b32.xlu0 %v1612_v40, %s3966_s23 }
 0x7b0   : > { %v1508_v41 = vpop.permute.xlu1 %1507 }
 0x7b1   : > { %v4324_v42 = vmul.f32 %v1508_v41, %v1492_v23 }
 0x7b3   : > { %v1600_v22 = vpack.c.bf16 %v4324_v42, %v4324_v42 }
 0x7b5   : > { %1604 = vrot.lane.b32.xlu1 %v1600_v22, %s3969_s1 }
 0x7b8   : > { %v1521_v43 = vpop.permute.xlu0 %1520 }
 0x7b9   : > { %3636 = vmatmul.mubr.msk.bf16.vlgmr.msra.gmra.mxu1 %vm674_vm0, %v1521_v43 }
 0x7ba   : > { %3647 = vmatprep.mubr.msk.bf16.mxu1 %vm3965_vm2, %v3964_v28  ;;  %3646 = vmatpush3.bf16.msra.mxu1 %v3824_v20 }
 0x7bb   : > { %3657 = vmatprep.subr.bf16.mxu1 %v3964_v28 }
 0x7bc   : > { %v1614_v52 = vpop.permute.xlu0 %1613 }
 0x827   : > { %v1605_v44 = vpop.permute.xlu1 %1604 }
 0x828   : > { %3642 = vmatmul.mubr.msk.bf16.vlgmr.msra.gmra.mxu0 %vm674_vm0, %v1605_v44 }
 0x829   : > { %3653 = vmatprep.mubr.msk.bf16.mxu0 %vm3965_vm2, %v3964_v28  ;;  %3652 = vmatpush3.bf16.msra.mxu0 %v3825_v21 }
 0x82a   : > { %3663 = vmatprep.subr.bf16.mxu0 %v3964_v28 }
 0x879   : > { %v1567_v46 = vpop.f32.mrf.mxu1 }
 0x87a   : > { %v1568_v47 = vadd.f32 %v1567_v46, %v1528_v45 }
 0x87b   : > { %v3637_v13 = vpop.f32.mrf.mxu1 }
 0x87c   : > { %3860 = vtanh.f32 %v1568_v47  ;;  %v1573_v50 = vmul.f32 0.5, %v1568_v47 }
 0x87d   : > { %v1570_v16 = vpop.f32.mrf.mxu1 }
 0x87e   : > { %3862 = vtanh.f32 %v1573_v50 }
 0x87f   : > { %v3638_v48 = vpop.f32.mrf.mxu1 }
 0x889   : > { %v3861_v49 = vpop.eup %3860 }
 0x88a   : > { %1580 = vrot.lane.b32.xlu1 %v3861_v49, %s3963_s2 }
 0x88b   : > { %v3863_v60 = vpop.eup %3862 }
 0x88c   : > { %v1575_v61 = vadd.f32 1.0, %v3863_v60 }
 0x88e   : > { %v1576_v63 = vmul.f32 0.5, %v1575_v61 }
 0x890   : > { %v1578_v9 = vmul.f32 %v1576_v63, %v4298_v29 }
 0x8e8   : > { %v1653_v19 = vpop.f32.mrf.mxu0 }
 0x8e9   : > { %v1654_v55 = vadd.f32 %v1653_v19, %v1614_v52 }
 0x8ea   : > { %v3643_v56 = vpop.f32.mrf.mxu0 }
 0x8eb   : > { %3864 = vtanh.f32 %v1654_v55  ;;  %v1659_v2 = vmul.f32 0.5, %v1654_v55 }
 0x8ec   : > { %v1656_v57 = vpop.f32.mrf.mxu0 }
 0x8ed   : > { %3866 = vtanh.f32 %v1659_v2 }
 0x8ee   : > { %v3644_v59 = vpop.f32.mrf.mxu0 }
 0x8f8   : > { %v3865_v62 = vpop.eup %3864 }
 0x8f9   : > { %1666 = vrot.lane.b32.xlu0 %v3865_v62, %s3963_s2 }
 0x8fa   : > { %v3867_v3 = vpop.eup %3866 }
 0x8fb   : > { %v1661_v4 = vadd.f32 1.0, %v3867_v3 }
 0x8fc   : > { %v1581_v0 = vpop.permute.xlu1 %1580 }
 0x8fd   : > { %v1583_v1 = vmul.f32 %v1581_v0, %v1576_v63  ;;  %v1662_v5 = vmul.f32 0.5, %v1661_v4 }
 0x8ff   : > { %1585 = vrot.lane.b32.xlu1 %v1583_v1, %s3967_s24  ;;  %v1664_v11 = vmul.f32 %v1662_v5, %v4303_v33 }
 0x96b   : > { %v1667_v6 = vpop.permute.xlu0 %1666 }
 0x96c   : > { %v1669_v7 = vmul.f32 %v1667_v6, %v1662_v5 }
 0x96e   : > { %1671 = vrot.lane.b32.xlu0 %v1669_v7, %s3967_s24  ;;  %v3826_v7 = vld [vmem:[%s4759_s12] sm:$0xff]  }
 0x971   : > { %v1586_v12 = vpop.permute.xlu1 %1585 }
 0x972   : > { %v4343_v14 = vadd.f32 %v1586_v12, %v1578_v9  ;;  %v3827_v9 = vld [vmem:[%s4760_s13] sm:$0xff]  }
 0x974   : > { %3868 = vtanh.f32 %v4343_v14 }
 0x981   : > { %v3869_v15 = vpop.eup %3868 }
 0x982   : > { %1591 = vrot.lane.b32.xlu1 %v3869_v15, %s3968_s25 }
 0x9e0   : > { %v1672_v17 = vpop.permute.xlu0 %1671 }
 0x9e1   : > { %v4348_v18 = vadd.f32 %v1672_v17, %v1664_v11 }
 0x9e3   : > { %3870 = vtanh.f32 %v4348_v18 }
 0x9f0   : > { %v3871_v23 = vpop.eup %3870 }
 0x9f1   : > { %1677 = vrot.lane.b32.xlu0 %v3871_v23, %s3968_s25 }
 0x9f4   : > { %v1592_v24 = vpop.permute.xlu1 %1591 }
 0x9f5   : > { %v4360_v25 = vmul.f32 %v1592_v24, %v1576_v63 }
 0x9f7   : > { %v1686_v26 = vpack.c.bf16 %v4360_v25, %v4360_v25 }
 0x9f9   : > { %1690 = vrot.lane.b32.xlu1 %v1686_v26, %s3969_s1 }
 0x9fd   : > { %1783 = vrot.lane.b32.xlu1 %v1782_v27, %s3966_s23 }
 0xa63   : > { %v1678_v29 = vpop.permute.xlu0 %1677 }
 0xa64   : > { %v4369_v30 = vmul.f32 %v1678_v29, %v1662_v5 }
 0xa66   : > { %v1770_v31 = vpack.c.bf16 %v4369_v30, %v4369_v30 }
 0xa68   : > { %1774 = vrot.lane.b32.xlu0 %v1770_v31, %s3969_s1 }
 0xa6b   : > { %v1691_v32 = vpop.permute.xlu1 %1690 }
 0xa6c   : > { %3648 = vmatmul.mubr.msk.bf16.vlgmr.msra.gmra.mxu1 %vm674_vm0, %v1691_v32 }
 0xa6d   : > { %3659 = vmatprep.mubr.msk.bf16.mxu1 %vm3965_vm2, %v3964_v28  ;;  %3658 = vmatpush3.bf16.msra.mxu1 %v3826_v7 }
 0xa6e   : > { %3669 = vmatprep.subr.bf16.mxu1 %v3964_v28 }
 0xa6f   : > { %v1784_v44 = vpop.permute.xlu1 %1783 }
 0xada   : > { %v1775_v33 = vpop.permute.xlu0 %1774 }
 0xadb   : > { %3654 = vmatmul.mubr.msk.bf16.vlgmr.msra.gmra.mxu0 %vm674_vm0, %v1775_v33 }
 0xadc   : > { %3665 = vmatprep.mubr.msk.bf16.mxu0 %vm3965_vm2, %v3964_v28  ;;  %3664 = vmatpush3.bf16.msra.mxu0 %v3827_v9 }
 0xadd   : > { %3675 = vmatprep.subr.bf16.mxu0 %v3964_v28 }
 0xb2c   : > { %v1737_v35 = vpop.f32.mrf.mxu1 }
 0xb2d   : > { %v1738_v36 = vadd.f32 %v1737_v35, %v1698_v34 }
 0xb2e   : > { %v3649_v37 = vpop.f32.mrf.mxu1 }
 0xb2f   : > { %3872 = vtanh.f32 %v1738_v36  ;;  %v1743_v43 = vmul.f32 0.5, %v1738_v36 }
 0xb30   : > { %v1740_v39 = vpop.f32.mrf.mxu1 }
 0xb31   : > { %3874 = vtanh.f32 %v1743_v43 }
 0xb32   : > { %v3650_v41 = vpop.f32.mrf.mxu1 }
 0xb3c   : > { %v3873_v22 = vpop.eup %3872 }
 0xb3d   : > { %1750 = vrot.lane.b32.xlu0 %v3873_v22, %s3963_s2 }
 0xb3e   : > { %v3875_v49 = vpop.eup %3874 }
 0xb3f   : > { %v1745_v50 = vadd.f32 1.0, %v3875_v49 }
 0xb41   : > { %v1746_v19 = vmul.f32 0.5, %v1745_v50 }
 0xb43   : > { %v1748_v0 = vmul.f32 %v1746_v19, %v4343_v14 }
 0xb9b   : > { %v1823_v46 = vpop.f32.mrf.mxu0 }
 0xb9c   : > { %v1824_v47 = vadd.f32 %v1823_v46, %v1784_v44 }
 0xb9d   : > { %v3655_v13 = vpop.f32.mrf.mxu0 }
 0xb9e   : > { %3876 = vtanh.f32 %v1824_v47  ;;  %v1829_v57 = vmul.f32 0.5, %v1824_v47 }
 0xb9f   : > { %v1826_v16 = vpop.f32.mrf.mxu0 }
 0xba0   : > { %3878 = vtanh.f32 %v1829_v57 }
 0xba1   : > { %v3656_v48 = vpop.f32.mrf.mxu0 }
 0xbab   : > { %v3877_v52 = vpop.eup %3876 }
 0xbac   : > { %1836 = vrot.lane.b32.xlu1 %v3877_v52, %s3963_s2 }
 0xbad   : > { %v3879_v59 = vpop.eup %3878 }
 0xbae   : > { %v1831_v60 = vadd.f32 1.0, %v3879_v59 }
 0xbaf   : > { %v1751_v55 = vpop.permute.xlu0 %1750 }
 0xbb0   : > { %v1753_v56 = vmul.f32 %v1751_v55, %v1746_v19  ;;  %v1832_v61 = vmul.f32 0.5, %v1831_v60 }
 0xbb2   : > { %1755 = vrot.lane.b32.xlu0 %v1753_v56, %s3967_s24  ;;  %v1834_v4 = vmul.f32 %v1832_v61, %v4348_v18 }
 0xc1e   : > { %v1837_v62 = vpop.permute.xlu1 %1836 }
 0xc1f   : > { %v1839_v63 = vmul.f32 %v1837_v62, %v1832_v61 }
 0xc21   : > { %1841 = vrot.lane.b32.xlu1 %v1839_v63, %s3967_s24  ;;  %v3828_v63 = vld [vmem:[%s4759_s12] sm:$0xff]  }
 0xc24   : > { %v1756_v1 = vpop.permute.xlu0 %1755 }
 0xc25   : > { %v4386_v2 = vadd.f32 %v1756_v1, %v1748_v0  ;;  %v3829_v0 = vld [vmem:[%s4760_s13] sm:$0xff]  }
 0xc27   : > { %3880 = vtanh.f32 %v4386_v2 }
 0xc34   : > { %v3881_v3 = vpop.eup %3880 }
 0xc35   : > { %1761 = vrot.lane.b32.xlu0 %v3881_v3, %s3968_s25 }
 0xc93   : > { %v1842_v5 = vpop.permute.xlu1 %1841 }
 0xc94   : > { %v4391_v6 = vadd.f32 %v1842_v5, %v1834_v4 }
 0xc96   : > { %3882 = vtanh.f32 %v4391_v6 }
 0xca3   : > { %v3883_v12 = vpop.eup %3882 }
 0xca4   : > { %1847 = vrot.lane.b32.xlu1 %v3883_v12, %s3968_s25 }
 0xca7   : > { %v1762_v14 = vpop.permute.xlu0 %1761 }
 0xca8   : > { %v4403_v15 = vmul.f32 %v1762_v14, %v1746_v19 }
 0xcaa   : > { %v1856_v11 = vpack.c.bf16 %v4403_v15, %v4403_v15 }
 0xcac   : > { %1860 = vrot.lane.b32.xlu0 %v1856_v11, %s3969_s1 }
 0xcb0   : > { %1951 = vrot.lane.b32.xlu0 %v1698_v34, %s3966_s23 }
 0xd16   : > { %v1848_v17 = vpop.permute.xlu1 %1847 }
 0xd17   : > { %v4409_v18 = vmul.f32 %v1848_v17, %v1832_v61 }
 0xd19   : > { %v1939_v20 = vpack.c.bf16 %v4409_v18, %v4409_v18 }
 0xd1b   : > { %1943 = vrot.lane.b32.xlu1 %v1939_v20, %s3969_s1 }
 0xd1e   : > { %v1861_v21 = vpop.permute.xlu0 %1860 }
 0xd1f   : > { %3660 = vmatmul.mubr.msk.bf16.vlgmr.msra.gmra.mxu1 %vm674_vm0, %v1861_v21 }
 0xd20   : > { %3671 = vmatprep.mubr.msk.bf16.mxu1 %vm3965_vm2, %v3964_v28  ;;  %3670 = vmatpush3.bf16.msra.mxu1 %v3828_v63 }
 0xd21   : > { %3681 = vmatprep.subr.bf16.mxu1 %v3964_v28 }
 0xd22   : > { %v1952_v35 = vpop.permute.xlu0 %1951 }
 0xd8d   : > { %v1944_v23 = vpop.permute.xlu1 %1943 }
 0xd8e   : > { %3666 = vmatmul.mubr.msk.bf16.vlgmr.msra.gmra.mxu0 %vm674_vm0, %v1944_v23 }
 0xd8f   : > { %3677 = vmatprep.mubr.msk.bf16.mxu0 %vm3965_vm2, %v3964_v28  ;;  %3676 = vmatpush3.bf16.msra.mxu0 %v3829_v0 }
 0xd90   : > { %3687 = vmatprep.subr.bf16.mxu0 %v3964_v28 }
 0xddf   : > { %v1906_v24 = vpop.f32.mrf.mxu1 }
 0xde0   : > { %v1907_v26 = vadd.f32 %v1906_v24, %v1782_v27 }
 0xde1   : > { %v3661_v29 = vpop.f32.mrf.mxu1 }
 0xde2   : > { %3884 = vtanh.f32 %v1907_v26  ;;  %v1912_v34 = vmul.f32 0.5, %v1907_v26 }
 0xde3   : > { %v1909_v31 = vpop.f32.mrf.mxu1 }
 0xde4   : > { %3886 = vtanh.f32 %v1912_v34 }
 0xde5   : > { %v3662_v32 = vpop.f32.mrf.mxu1 }
 0xdef   : > { %v3885_v33 = vpop.eup %3884 }
 0xdf0   : > { %1919 = vrot.lane.b32.xlu1 %v3885_v33, %s3963_s2 }
 0xdf1   : > { %v3887_v43 = vpop.eup %3886 }
 0xdf2   : > { %v1914_v44 = vadd.f32 1.0, %v3887_v43 }
 0xdf4   : > { %v1915_v27 = vmul.f32 0.5, %v1914_v44 }
 0xdf6   : > { %v1917_v55 = vmul.f32 %v1915_v27, %v4386_v2 }
 0xe4e   : > { %v1991_v36 = vpop.f32.mrf.mxu0 }
 0xe4f   : > { %v1992_v37 = vadd.f32 %v1991_v36, %v1952_v35 }
 0xe50   : > { %v3667_v39 = vpop.f32.mrf.mxu0 }
 0xe51   : > { %3888 = vtanh.f32 %v1992_v37  ;;  %v1997_v16 = vmul.f32 0.5, %v1992_v37 }
 0xe52   : > { %v1994_v41 = vpop.f32.mrf.mxu0 }
 0xe53   : > { %3890 = vtanh.f32 %v1997_v16 }
 0xe54   : > { %v3668_v22 = vpop.f32.mrf.mxu0 }
 0xe5e   : > { %v3889_v46 = vpop.eup %3888 }
 0xe5f   : > { %2004 = vrot.lane.b32.xlu0 %v3889_v46, %s3963_s2 }
 0xe60   : > { %v3891_v48 = vpop.eup %3890 }
 0xe61   : > { %v1999_v49 = vadd.f32 1.0, %v3891_v48 }
 0xe62   : > { %v1920_v47 = vpop.permute.xlu1 %1919 }
 0xe63   : > { %v1922_v13 = vmul.f32 %v1920_v47, %v1915_v27  ;;  %v2000_v50 = vmul.f32 0.5, %v1999_v49 }
 0xe65   : > { %1924 = vrot.lane.b32.xlu1 %v1922_v13, %s3967_s24  ;;  %v2002_v60 = vmul.f32 %v2000_v50, %v4391_v6 }
 0xed1   : > { %v2005_v52 = vpop.permute.xlu0 %2004 }
 0xed2   : > { %v2007_v19 = vmul.f32 %v2005_v52, %v2000_v50 }
 0xed4   : > { %2009 = vrot.lane.b32.xlu0 %v2007_v19, %s3967_s24  ;;  %v3830_v19 = vld [vmem:[%s4759_s12] sm:$0xff]  }
 0xed7   : > { %v1925_v56 = vpop.permute.xlu1 %1924 }
 0xed8   : > { %v4427_v57 = vadd.f32 %v1925_v56, %v1917_v55  ;;  %v3831_v55 = vld [vmem:[%s4760_s13] sm:$0xff]  }
 0xeda   : > { %3892 = vtanh.f32 %v4427_v57 }
 0xee7   : > { %v3893_v59 = vpop.eup %3892 }
 0xee8   : > { %1930 = vrot.lane.b32.xlu1 %v3893_v59, %s3968_s25 }
 0xf46   : > { %v2010_v61 = vpop.permute.xlu0 %2009 }
 0xf47   : > { %v4432_v62 = vadd.f32 %v2010_v61, %v2002_v60 }
 0xf49   : > { %3894 = vtanh.f32 %v4432_v62 }
 0xf56   : > { %v3895_v1 = vpop.eup %3894 }
 0xf57   : > { %2015 = vrot.lane.b32.xlu0 %v3895_v1, %s3968_s25 }
 0xf5a   : > { %v1931_v2 = vpop.permute.xlu1 %1930 }
 0xf5b   : > { %v4444_v3 = vmul.f32 %v1931_v2, %v1915_v27 }
 0xf5d   : > { %v2024_v4 = vpack.c.bf16 %v4444_v3, %v4444_v3 }
 0xf5f   : > { %2028 = vrot.lane.b32.xlu1 %v2024_v4, %s3969_s1 }
 0xf63   : > { %2119 = vrot.lane.b32.xlu1 %v1528_v45, %s3966_s23 }
 0xfc9   : > { %v2016_v5 = vpop.permute.xlu0 %2015 }
 0xfca   : > { %v4452_v6 = vmul.f32 %v2016_v5, %v2000_v50 }
 0xfcc   : > { %v2107_v7 = vpack.c.bf16 %v4452_v6, %v4452_v6 }
 0xfce   : > { %2111 = vrot.lane.b32.xlu0 %v2107_v7, %s3969_s1 }
 0xfd1   : > { %v2029_v9 = vpop.permute.xlu1 %2028 }
 0xfd2   : > { %3672 = vmatmul.mubr.msk.bf16.vlgmr.msra.gmra.mxu1 %vm674_vm0, %v2029_v9 }
 0xfd3   : > { %3683 = vmatprep.mubr.msk.bf16.mxu1 %vm3965_vm2, %v3964_v28  ;;  %3682 = vmatpush3.bf16.msra.mxu1 %v3830_v19 }
 0xfd4   : > { %3693 = vmatprep.subr.bf16.mxu1 %v3964_v28 }
 0xfd5   : > { %v2120_v24 = vpop.permute.xlu1 %2119 }
0x1040   : > { %v2112_v12 = vpop.permute.xlu0 %2111 }
0x1041   : > { %3678 = vmatmul.mubr.msk.bf16.vlgmr.msra.gmra.mxu0 %vm674_vm0, %v2112_v12 }
0x1042   : > { %3689 = vmatprep.mubr.msk.bf16.mxu0 %vm3965_vm2, %v3964_v28  ;;  %3688 = vmatpush3.bf16.msra.mxu0 %v3831_v55 }
0x1043   : > { %3699 = vmatprep.subr.bf16.mxu0 %v3964_v28 }
0x1092   : > { %v2074_v45 = vpop.f32.mrf.mxu1 }
0x1093   : > { %v2075_v14 = vadd.f32 %v2074_v45, %v1612_v40 }
0x1094   : > { %v3673_v11 = vpop.f32.mrf.mxu1 }
0x1095   : > { %3896 = vtanh.f32 %v2075_v14  ;;  %v2080_v23 = vmul.f32 0.5, %v2075_v14 }
0x1096   : > { %v2077_v17 = vpop.f32.mrf.mxu1 }
0x1097   : > { %3898 = vtanh.f32 %v2080_v23 }
0x1098   : > { %v3674_v20 = vpop.f32.mrf.mxu1 }
0x10a2   : > { %v3897_v21 = vpop.eup %3896 }
0x10a3   : > { %2087 = vrot.lane.b32.xlu0 %v3897_v21, %s3963_s2 }
0x10a4   : > { %v3899_v34 = vpop.eup %3898 }
0x10a5   : > { %v2082_v35 = vadd.f32 1.0, %v3899_v34 }
0x10a7   : > { %v2083_v40 = vmul.f32 0.5, %v2082_v35 }
0x10a9   : > { %v2085_v47 = vmul.f32 %v2083_v40, %v4427_v57 }
0x1101   : > { %v2159_v26 = vpop.f32.mrf.mxu0 }
0x1102   : > { %v2160_v29 = vadd.f32 %v2159_v26, %v2120_v24 }
0x1103   : > { %v3679_v31 = vpop.f32.mrf.mxu0 }
0x1104   : > { %3900 = vtanh.f32 %v2160_v29  ;;  %v2165_v41 = vmul.f32 0.5, %v2160_v29 }
0x1105   : > { %v2162_v32 = vpop.f32.mrf.mxu0 }
0x1106   : > { %3902 = vtanh.f32 %v2165_v41 }
0x1107   : > { %v3680_v33 = vpop.f32.mrf.mxu0 }
0x1111   : > { %v3901_v36 = vpop.eup %3900 }
0x1112   : > { %2172 = vrot.lane.b32.xlu1 %v3901_v36, %s3963_s2 }
0x1113   : > { %v3903_v22 = vpop.eup %3902 }
0x1114   : > { %v2167_v43 = vadd.f32 1.0, %v3903_v22 }
0x1115   : > { %v2088_v37 = vpop.permute.xlu0 %2087 }
0x1116   : > { %v2090_v39 = vmul.f32 %v2088_v37, %v2083_v40  ;;  %v2168_v44 = vmul.f32 0.5, %v2167_v43 }
0x1118   : > { %2092 = vrot.lane.b32.xlu0 %v2090_v39, %s3967_s24  ;;  %v2170_v49 = vmul.f32 %v2168_v44, %v4432_v62 }
0x1184   : > { %v2173_v46 = vpop.permute.xlu1 %2172 }
0x1185   : > { %v2175_v27 = vmul.f32 %v2173_v46, %v2168_v44 }
0x1187   : > { %2177 = vrot.lane.b32.xlu1 %v2175_v27, %s3967_s24  ;;  %v3832_v27 = vld [vmem:[%s4759_s12] sm:$0xff]  }
0x118a   : > { %v2093_v13 = vpop.permute.xlu0 %2092 }
0x118b   : > { %v4470_v16 = vadd.f32 %v2093_v13, %v2085_v47  ;;  %v3833_v47 = vld [vmem:[%s4760_s13] sm:$0xff]  }
0x118d   : > { %3904 = vtanh.f32 %v4470_v16 }
0x119a   : > { %v3905_v48 = vpop.eup %3904 }
0x119b   : > { %2098 = vrot.lane.b32.xlu0 %v3905_v48, %s3968_s25 }
0x11f9   : > { %v2178_v50 = vpop.permute.xlu1 %2177 }
0x11fa   : > { %v4475_v52 = vadd.f32 %v2178_v50, %v2170_v49 }
0x11fc   : > { %3906 = vtanh.f32 %v4475_v52 }
0x1209   : > { %v3907_v56 = vpop.eup %3906 }
0x120a   : > { %2183 = vrot.lane.b32.xlu1 %v3907_v56, %s3968_s25 }
0x120d   : > { %v2099_v57 = vpop.permute.xlu0 %2098 }
0x120e   : > { %v4487_v59 = vmul.f32 %v2099_v57, %v2083_v40 }
0x1210   : > { %v2192_v60 = vpack.c.bf16 %v4487_v59, %v4487_v59 }
0x1212   : > { %2196 = vrot.lane.b32.xlu0 %v2192_v60, %s3969_s1 }
0x1216   : > { %2287 = vrot.lane.b32.xlu0 %v1358_v58, %s3966_s23 }
0x127c   : > { %v2184_v61 = vpop.permute.xlu1 %2183 }
0x127d   : > { %v4495_v62 = vmul.f32 %v2184_v61, %v2168_v44 }
0x127f   : > { %v2275_v63 = vpack.c.bf16 %v4495_v62, %v4495_v62 }
0x1281   : > { %2279 = vrot.lane.b32.xlu1 %v2275_v63, %s3969_s1 }
0x1284   : > { %v2197_v0 = vpop.permute.xlu0 %2196 }
0x1285   : > { %3684 = vmatmul.mubr.msk.bf16.vlgmr.msra.gmra.mxu1 %vm674_vm0, %v2197_v0 }
0x1286   : > { %3695 = vmatprep.mubr.msk.bf16.mxu1 %vm3965_vm2, %v3964_v28  ;;  %3694 = vmatpush3.bf16.msra.mxu1 %v3832_v27 }
0x1287   : > { %3705 = vmatprep.subr.bf16.mxu1 %v3964_v28 }
0x1288   : > { %v2288_v45 = vpop.permute.xlu0 %2287 }
0x12f3   : > { %v2280_v1 = vpop.permute.xlu1 %2279 }
0x12f4   : > { %3690 = vmatmul.mubr.msk.bf16.vlgmr.msra.gmra.mxu0 %vm674_vm0, %v2280_v1 }
0x12f5   : > { %3701 = vmatprep.mubr.msk.bf16.mxu0 %vm3965_vm2, %v3964_v28  ;;  %3700 = vmatpush3.bf16.msra.mxu0 %v3833_v47 }
0x12f6   : > { %3713 = vmatprep.subr.bf16.mxu0 %v3964_v28 }
0x1345   : > { %v2242_v58 = vpop.f32.mrf.mxu1 }
0x1346   : > { %v2243_v2 = vadd.f32 %v2242_v58, %v1442_v53 }
0x1347   : > { %v3685_v4 = vpop.f32.mrf.mxu1 }
0x1348   : > { %3908 = vtanh.f32 %v2243_v2  ;;  %v2248_v12 = vmul.f32 0.5, %v2243_v2 }
0x1349   : > { %v2245_v5 = vpop.f32.mrf.mxu1 }
0x134a   : > { %3910 = vtanh.f32 %v2248_v12 }
0x134b   : > { %v3686_v7 = vpop.f32.mrf.mxu1 }
0x1355   : > { %v3909_v9 = vpop.eup %3908 }
0x1356   : > { %2255 = vrot.lane.b32.xlu1 %v3909_v9, %s3963_s2 }
0x1357   : > { %v3911_v23 = vpop.eup %3910 }
0x1358   : > { %v2250_v24 = vadd.f32 1.0, %v3911_v23 }
0x135a   : > { %v2251_v53 = vmul.f32 0.5, %v2250_v24 }
0x135c   : > { %v2253_v37 = vmul.f32 %v2251_v53, %v4470_v16 }
0x13b4   : > { %v2327_v14 = vpop.f32.mrf.mxu0 }
0x13b5   : > { %v2328_v11 = vadd.f32 %v2327_v14, %v2288_v45 }
0x13b6   : > { %v3691_v17 = vpop.f32.mrf.mxu0 }
0x13b7   : > { %3912 = vtanh.f32 %v2328_v11  ;;  %v2333_v32 = vmul.f32 0.5, %v2328_v11 }
0x13b8   : > { %v2330_v20 = vpop.f32.mrf.mxu0 }
0x13b9   : > { %3914 = vtanh.f32 %v2333_v32 }
0x13ba   : > { %v3692_v21 = vpop.f32.mrf.mxu0 }
0x13c4   : > { %v3913_v26 = vpop.eup %3912 }
0x13c5   : > { %2340 = vrot.lane.b32.xlu0 %v3913_v26, %s3963_s2 }
0x13c6   : > { %v3915_v33 = vpop.eup %3914 }
0x13c7   : > { %v2335_v34 = vadd.f32 1.0, %v3915_v33 }
0x13c8   : > { %v2256_v29 = vpop.permute.xlu1 %2255 }
0x13c9   : > { %v2258_v31 = vmul.f32 %v2256_v29, %v2251_v53  ;;  %v2336_v35 = vmul.f32 0.5, %v2335_v34 }
0x13cb   : > { %2260 = vrot.lane.b32.xlu1 %v2258_v31, %s3967_s24  ;;  %v2338_v43 = vmul.f32 %v2336_v35, %v4475_v52 }
0x1437   : > { %v2341_v36 = vpop.permute.xlu0 %2340 }
0x1438   : > { %v2343_v40 = vmul.f32 %v2341_v36, %v2336_v35 }
0x143a   : > { %2345 = vrot.lane.b32.xlu0 %v2343_v40, %s3967_s24 }
0x143d   : > { %v2261_v39 = vpop.permute.xlu1 %2260 }
0x143e   : > { %v4513_v41 = vadd.f32 %v2261_v39, %v2253_v37 }
0x1440   : > { %3916 = vtanh.f32 %v4513_v41 }
0x144d   : > { %v3917_v22 = vpop.eup %3916 }
0x144e   : > { %2266 = vrot.lane.b32.xlu1 %v3917_v22, %s3968_s25 }
0x14ac   : > { %v2346_v44 = vpop.permute.xlu0 %2345 }
0x14ad   : > { %v4518_v46 = vadd.f32 %v2346_v44, %v2338_v43 }
0x14af   : > { %3918 = vtanh.f32 %v4518_v46 }
0x14bc   : > { %v3919_v13 = vpop.eup %3918 }
0x14bd   : > { %2351 = vrot.lane.b32.xlu0 %v3919_v13, %s3968_s25 }
0x14c0   : > { %v2267_v16 = vpop.permute.xlu1 %2266 }
0x14c1   : > { %v2269_v48 = vmul.f32 %v2267_v16, %v2251_v53 }
0x14c3   : > { %v2360_v49 = vpack.c.bf16 %v2269_v48, %v2269_v48 }
0x14c5   : > { %2364 = vrot.lane.b32.xlu1 %v2360_v49, %s3969_s1 }
0x14c9   : > { %2455 = vrot.lane.b32.xlu1 %v4241_v8, %s3966_s23 }
0x152f   : > { %v2352_v50 = vpop.permute.xlu0 %2351 }
0x1530   : > { %v4533_v52 = vmul.f32 %v2352_v50, %v2336_v35  ;;  %v3478_v50 = vld [vmem:[%s4762_s15] ss:$0 sm:$0xff] }
0x1532   : > { %v2443_v19 = vpack.c.bf16 %v4533_v52, %v4533_v52 }
0x1534   : > { %2447 = vrot.lane.b32.xlu0 %v2443_v19, %s3969_s1 }
0x1537   : > { %v2365_v55 = vpop.permute.xlu1 %2364 }
0x1538   : > { %3696 = vmatmul.mubr.msk.bf16.vlgmr.msra.gmra.mxu1 %vm674_vm0, %v2365_v55 }
0x1539   : > { %3709 = vmatprep.mubr.msk.bf16.mxu1 %vm3965_vm2, %v3964_v28 }
0x153b   : > { %v2456_v2 = vpop.permute.xlu1 %2455 }
0x15a6   : > { %v2448_v56 = vpop.permute.xlu0 %2447 }
0x15a7   : > { %3702 = vmatmul.mubr.msk.bf16.vlgmr.msra.gmra.mxu0 %vm674_vm0, %v2448_v56 }
0x15a8   : > { %3715 = vmatprep.mubr.msk.bf16.mxu0 %vm3965_vm2, %v3964_v28 }
0x15f8   : > { %v2410_v57 = vpop.f32.mrf.mxu1 }
0x15f9   : > { %v2411_v60 = vadd.f32 %v2410_v57, %v1267_v10 }
0x15fa   : > { %v3697_v61 = vpop.f32.mrf.mxu1 }
0x15fb   : > { %3920 = vtanh.f32 %v2411_v60  ;;  %v2416_v58 = vmul.f32 0.5, %v2411_v60 }
0x15fc   : > { %v2413_v63 = vpop.f32.mrf.mxu1 }
0x15fd   : > { %3922 = vtanh.f32 %v2416_v58 }
0x15fe   : > { %v3698_v0 = vpop.f32.mrf.mxu1 }
0x1608   : > { %v3921_v1 = vpop.eup %3920 }
0x1609   : > { %2423 = vrot.lane.b32.xlu0 %v3921_v1, %s3963_s2 }
0x160a   : > { %v3923_v45 = vpop.eup %3922 }
0x160b   : > { %v2418_v14 = vadd.f32 1.0, %v3923_v45 }
0x160d   : > { %v2419_v10 = vmul.f32 0.5, %v2418_v14 }
0x160f   : > { %v2421_v29 = vmul.f32 %v2419_v10, %v4513_v41 }
0x1667   : > { %v2495_v4 = vpop.f32.mrf.mxu0 }
0x1668   : > { %v2496_v5 = vadd.f32 %v2495_v4, %v2456_v2 }
0x1669   : > { %v3703_v7 = vpop.f32.mrf.mxu0 }
0x166a   : > { %3924 = vtanh.f32 %v2496_v5  ;;  %v2501_v20 = vmul.f32 0.5, %v2496_v5 }
0x166b   : > { %v2498_v9 = vpop.f32.mrf.mxu0 }
0x166c   : > { %3926 = vtanh.f32 %v2501_v20 }
0x166d   : > { %v3704_v12 = vpop.f32.mrf.mxu0 }
0x1677   : > { %v3925_v8 = vpop.eup %3924 }
0x1678   : > { %2508 = vrot.lane.b32.xlu1 %v3925_v8, %s3963_s2 }
0x1679   : > { %v3927_v21 = vpop.eup %3926 }
0x167a   : > { %v2503_v23 = vadd.f32 1.0, %v3927_v21 }
0x167b   : > { %v2424_v11 = vpop.permute.xlu0 %2423 }
0x167c   : > { %v2426_v17 = vmul.f32 %v2424_v11, %v2419_v10  ;;  %v2504_v24 = vmul.f32 0.5, %v2503_v23 }
0x167e   : > { %2428 = vrot.lane.b32.xlu0 %v2426_v17, %s3967_s24  ;;  %v2506_v34 = vmul.f32 %v2504_v24, %v4518_v46  ;;  %v2607_v17 = vld [vmem:[%s625_s21] sm:$0x1] }
0x167f   : > { %v2813_v20 = vmul.f32 1e+09, %v2607_v17 }
0x16ea   : > { %v2509_v26 = vpop.permute.xlu1 %2508 }
0x16eb   : > { %v2511_v53 = vmul.f32 %v2509_v26, %v2504_v24 }
0x16ed   : > { %2513 = vrot.lane.b32.xlu1 %v2511_v53, %s3967_s24  ;;  %s3973_s24 = smov 1  }
0x16f0   : > { %v2429_v31 = vpop.permute.xlu0 %2428 }
0x16f1   : > { %v2431_v32 = vadd.f32 %v2429_v31, %v2421_v29 }
0x16f3   : > { %3928 = vtanh.f32 %v2431_v32 }
0x1700   : > { %v3929_v33 = vpop.eup %3928 }
0x1701   : > { %2434 = vrot.lane.b32.xlu0 %v3929_v33, %s3968_s25 }
0x1705   : > { %1251 = vrot.lane.b32.xlu0 %v4270_v51, %s3969_s1 }
0x1709   : > { %1426 = vrot.lane.b32.xlu0 %v4315_v38, %s3969_s1 }
0x170d   : > { %1596 = vrot.lane.b32.xlu0 %v4360_v25, %s3969_s1 }
0x1711   : > { %1766 = vrot.lane.b32.xlu0 %v4403_v15, %s3969_s1 }
0x1715   : > { %1935 = vrot.lane.b32.xlu0 %v4444_v3, %s3969_s1 }
0x1719   : > { %2103 = vrot.lane.b32.xlu0 %v4487_v59, %s3969_s1 }
0x171d   : > { %2271 = vrot.lane.b32.xlu0 %v2269_v48, %s3969_s1 }
0x175f   : > { %v2514_v51 = vpop.permute.xlu1 %2513 }
0x1760   : > { %v2516_v35 = vadd.f32 %v2514_v51, %v2506_v34 }
0x1762   : > { %3930 = vtanh.f32 %v2516_v35 }
0x176f   : > { %v3931_v38 = vpop.eup %3930 }
0x1770   : > { %2519 = vrot.lane.b32.xlu1 %v3931_v38, %s3968_s25 }
0x1773   : > { %v2435_v25 = vpop.permute.xlu0 %2434 }
0x1774   : > { %v2437_v36 = vmul.f32 %v2435_v25, %v2419_v10  ;;  %1341 = vrot.lane.b32.xlu1 %v4279_v54, %s3963_s2  ;;  %v2815_v10 = vlaneseq }
0x1776   : > { %2439 = vrot.lane.b32.xlu0 %v2437_v36, %s3969_s1  ;;  %v2816_v11 = vshrl.u32 %v2815_v10, 7 }
0x1777   : > { %v1252_v15 = vpop.permute.xlu0 %1251 }
0x1778   : > { %1255 = vst.msk [vmem:[#allocation2] sm:$0x1] %vm1254_vm13, %v1252_v15  ;;  %1512 = vrot.lane.b32.xlu1 %v4324_v42, %s3963_s2  ;;  %v2817_v21 = vsub.s32 0, %v2816_v11 }
0x177a   : > { %v2818_v23 = vrot.slane %v2813_v20, %v2817_v21 }
0x177b   : > { %v1427_v3 = vpop.permute.xlu0 %1426 }
0x177c   : > { %1429 = vst.msk [vmem:[#allocation2 + $0x1] sm:$0x1] %vm1254_vm13, %v1427_v3  ;;  %1682 = vrot.lane.b32.xlu1 %v4369_v30, %s3963_s2  ;;  %v3834_v30 = vld [vmem:[%s4761_s14 + $0x8] sm:$0xff]  }
0x177d   : > { %3706 = vmatpush3.bf16.msra.mxu1 %v3834_v30 }
0x177e   : > { %3707 = vmatprep.subr.bf16.mxu1 %v3964_v28 }
0x177f   : > { %v1597_v59 = vpop.permute.xlu0 %1596 }
0x1780   : > { %1599 = vst.msk [vmem:[#allocation2 + $0x2] sm:$0x1] %vm1254_vm13, %v1597_v59  ;;  %1852 = vrot.lane.b32.xlu1 %v4409_v18, %s3963_s2  ;;  %v3835_v18 = vld [vmem:[%s4761_s14] sm:$0xff]  }
0x1781   : > { %3708 = vmatpush3.bf16.msra.mxu1 %v3835_v18 }
0x1782   : > { %3719 = vmatprep.subr.bf16.mxu1 %v3964_v28 }
0x1783   : > { %v1767_v54 = vpop.permute.xlu0 %1766 }
0x1784   : > { %1769 = vst.msk [vmem:[#allocation2 + $0x3] sm:$0x1] %vm1254_vm13, %v1767_v54  ;;  %2020 = vrot.lane.b32.xlu1 %v4452_v6, %s3963_s2 }
0x1787   : > { %v1936_v42 = vpop.permute.xlu0 %1935 }
0x1788   : > { %2188 = vrot.lane.b32.xlu1 %v4495_v62, %s3963_s2 }
0x178b   : > { %v2104_v40 = vpop.permute.xlu0 %2103 }
0x178c   : > { %2356 = vrot.lane.b32.xlu1 %v4533_v52, %s3963_s2 }
0x178f   : > { %v2272_v37 = vpop.permute.xlu0 %2271 }
0x17e2   : > { %v2520_v6 = vpop.permute.xlu1 %2519 }
0x17e3   : > { %v2522_v62 = vmul.f32 %v2520_v6, %v2504_v24 }
0x17e5   : > { %2524 = vrot.lane.b32.xlu1 %v2522_v62, %s3963_s2 }
0x17e6   : > { %v1342_v39 = vpop.permute.xlu1 %1341 }
0x17e7   : > { %1345 = vst.msk [vmem:[#allocation2 + $0x7] sm:$0x1] %vm1344_vm14, %v1342_v39 }
0x17e8   : > { %v2440_v41 = vpop.permute.xlu0 %2439 }
0x17e9   : > { %2442 = vst.msk [vmem:[#allocation2 + $0x7] sm:$0x1] %vm1254_vm13, %v2440_v41 }
0x17ea   : > { %v1513_v22 = vpop.permute.xlu1 %1512 }
0x17eb   : > { %1515 = vst.msk [vmem:[#allocation2 + $0x6] sm:$0x1] %vm1344_vm14, %v1513_v22 }
0x17ec   : > { %2274 = vst.msk [vmem:[#allocation2 + $0x6] sm:$0x1] %vm1254_vm13, %v2272_v37 }
0x17ee   : > { %v1683_v43 = vpop.permute.xlu1 %1682 }
0x17ef   : > { %1685 = vst.msk [vmem:[#allocation2 + $0x5] sm:$0x1] %vm1344_vm14, %v1683_v43 }
0x17f0   : > { %2106 = vst.msk [vmem:[#allocation2 + $0x5] sm:$0x1] %vm1254_vm13, %v2104_v40 }
0x17f2   : > { %v1853_v44 = vpop.permute.xlu1 %1852 }
0x17f3   : > { %1855 = vst.msk [vmem:[#allocation2 + $0x4] sm:$0x1] %vm1344_vm14, %v1853_v44 }
0x17f4   : > { %1938 = vst.msk [vmem:[#allocation2 + $0x4] sm:$0x1] %vm1254_vm13, %v1936_v42 }
0x17f6   : > { %v2021_v46 = vpop.permute.xlu1 %2020 }
0x17f7   : > { %2023 = vst.msk [vmem:[#allocation2 + $0x3] sm:$0x1] %vm1344_vm14, %v2021_v46 }
0x17fa   : > { %v2189_v27 = vpop.permute.xlu1 %2188 }
0x17fb   : > { %2191 = vst.msk [vmem:[#allocation2 + $0x2] sm:$0x1] %vm1344_vm14, %v2189_v27 }
0x17fe   : > { %v2357_v47 = vpop.permute.xlu1 %2356 }
0x17ff   : > { %2359 = vst.msk [vmem:[#allocation2 + $0x1] sm:$0x1] %vm1344_vm14, %v2357_v47 }
0x1857   : > { %v2525_v13 = vpop.permute.xlu1 %2524 }
0x1858   : > { %2527 = vst.msk [vmem:[#allocation2] sm:$0x1] %vm1344_vm14, %v2525_v13 }
0x185f   : > { %v2528_v16 = vld [vmem:[#allocation2] sm:$0xff] }
0x1860   : > { %3932 = vtanh.f32 %v2528_v16 }
0x186d   : > { %v3933_v48 = vpop.eup %3932 }
0x186e   : > { %v2530_v49 = vpack.c.bf16 %v3933_v48, %v3933_v48 }
0x1870   : > { %3710 = vmatmul.mubr.msk.bf16.vlgmr.msra.gmra.mxu1 %vm1126_vm12, %v2530_v49 }
0x1871   : > { %3721 = vmatprep.mubr.msk.bf16.mxu1 %vm3965_vm2, %v3964_v28 }
0x1930   : > { %v2591_v52 = vpop.f32.mrf.mxu1 }
0x1931   : > { %v2592_v19 = vadd.f32 %v3478_v50, %v2591_v52 }
0x1932   : > { %v3711_v55 = vpop.f32.mrf.mxu1 }
0x1933   : > { %2601 = vrot.lane.b32.xlu1 %v2592_v19, %s3962_s22  ;;  %2598 = vrot.lane.b32.xlu0 %v2592_v19, %s3970_s0  ;;  %v4614_v57 = vpack.c.bf16 %v2592_v19, %v2592_v19  ;;  %s629_s22 = scalar_lea.vmem %s4750_s3, %s3422_s30 }
0x1934   : > { %v2594_v56 = vpop.f32.mrf.mxu1 }
0x1936   : > { %v3712_v60 = vpop.f32.mrf.mxu1 }
0x1937   : > { %2604 = vrot.lane.b32.xlu0 %v2592_v19, %s3971_s19  ;;  %2613 = vrot.lane.b32.xlu1 %v4614_v57, %s3963_s2 }
0x19a5   : > { %v2602_v61 = vpop.permute.xlu1 %2601  ;;  %v2599_v63 = vpop.permute.xlu0 %2598 }
0x19a6   : > { %v4618_v0 = vpack.c.bf16 %v2602_v61, %v2602_v61  ;;  %v4620_v1 = vpack.c.bf16 %v2599_v63, %v2599_v63 }
0x19a8   : > { %2663 = vrot.lane.b32.xlu0 %v4620_v1, %s3963_s2  ;;  %2712 = vrot.lane.b32.xlu1 %v4618_v0, %s3963_s2 }
0x19a9   : > { %v2605_v58 = vpop.permute.xlu0 %2604  ;;  %v2614_v2 = vpop.permute.xlu1 %2613 }
0x19aa   : > { %v4626_v4 = vpack.c.bf16 %v2605_v58, %v2605_v58  ;;  %v2620_v5 = vsel %vm2615_vm15, %v2614_v2, 0 }
0x19ab   : > { %3714 = vmatpush3.bf16.xpose.msra.mxu0 %v2620_v5 }
0x19ac   : > { %2761 = vrot.lane.b32.xlu0 %v4626_v4, %s3963_s2  ;;  %3725 = vmatprep.subr.bf16.mxu0 %v3964_v28 }
0x19b2   : > { %3716 = vmatmul.mubr.msk.bf16.vlgmr.msra.gmra.mxu0 %vm2615_vm15, %v4614_v57 }
0x19b3   : > { %3727 = vmatprep.mubr.msk.bf16.mxu0 %vm3965_vm2, %v3964_v28 }
0x1a1a   : > { %v2664_v7 = vpop.permute.xlu0 %2663  ;;  %v2713_v9 = vpop.permute.xlu1 %2712 }
0x1a1b   : > { %v2669_v12 = vsel %vm2615_vm15, %v2664_v7, 0  ;;  %v2718_v45 = vsel %vm2615_vm15, %v2713_v9, 0 }
0x1a1c   : > { %3720 = vmatpush3.bf16.xpose.msra.mxu1 %v2669_v12  ;;  %3726 = vmatpush3.bf16.xpose.msra.mxu0 %v2718_v45 }
0x1a1d   : > { %3731 = vmatprep.subr.bf16.mxu1 %v3964_v28  ;;  %3737 = vmatprep.subr.bf16.mxu0 %v3964_v28 }
0x1a1e   : > { %v2762_v14 = vpop.permute.xlu0 %2761 }
0x1a1f   : > { %v2767_v8 = vsel %vm2615_vm15, %v2762_v14, 0 }
0x1a23   : > { %3722 = vmatmul.mubr.msk.bf16.vlgmr.msra.gmra.mxu1 %vm2615_vm15, %v4620_v1  ;;  %3728 = vmatmul.mubr.msk.bf16.vlgmr.msra.gmra.mxu0 %vm2615_vm15, %v4618_v0 }
0x1a24   : > { %3732 = vmatpush3.bf16.xpose.msra.mxu1 %v2767_v8  ;;  %3733 = vmatprep.mubr.msk.bf16.mxu1 %vm3965_vm2, %v3964_v28 }
0x1a25   : > { %3743 = vmatprep.subr.bf16.mxu1 %v3964_v28  ;;  %3739 = vmatprep.mubr.msk.bf16.mxu0 %vm3965_vm2, %v3964_v28 }
0x1a2b   : > { %3734 = vmatmul.mubr.msk.bf16.vlgmr.msra.gmra.mxu1 %vm2615_vm15, %v4626_v4 }
0x1a2c   : > { %3745 = vmatprep.mubr.msk.bf16.mxu1 %vm3965_vm2, %v3964_v28 }
0x1a72   : > { %v2656_v24 = vpop.f32.mrf.mxu0 }
0x1a73   : > { %v2809_v26 = vmul.f32 0.35355338, %v2656_v24 }
0x1a74   : > { %v3717_v53 = vpop.f32.mrf.mxu0 }
0x1a75   : > { %v2820_v29 = vsub.f32 %v2809_v26, %v2818_v23 }
0x1a76   : > { %v2659_v31 = vpop.f32.mrf.mxu0 }
0x1a77   : > { %v2824_v32 = vsel %vm2615_vm15, %v2820_v29, -inf  ;;  %v3068_v31 = vld [vmem:[%s4763_s16] sm:$0xf] }
0x1a78   : > { %2825 = vmax.xlane.f32.xlu1 %v2824_v32  ;;  %v3718_v33 = vpop.f32.mrf.mxu0 }
0x1ae3   : > { %v2705_v34 = vpop.f32.mrf.mxu1  ;;  %v2754_v51 = vpop.f32.mrf.mxu0 }
0x1ae4   : > { %v2810_v35 = vmul.f32 0.35355338, %v2705_v34  ;;  %v2811_v38 = vmul.f32 0.35355338, %v2754_v51  ;;  %v3076_v51 = vsel %vm1050_vm1, %v3068_v31, 0 }
0x1ae5   : > { %v3723_v25 = vpop.f32.mrf.mxu1  ;;  %v3729_v36 = vpop.f32.mrf.mxu0 }
0x1ae6   : > { %v2821_v15 = vsub.f32 %v2810_v35, %v2818_v23  ;;  %v2822_v54 = vsub.f32 %v2811_v38, %v2818_v23  ;;  %v3069_v38 = vld [vmem:[%s4763_s16 + $0x4] sm:$0xf] }
0x1ae7   : > { %v2708_v3 = vpop.f32.mrf.mxu1  ;;  %v2757_v59 = vpop.f32.mrf.mxu0 }
0x1ae8   : > { %v2827_v42 = vsel %vm2615_vm15, %v2821_v15, -inf  ;;  %v2830_v62 = vsel %vm2615_vm15, %v2822_v54, -inf  ;;  %v3070_v3 = vld [vmem:[%s4763_s16 + $0x8] sm:$0xf] }
0x1ae9   : > { %v3730_v30 = vpop.f32.mrf.mxu0  ;;  %2828 = vmax.xlane.f32.xlu0 %v2827_v42  ;;  %v3724_v18 = vpop.f32.mrf.mxu1  ;;  %v3168_v42 = vsel %vm1050_vm1, %v3070_v3, 0 }
0x1aeb   : > { %v2803_v40 = vpop.f32.mrf.mxu1 }
0x1aec   : > { %v2812_v6 = vmul.f32 0.35355338, %v2803_v40 }
0x1aed   : > { %2831 = vmax.xlane.f32.xlu0 %v2830_v62  ;;  %v3735_v37 = vpop.f32.mrf.mxu1  ;;  %v3272_v62 = vld [vmem:[%s629_s22] sm:$0xff] }
0x1aee   : > { %v2823_v39 = vsub.f32 %v2812_v6, %v2818_v23  ;;  %v3972_v6 = vmov 0   ;;  %v3071_v37 = vld [vmem:[%s4763_s16 + $0xc] sm:$0xf] }
0x1aef   : > { %v2806_v41 = vpop.f32.mrf.mxu1  ;;  %3805 = vset.pattern.permute.xlu0 %v3972_v6 }
0x1af0   : > { %v2833_v22 = vsel %vm2615_vm15, %v2823_v39, -inf }
0x1af1   : > { %2834 = vmax.xlane.f32.xlu1 %v2833_v22  ;;  %v3736_v43 = vpop.f32.mrf.mxu1  ;;  %v3214_v22 = vsel %vm1050_vm1, %v3071_v37, 0 }
0x1b01   : > { %v2826_v44 = vpop.xlane.xlu1 %2825 }
0x1b02   : > { %v2836_v46 = vsub.f32 %v2820_v29, %v2826_v44  ;;  %2920 = vrot.lane.b32.xlu1 %v4620_v1, %s3966_s23 }
0x1b04   : > { %v2840_v27 = vmul.f32 1.442695, %v2836_v46 }
0x1b06   : > { %3934 = vpow2.f32 %v2840_v27 }
0x1b13   : > { %v3935_v47 = vpop.eup %3934 }
0x1b14   : > { %v2848_v13 = vsel %vm2615_vm15, %v3935_v47, 0.0 }
0x1b15   : > { %2849 = vadd.xlane.f32.xlu0 %v2848_v13 }
0x1b2b   : > { %2872 = vrot.lane.b32.xlu0 %v4614_v57, %s3966_s23 }
0x1b72   : > { %v2829_v16 = vpop.xlane.xlu0 %2828 }
0x1b73   : > { %v2837_v48 = vsub.f32 %v2821_v15, %v2829_v16  ;;  %v3122_v15 = vsel %vm1050_vm1, %v3069_v38, 0 }
0x1b75   : > { %v2842_v49 = vmul.f32 1.442695, %v2837_v48 }
0x1b76   : > { %v2832_v50 = vpop.xlane.xlu0 %2831 }
0x1b77   : > { %3936 = vpow2.f32 %v2842_v49  ;;  %v2838_v52 = vsub.f32 %v2822_v54, %v2832_v50 }
0x1b79   : > { %v2844_v19 = vmul.f32 1.442695, %v2838_v52 }
0x1b7a   : > { %v2835_v55 = vpop.xlane.xlu1 %2834 }
0x1b7b   : > { %3938 = vpow2.f32 %v2844_v19  ;;  %v2839_v56 = vsub.f32 %v2823_v39, %v2835_v55 }
0x1b7d   : > { %v2846_v60 = vmul.f32 1.442695, %v2839_v56 }
0x1b7e   : > { %v2921_v61 = vpop.permute.xlu1 %2920 }
0x1b7f   : > { %3940 = vpow2.f32 %v2846_v60  ;;  %v2926_v63 = vsel %vm1050_vm1, %v2921_v61, 0 }
0x1b80   : > { %3744 = vmatpush3.bf16.msra.mxu1 %v2926_v63 }
0x1b81   : > { %3755 = vmatprep.subr.bf16.mxu1 %v3964_v28 }
0x1b84   : > { %v3937_v1 = vpop.eup %3936 }
0x1b85   : > { %v2851_v57 = vsel %vm2615_vm15, %v3937_v1, 0.0 }
0x1b86   : > { %2852 = vadd.xlane.f32.xlu1 %v2851_v57 }
0x1b88   : > { %v3939_v58 = vpop.eup %3938 }
0x1b89   : > { %v2854_v2 = vsel %vm2615_vm15, %v3939_v58, 0.0 }
0x1b8a   : > { %2855 = vadd.xlane.f32.xlu0 %v2854_v2 }
0x1b8c   : > { %v3941_v5 = vpop.eup %3940 }
0x1b8d   : > { %v2857_v7 = vsel %vm2615_vm15, %v3941_v5, 0.0 }
0x1b8e   : > { %2858 = vadd.xlane.f32.xlu1 %v2857_v7 }
0x1b9e   : > { %v2850_v9 = vpop.xlane.xlu0 %2849 }
0x1b9f   : > { %3942 = vrcp.f32 %v2850_v9  ;;  %2968 = vrot.lane.b32.xlu1 %v4618_v0, %s3966_s23 }
0x1ba0   : > { %3016 = vrot.lane.b32.xlu0 %v4626_v4, %s3966_s23 }
0x1ba2   : > { %v2873_v12 = vpop.permute.xlu0 %2872 }
0x1ba3   : > { %v2878_v45 = vsel %vm1050_vm1, %v2873_v12, 0 }
0x1ba4   : > { %3738 = vmatpush3.bf16.msra.mxu0 %v2878_v45  ;;  %3288 = vperm.xlu0 %3805, %v3272_v62  }
0x1ba5   : > { %3749 = vmatprep.subr.bf16.mxu0 %v3964_v28 }
0x1bac   : > { %v3943_v14 = vpop.eup %3942 }
0x1bad   : > { %v2861_v8 = vmul.f32 %v3943_v14, %v3935_v47 }
0x1baf   : > { %v2868_v11 = vpack.c.bf16 %v2861_v8, %v2861_v8 }
0x1bb1   : > { %3740 = vmatmul.mubr.msk.bf16.vlgmr.msra.gmra.mxu0 %vm2615_vm15, %v2868_v11 }
0x1bb2   : > { %3751 = vmatprep.mubr.msk.bf16.mxu0 %vm3965_vm2, %v3964_v28 }
0x1c0f   : > { %v2853_v17 = vpop.xlane.xlu1 %2852 }
0x1c10   : > { %3944 = vrcp.f32 %v2853_v17 }
0x1c13   : > { %v2856_v0 = vpop.xlane.xlu0 %2855 }
0x1c14   : > { %3946 = vrcp.f32 %v2856_v0 }
0x1c17   : > { %v2859_v20 = vpop.xlane.xlu1 %2858  ;;  %v3017_v26 = vpop.permute.xlu0 %3016 }
0x1c18   : > { %3948 = vrcp.f32 %v2859_v20  ;;  %v3022_v32 = vsel %vm1050_vm1, %v3017_v26, 0  ;;  %v3494_v20 = vld [vmem:[%s4764_s17] ss:$0 sm:$0xff] }
0x1c1b   : > { %v2969_v4 = vpop.permute.xlu1 %2968 }
0x1c1c   : > { %v2974_v21 = vsel %vm1050_vm1, %v2969_v4, 0  ;;  %vm3296_vm1 = vcmp.ne.s32.totalorder %v3272_v62, 7 }
0x1c1d   : > { %v3945_v23 = vpop.eup %3944  ;;  %3750 = vmatpush3.bf16.msra.mxu0 %v2974_v21 }
0x1c1e   : > { %v2863_v24 = vmul.f32 %v3945_v23, %v3937_v1  ;;  %3761 = vmatprep.subr.bf16.mxu0 %v3964_v28 }
0x1c1f   : > { %v3289_v26 = vpop.permute.xlu0 %3288 }
0x1c20   : > { %v2869_v53 = vpack.c.bf16 %v2863_v24, %v2863_v24  ;;  %v3286_v24 = vand.u32 127, %v2815_v10 }
0x1c21   : > { %v3947_v29 = vpop.eup %3946 }
0x1c22   : > { %3746 = vmatmul.mubr.msk.bf16.vlgmr.msra.gmra.mxu1 %vm2615_vm15, %v2869_v53  ;;  %v2865_v33 = vmul.f32 %v3947_v29, %v3939_v58  ;;  %vm3290_vm0 = vcmp.eq.s32.totalorder %v3286_v24, %v3289_v26 }
0x1c23   : > { %3756 = vmatpush3.bf16.msra.mxu1 %v3022_v32  ;;  %3757 = vmatprep.mubr.msk.bf16.mxu1 %vm3965_vm2, %v3964_v28 }
0x1c24   : > { %v2870_v34 = vpack.c.bf16 %v2865_v33, %v2865_v33  ;;  %3767 = vmatprep.subr.bf16.mxu1 %v3964_v28 }
0x1c25   : > { %v3949_v35 = vpop.eup %3948 }
0x1c26   : > { %3752 = vmatmul.mubr.msk.bf16.vlgmr.msra.gmra.mxu0 %vm2615_vm15, %v2870_v34  ;;  %v2867_v25 = vmul.f32 %v3949_v35, %v3941_v5  ;;  %v3495_v35 = vsel %vm3296_vm1, 1.0, %v3964_v28 }
0x1c27   : > { %3762 = vmatpush3.bf16.msra.mxu0 %v3076_v51  ;;  %3763 = vmatprep.mubr.msk.bf16.mxu0 %vm3965_vm2, %v3964_v28 }
0x1c28   : > { %v2871_v36 = vpack.c.bf16 %v2867_v25, %v2867_v25  ;;  %3773 = vmatprep.subr.bf16.mxu0 %v3964_v28 }
0x1c2a   : > { %3758 = vmatmul.mubr.msk.bf16.vlgmr.msra.gmra.mxu1 %vm2615_vm15, %v2871_v36 }
0x1c2b   : > { %3768 = vmatpush3.bf16.msra.mxu1 %v3122_v15  ;;  %3769 = vmatprep.mubr.msk.bf16.mxu1 %vm3965_vm2, %v3964_v28 }
0x1c2c   : > { %3779 = vmatprep.subr.bf16.mxu1 %v3964_v28 }
0x1c71   : > { %v2914_v59 = vpop.f32.mrf.mxu0 }
0x1c72   : > { %v3064_v54 = vpack.c.bf16 %v2914_v59, %v2914_v59 }
0x1c73   : > { %v3741_v30 = vpop.f32.mrf.mxu0 }
0x1c74   : > { %3764 = vmatmul.mubr.msk.bf16.vlgmr.msra.gmra.mxu0 %vm2615_vm15, %v3064_v54 }
0x1c75   : > { %v2917_v18 = vpop.f32.mrf.mxu0  ;;  %3774 = vmatpush3.bf16.msra.mxu0 %v3168_v42  ;;  %3775 = vmatprep.mubr.msk.bf16.mxu0 %vm3965_vm2, %v3964_v28 }
0x1c77   : > { %v3742_v40 = vpop.f32.mrf.mxu0 }
0x1ce2   : > { %v2962_v39 = vpop.f32.mrf.mxu1 }
0x1ce3   : > { %v3065_v41 = vpack.c.bf16 %v2962_v39, %v2962_v39 }
0x1ce4   : > { %v3747_v43 = vpop.f32.mrf.mxu1 }
0x1ce5   : > { %3770 = vmatmul.mubr.msk.bf16.vlgmr.msra.gmra.mxu1 %vm2615_vm15, %v3065_v41 }
0x1ce6   : > { %v2965_v44 = vpop.f32.mrf.mxu1  ;;  %v3010_v46 = vpop.f32.mrf.mxu0  ;;  %3780 = vmatpush3.bf16.msra.mxu1 %v3214_v22  ;;  %3781 = vmatprep.mubr.msk.bf16.mxu1 %vm3965_vm2, %v3964_v28  ;;  %vm3300_vm2 = vcmask 7168  }
0x1ce7   : > { %v3066_v27 = vpack.c.bf16 %v3010_v46, %v3010_v46  ;;  %v3308_v38 = vsel %vm3300_vm2, %v3495_v35, 0.0 }
0x1ce8   : > { %v3748_v47 = vpop.f32.mrf.mxu1  ;;  %v3753_v13 = vpop.f32.mrf.mxu0  ;;  %v3309_v10 = vrot.slane %v3308_v38, 4 }
0x1ce9   : > { %3776 = vmatmul.mubr.msk.bf16.vlgmr.msra.gmra.mxu0 %vm2615_vm15, %v3066_v27 }
0x1cea   : > { %v3013_v16 = vpop.f32.mrf.mxu0  ;;  %v3058_v48 = vpop.f32.mrf.mxu1  ;;  %v3310_v25 = vadd.f32 %v3309_v10, %v3308_v38 }
0x1ceb   : > { %v3067_v49 = vpack.c.bf16 %v3058_v48, %v3058_v48 }
0x1cec   : > { %v3754_v50 = vpop.f32.mrf.mxu0  ;;  %v3759_v52 = vpop.f32.mrf.mxu1  ;;  %v3311_v36 = vrot.slane %v3310_v25, 2 }
0x1ced   : > { %3782 = vmatmul.mubr.msk.bf16.vlgmr.msra.gmra.mxu1 %vm2615_vm15, %v3067_v49 }
0x1cee   : > { %v3061_v19 = vpop.f32.mrf.mxu1  ;;  %v3312_v15 = vadd.f32 %v3311_v36, %v3310_v25 }
0x1cf0   : > { %v3760_v55 = vpop.f32.mrf.mxu1  ;;  %v3313_v3 = vrot.slane %v3312_v15, 1 }
0x1cf2   : > { %v3314_v59 = vadd.f32 %v3313_v3, %v3312_v15 }
0x1d34   : > { %v3112_v56 = vpop.f32.mrf.mxu0 }
0x1d35   : > { %v3256_v7 = vsel %vm2615_vm15, %v3112_v56, 0.0 }
0x1d36   : > { %v3765_v60 = vpop.f32.mrf.mxu0 }
0x1d38   : > { %v3115_v61 = vpop.f32.mrf.mxu0 }
0x1d3a   : > { %v3766_v63 = vpop.f32.mrf.mxu0 }
0x1da5   : > { %v3158_v1 = vpop.f32.mrf.mxu1 }
0x1da6   : > { %v3257_v58 = vsel %vm2615_vm15, %v3158_v1, 0.0 }
0x1da7   : > { %v3771_v57 = vpop.f32.mrf.mxu1  ;;  %v3258_v12 = vadd.f32 %v3257_v58, %v3256_v7 }
0x1da9   : > { %v3161_v2 = vpop.f32.mrf.mxu1  ;;  %v3204_v5 = vpop.f32.mrf.mxu0 }
0x1daa   : > { %v3259_v9 = vsel %vm2615_vm15, %v3204_v5, 0.0 }
0x1dab   : > { %v3772_v45 = vpop.f32.mrf.mxu1  ;;  %v3777_v14 = vpop.f32.mrf.mxu0  ;;  %v3260_v8 = vadd.f32 %v3259_v9, %v3258_v12 }
0x1dad   : > { %v3207_v11 = vpop.f32.mrf.mxu0  ;;  %v3250_v17 = vpop.f32.mrf.mxu1 }
0x1dae   : > { %v3261_v0 = vsel %vm2615_vm15, %v3250_v17, 0.0 }
0x1daf   : > { %v3262_v4 = vadd.f32 %v3261_v0, %v3260_v8  ;;  %v3778_v21 = vpop.f32.mrf.mxu0  ;;  %v3783_v23 = vpop.f32.mrf.mxu1 }
0x1db1   : > { %v3270_v53 = vadd.f32 %v3494_v20, %v3262_v4  ;;  %v3253_v29 = vpop.f32.mrf.mxu1 }
0x1db3   : > { %v3271_v31 = vmax.f32 %v3270_v53, 0.0  ;;  %v3784_v32 = vpop.f32.mrf.mxu1 }
0x1db5   : > { %v3273_v33 = vsel %vm2615_vm15, %v3271_v31, -inf  ;;  %v3291_v34 = vsel %vm3290_vm0, %v3271_v31, 0.0 }
0x1db6   : > { %3274 = vmax.xlane.f32.xlu1 %v3273_v33  ;;  %v3292_v51 = vsel %vm2615_vm15, %v3291_v34, 0.0 }
0x1dba   : > { %3293 = vadd.xlane.f32.xlu1 %v3292_v51 }
0x1dcb   : > { %3316 = vrot.lane.b32.xlu1 %v3314_v59, %s3973_s24 }
0x1e3f   : > { %v3275_v54 = vpop.xlane.xlu1 %3274 }
0x1e40   : > { %v3276_v42 = vsub.f32 %v3271_v31, %v3275_v54 }
0x1e42   : > { %v3277_v30 = vmul.f32 1.442695, %v3276_v42 }
0x1e43   : > { %v3294_v39 = vpop.xlane.xlu1 %3293 }
0x1e44   : > { %3950 = vpow2.f32 %v3277_v30 }
0x1e47   : > { %v3317_v16 = vpop.permute.xlu1 %3316 }
0x1e51   : > { %v3951_v18 = vpop.eup %3950 }
0x1e52   : > { %v3279_v40 = vsel %vm2615_vm15, %v3951_v18, 0.0 }
0x1e53   : > { %3280 = vadd.xlane.f32.xlu0 %v3279_v40 }
0x1edc   : > { %v3281_v28 = vpop.xlane.xlu0 %3280 }
0x1edd   : > { %3952 = vlog2.f32 %v3281_v28 }
0x1eea   : > { %v3953_v6 = vpop.eup %3952 }
0x1eeb   : > { %v3283_v62 = vmul.f32 0.6931472, %v3953_v6 }
0x1eed   : > { %v3284_v37 = vadd.f32 %v3283_v62, %v3275_v54 }
0x1eef   : > { %v3295_v41 = vsub.f32 %v3284_v37, %v3294_v39 }
0x1ef1   : > { %v3299_v22 = vmul.f32 %v3495_v35, %v3295_v41 }
0x1ef3   : > { %v3301_v43 = vsel %vm3300_vm2, %v3299_v22, 0.0 }
0x1ef4   : > { %v3302_v44 = vrot.slane %v3301_v43, 4 }
0x1ef6   : > { %v3303_v46 = vadd.f32 %v3302_v44, %v3301_v43 }
0x1ef8   : > { %v3304_v27 = vrot.slane %v3303_v46, 2 }
0x1efa   : > { %v3305_v47 = vadd.f32 %v3304_v27, %v3303_v46 }
0x1efc   : > { %v3306_v13 = vrot.slane %v3305_v47, 1 }
0x1efe   : > { %v3307_v48 = vadd.f32 %v3306_v13, %v3305_v47 }
0x1f00   : > { %v3319_v49 = vsel %vm3300_vm2, %v3307_v48, %v3317_v16 }
0x1f01   : > { %3321 = vst.msk [vmem:[%s636_s26] sm:$0x1] %vm3320_vm3, %v3319_v49 }
0x1f02 PF: > { %s28_s27 = sadd.s32 1, %s3960_s27  }
0x1f03   : > { %p25_p4 = scmp.ge.s32.totalorder %s28_s27, 4  }
0x1f05   :  { %27 = sbr.rel (!%p25_p4) target bundleno = 4 (0x4), region = 134 }

</bundles_post_ra>
